<compile_context>
chip_gen: v6e
topology: v6e:2x2x1
jax: 0.10.0
libtpu: 0.0.40
codegen_flags: <defaults>
</compile_context>

<pallas_src>
import functools

import jax
import jax.numpy as jnp
from jax.experimental import pallas as pl
from jax.experimental.pallas import tpu as pltpu


def _cbam_kernel(x_ref, w1_ref, w2_ref, wsp_ref, o_ref, pad_ref,
                 *, ksize, height, width):
    # x_ref   : (Bb, C, H*W) VMEM   -- lane-dense bulk block
    # w1_ref  : (Cr, C)      VMEM   -- 1x1 conv C  -> Cr (no bias)
    # w2_ref  : (C, Cr)      VMEM   -- 1x1 conv Cr -> C  (no bias)
    # wsp_ref : (2*K*K,)     SMEM   -- KxK spatial conv weights, [c, kh, kw] flat
    # o_ref   : (Bb, C, H*W) VMEM
    # pad_ref : (2, Bb, H+2P, W+2P) VMEM scratch (zero-padded conv input planes)
    Bb, C, HW = x_ref.shape
    Cr = w1_ref.shape[0]
    K, H, W = ksize, height, width
    P = K // 2

    # Hoist every weight load / cast out of the hot loops (once per grid step).
    wv = [[[wsp_ref[c * K * K + kh * K + kw] for kw in range(K)]
           for kh in range(K)] for c in range(2)]
    w1 = w1_ref[...].astype(jnp.float32)                       # (Cr, C)
    w2 = w2_ref[...].astype(jnp.float32)                       # (C, Cr)

    x = x_ref[...].astype(jnp.float32)                         # (Bb, C, HW)

    # ---- channel attention (batched over Bb) ----
    pooled = jnp.mean(x, axis=2)                               # (Bb, C)
    if C >= 128 and Cr >= 8:
        # Production-sized CBAM: run the tiny MLP on the MXU.
        hid = jnp.maximum(
            jax.lax.dot_general(pooled, w1, (((1,), (1,)), ((), ())),
                                preferred_element_type=jnp.float32), 0.0)
        scale = jax.nn.sigmoid(
            jax.lax.dot_general(hid, w2, (((1,), (1,)), ((), ())),
                                preferred_element_type=jnp.float32))
    else:
        # Tiny C / Cr (demo sizes): keep it on the VPU + one lane reduction.
        hid = jnp.maximum(
            jnp.sum(pooled[:, None, :] * w1[None, :, :], axis=2), 0.0)       # (Bb, Cr)
        scale = jax.nn.sigmoid(
            jnp.sum(hid[:, None, :] * w2[None, :, :], axis=2))               # (Bb, C)
    ca = x * scale[:, :, None]                                 # (Bb, C, HW)

    # ---- spatial attention input: channel mean / max (lane-dense) ----
    avg_out = jnp.mean(ca, axis=1)                             # (Bb, HW)
    max_out = jnp.max(ca, axis=1)                              # (Bb, HW)

    # Zero-padded conv input planes.  Only the halo relies on the zeros; the
    # interior is fully overwritten with a single block store per map.  Zeroing
    # is unconditional (per grid step) so it stays correct when the "parallel"
    # batch axis is sharded across TensorCores (per-core scratch copies).
    pad_ref[...] = jnp.zeros(pad_ref.shape, jnp.float32)
    pad_ref[0, :, P:P + H, P:P + W] = avg_out.reshape(Bb, H, W)
    pad_ref[1, :, P:P + H, P:P + W] = max_out.reshape(Bb, H, W)

    # ---- KxK conv (2 -> 1, padding P, no bias), batched over Bb ----
    # Re-read one (Bb, H, W+2P) slab per (c, kh); only that slab, the running
    # partial and the accumulator are live (no K*K plane cache -> no spills).
    sa_acc = jnp.zeros((Bb, H, W), jnp.float32)
    for c in range(2):
        for kh in range(K):
            rows = pad_ref[c, :, kh:kh + H, :]                 # (Bb, H, W+2P)
            part = wv[c][kh][0] * rows[:, :, 0:W]
            for kw in range(1, K):
                part = part + wv[c][kh][kw] * rows[:, :, kw:kw + W]
            sa_acc = sa_acc + part

    # Back to the lane-dense layout for the sigmoid + final scaling / store.
    sa = jax.nn.sigmoid(sa_acc.reshape(Bb, HW))                # (Bb, HW)
    o_ref[...] = (ca * sa[:, None, :]).astype(o_ref.dtype)


def _vmem_capacity_bytes():
    """Physical VMEM of the local TPU (fallback: v7x-sized 64 MiB)."""
    try:
        cap = int(pltpu.get_tpu_info().vmem_capacity_bytes)
        if cap > 0:
            return cap
    except Exception:
        pass
    return 64 * 1024 * 1024


def _choose_block_batch(B, C, HW, in_itemsize, pad_elems, vmem_budget_bytes):
    """Largest Bb (divisor of B) whose per-step footprint (double-buffered
    in+out blocks + f32 working copies + padded-conv scratch) fits the budget."""
    def footprint(bb):
        io = 2 * 2 * bb * C * HW * in_itemsize     # in + out, double-buffered
        f32_tmp = 3 * bb * C * HW * 4              # x / ca / product f32 temporaries
        scratch = 2 * bb * pad_elems * 4           # padded conv planes
        return io + f32_tmp + scratch

    best = 1
    for bb in range(1, B + 1):
        if B % bb == 0 and footprint(bb) <= vmem_budget_bytes:
            best = bb
    return best


def cbam_pallas(x, w1, w2, w_spatial, *, kernel_size=7, block_batch=None):
    B, C, H, W = x.shape
    Cr = w1.shape[0]
    K = kernel_size
    P = K // 2
    HW = H * W

    # Lane-dense layout for the bulk tensors: last dim = H*W.
    x2 = x.reshape(B, C, HW)
    wsp_flat = w_spatial.reshape(-1).astype(jnp.float32)   # (2*K*K,), [c, kh, kw]

    cap = _vmem_capacity_bytes()
    # Generation-aware pipeline budget: ~40% of physical VMEM, capped at 48 MiB
    # (v5e/v6e: 48 MiB of 128; v7x: ~25 MiB of 64).
    budget = min(int(cap * 0.4), 48 * 1024 * 1024)
    pad_elems = (H + 2 * P) * (W + 2 * P)
    if block_batch is None:
        block_batch = _choose_block_batch(
            B, C, HW, jnp.dtype(x.dtype).itemsize, pad_elems, budget)
    Bb = block_batch
    assert B % Bb == 0, "block_batch must divide the batch size"

    # Scoped-VMEM limit matched to (and above) the budget used to pick Bb.
    vmem_limit = int(min(max(budget + (16 << 20), 32 << 20), int(cap * 0.75)))

    out2 = pl.pallas_call(
        functools.partial(_cbam_kernel, ksize=K, height=H, width=W),
        out_shape=jax.ShapeDtypeStruct((B, C, HW), x.dtype),
        grid=(B // Bb,),
        in_specs=[
            pl.BlockSpec((Bb, C, HW), lambda g: (g, 0, 0)),
            pl.BlockSpec((Cr, C), lambda g: (0, 0)),
            pl.BlockSpec((C, Cr), lambda g: (0, 0)),
            pl.BlockSpec(memory_space=pltpu.SMEM),   # spatial conv scalar weights
        ],
        out_specs=pl.BlockSpec((Bb, C, HW), lambda g: (g, 0, 0)),
        scratch_shapes=[
            pltpu.VMEM((2, Bb, H + 2 * P, W + 2 * P), jnp.float32),
        ],
        compiler_params=pltpu.CompilerParams(
            dimension_semantics=("parallel",),
            vmem_limit_bytes=vmem_limit,
        ),
    )(x2, w1, w2, wsp_flat)

    return out2.reshape(B, C, H, W)


def cbam_reference(x, w1, w2, w_spatial):
    # Pure-JAX reference, mirrors the PyTorch forward exactly.
    pooled = jnp.mean(x, axis=(2, 3))                      # (B, C)
    hid = jax.nn.relu(pooled @ w1.T)                       # (B, Cr)
    scale = jax.nn.sigmoid(hid @ w2.T)                     # (B, C)
    ca = x * scale[:, :, None, None]
    avg_out = jnp.mean(ca, axis=1, keepdims=True)
    max_out = jnp.max(ca, axis=1, keepdims=True)
    sa_in = jnp.concatenate([avg_out, max_out], axis=1)    # (B, 2, H, W)
    P = w_spatial.shape[-1] // 2
    sa = jax.lax.conv_general_dilated(
        sa_in, w_spatial, window_strides=(1, 1), padding=[(P, P), (P, P)],
        dimension_numbers=("NCHW", "OIHW", "NCHW"))
    sa = jax.nn.sigmoid(sa)
    return ca * sa


if __name__ == "__main__":
    B, C, H, W = 2, 32, 16, 16
    reduction, ksize = 16, 7
    Cr = C // reduction

    key = jax.random.PRNGKey(0)
    kx, k1, k2, k3 = jax.random.split(key, 4)
    x = jax.random.normal(kx, (B, C, H, W), dtype=jnp.float32)
    # Deterministic synthetic weights (PyTorch conv shapes: OIHW, bias=False).
    w1 = jax.random.normal(k1, (Cr, C), dtype=jnp.float32) * 0.2        # Conv2d(C, Cr, 1)
    w2 = jax.random.normal(k2, (C, Cr), dtype=jnp.float32) * 0.2        # Conv2d(Cr, C, 1)
    w_spatial = jax.random.normal(k3, (1, 2, ksize, ksize), dtype=jnp.float32) * 0.1  # Conv2d(2,1,7)

    out = cbam_pallas(x, w1, w2, w_spatial, kernel_size=ksize)
    out = jax.block_until_ready(out)

    ref = cbam_reference(x, w1, w2, w_spatial)
    assert out.shape == (B, C, H, W)
    err = float(jnp.max(jnp.abs(out - ref)))
    assert jnp.allclose(out, ref, atol=1e-4, rtol=1e-4), err

    print("KERNEL_OK")
</pallas_src>

<mosaic_0001>
module attributes {stable_mosaic.version = 11 : i64} {
  func.func @_cbam_kernel(%arg0: i32, %arg1: memref<2x32x256xf32, #tpu.memory_space<vmem>>, %arg2: memref<2x32xf32, #tpu.memory_space<vmem>>, %arg3: memref<32x2xf32, #tpu.memory_space<vmem>>, %arg4: memref<98xf32, #tpu.memory_space<smem>>, %arg5: memref<2x32x256xf32, #tpu.memory_space<vmem>>, %arg6: memref<2x2x22x22xf32, #tpu.memory_space<vmem>>) attributes {dimension_semantics = [#tpu.dimension_semantics<parallel>], iteration_bounds = array<i64: 1>, scalar_prefetch = 0 : i64, scratch_operands = 1 : i64, tpu.core_type = #tpu.core_type<tc>, window_params = [{transform_indices = @transform_0, window_bounds = array<i64: 2, 32, 256>}, {pipeline_mode = #tpu.pipeline_mode<synchronous>, transform_indices = @transform_1, window_bounds = array<i64: 2, 32>}, {pipeline_mode = #tpu.pipeline_mode<synchronous>, transform_indices = @transform_2, window_bounds = array<i64: 32, 2>}, {transform_indices = @transform_3, window_bounds = array<i64: 98>}, {transform_indices = @transform_4, window_bounds = array<i64: 2, 32, 256>}]} {
    %c0 = arith.constant 0 : index
    %0 = memref.load %arg4[%c0] : memref<98xf32, #tpu.memory_space<smem>>
    %c1 = arith.constant 1 : index
    %1 = memref.load %arg4[%c1] : memref<98xf32, #tpu.memory_space<smem>>
    %c2 = arith.constant 2 : index
    %2 = memref.load %arg4[%c2] : memref<98xf32, #tpu.memory_space<smem>>
    %c3 = arith.constant 3 : index
    %3 = memref.load %arg4[%c3] : memref<98xf32, #tpu.memory_space<smem>>
    %c4 = arith.constant 4 : index
    %4 = memref.load %arg4[%c4] : memref<98xf32, #tpu.memory_space<smem>>
    %c5 = arith.constant 5 : index
    %5 = memref.load %arg4[%c5] : memref<98xf32, #tpu.memory_space<smem>>
    %c6 = arith.constant 6 : index
    %6 = memref.load %arg4[%c6] : memref<98xf32, #tpu.memory_space<smem>>
    %c7 = arith.constant 7 : index
    %7 = memref.load %arg4[%c7] : memref<98xf32, #tpu.memory_space<smem>>
    %c8 = arith.constant 8 : index
    %8 = memref.load %arg4[%c8] : memref<98xf32, #tpu.memory_space<smem>>
    %c9 = arith.constant 9 : index
    %9 = memref.load %arg4[%c9] : memref<98xf32, #tpu.memory_space<smem>>
    %c10 = arith.constant 10 : index
    %10 = memref.load %arg4[%c10] : memref<98xf32, #tpu.memory_space<smem>>
    %c11 = arith.constant 11 : index
    %11 = memref.load %arg4[%c11] : memref<98xf32, #tpu.memory_space<smem>>
    %c12 = arith.constant 12 : index
    %12 = memref.load %arg4[%c12] : memref<98xf32, #tpu.memory_space<smem>>
    %c13 = arith.constant 13 : index
    %13 = memref.load %arg4[%c13] : memref<98xf32, #tpu.memory_space<smem>>
    %c14 = arith.constant 14 : index
    %14 = memref.load %arg4[%c14] : memref<98xf32, #tpu.memory_space<smem>>
    %c15 = arith.constant 15 : index
    %15 = memref.load %arg4[%c15] : memref<98xf32, #tpu.memory_space<smem>>
    %c16 = arith.constant 16 : index
    %16 = memref.load %arg4[%c16] : memref<98xf32, #tpu.memory_space<smem>>
    %c17 = arith.constant 17 : index
    %17 = memref.load %arg4[%c17] : memref<98xf32, #tpu.memory_space<smem>>
    %c18 = arith.constant 18 : index
    %18 = memref.load %arg4[%c18] : memref<98xf32, #tpu.memory_space<smem>>
    %c19 = arith.constant 19 : index
    %19 = memref.load %arg4[%c19] : memref<98xf32, #tpu.memory_space<smem>>
    %c20 = arith.constant 20 : index
    %20 = memref.load %arg4[%c20] : memref<98xf32, #tpu.memory_space<smem>>
    %c21 = arith.constant 21 : index
    %21 = memref.load %arg4[%c21] : memref<98xf32, #tpu.memory_space<smem>>
    %c22 = arith.constant 22 : index
    %22 = memref.load %arg4[%c22] : memref<98xf32, #tpu.memory_space<smem>>
    %c23 = arith.constant 23 : index
    %23 = memref.load %arg4[%c23] : memref<98xf32, #tpu.memory_space<smem>>
    %c24 = arith.constant 24 : index
    %24 = memref.load %arg4[%c24] : memref<98xf32, #tpu.memory_space<smem>>
    %c25 = arith.constant 25 : index
    %25 = memref.load %arg4[%c25] : memref<98xf32, #tpu.memory_space<smem>>
    %c26 = arith.constant 26 : index
    %26 = memref.load %arg4[%c26] : memref<98xf32, #tpu.memory_space<smem>>
    %c27 = arith.constant 27 : index
    %27 = memref.load %arg4[%c27] : memref<98xf32, #tpu.memory_space<smem>>
    %c28 = arith.constant 28 : index
    %28 = memref.load %arg4[%c28] : memref<98xf32, #tpu.memory_space<smem>>
    %c29 = arith.constant 29 : index
    %29 = memref.load %arg4[%c29] : memref<98xf32, #tpu.memory_space<smem>>
    %c30 = arith.constant 30 : index
    %30 = memref.load %arg4[%c30] : memref<98xf32, #tpu.memory_space<smem>>
    %c31 = arith.constant 31 : index
    %31 = memref.load %arg4[%c31] : memref<98xf32, #tpu.memory_space<smem>>
    %c32 = arith.constant 32 : index
    %32 = memref.load %arg4[%c32] : memref<98xf32, #tpu.memory_space<smem>>
    %c33 = arith.constant 33 : index
    %33 = memref.load %arg4[%c33] : memref<98xf32, #tpu.memory_space<smem>>
    %c34 = arith.constant 34 : index
    %34 = memref.load %arg4[%c34] : memref<98xf32, #tpu.memory_space<smem>>
    %c35 = arith.constant 35 : index
    %35 = memref.load %arg4[%c35] : memref<98xf32, #tpu.memory_space<smem>>
    %c36 = arith.constant 36 : index
    %36 = memref.load %arg4[%c36] : memref<98xf32, #tpu.memory_space<smem>>
    %c37 = arith.constant 37 : index
    %37 = memref.load %arg4[%c37] : memref<98xf32, #tpu.memory_space<smem>>
    %c38 = arith.constant 38 : index
    %38 = memref.load %arg4[%c38] : memref<98xf32, #tpu.memory_space<smem>>
    %c39 = arith.constant 39 : index
    %39 = memref.load %arg4[%c39] : memref<98xf32, #tpu.memory_space<smem>>
    %c40 = arith.constant 40 : index
    %40 = memref.load %arg4[%c40] : memref<98xf32, #tpu.memory_space<smem>>
    %c41 = arith.constant 41 : index
    %41 = memref.load %arg4[%c41] : memref<98xf32, #tpu.memory_space<smem>>
    %c42 = arith.constant 42 : index
    %42 = memref.load %arg4[%c42] : memref<98xf32, #tpu.memory_space<smem>>
    %c43 = arith.constant 43 : index
    %43 = memref.load %arg4[%c43] : memref<98xf32, #tpu.memory_space<smem>>
    %c44 = arith.constant 44 : index
    %44 = memref.load %arg4[%c44] : memref<98xf32, #tpu.memory_space<smem>>
    %c45 = arith.constant 45 : index
    %45 = memref.load %arg4[%c45] : memref<98xf32, #tpu.memory_space<smem>>
    %c46 = arith.constant 46 : index
    %46 = memref.load %arg4[%c46] : memref<98xf32, #tpu.memory_space<smem>>
    %c47 = arith.constant 47 : index
    %47 = memref.load %arg4[%c47] : memref<98xf32, #tpu.memory_space<smem>>
    %c48 = arith.constant 48 : index
    %48 = memref.load %arg4[%c48] : memref<98xf32, #tpu.memory_space<smem>>
    %c49 = arith.constant 49 : index
    %49 = memref.load %arg4[%c49] : memref<98xf32, #tpu.memory_space<smem>>
    %c50 = arith.constant 50 : index
    %50 = memref.load %arg4[%c50] : memref<98xf32, #tpu.memory_space<smem>>
    %c51 = arith.constant 51 : index
    %51 = memref.load %arg4[%c51] : memref<98xf32, #tpu.memory_space<smem>>
    %c52 = arith.constant 52 : index
    %52 = memref.load %arg4[%c52] : memref<98xf32, #tpu.memory_space<smem>>
    %c53 = arith.constant 53 : index
    %53 = memref.load %arg4[%c53] : memref<98xf32, #tpu.memory_space<smem>>
    %c54 = arith.constant 54 : index
    %54 = memref.load %arg4[%c54] : memref<98xf32, #tpu.memory_space<smem>>
    %c55 = arith.constant 55 : index
    %55 = memref.load %arg4[%c55] : memref<98xf32, #tpu.memory_space<smem>>
    %c56 = arith.constant 56 : index
    %56 = memref.load %arg4[%c56] : memref<98xf32, #tpu.memory_space<smem>>
    %c57 = arith.constant 57 : index
    %57 = memref.load %arg4[%c57] : memref<98xf32, #tpu.memory_space<smem>>
    %c58 = arith.constant 58 : index
    %58 = memref.load %arg4[%c58] : memref<98xf32, #tpu.memory_space<smem>>
    %c59 = arith.constant 59 : index
    %59 = memref.load %arg4[%c59] : memref<98xf32, #tpu.memory_space<smem>>
    %c60 = arith.constant 60 : index
    %60 = memref.load %arg4[%c60] : memref<98xf32, #tpu.memory_space<smem>>
    %c61 = arith.constant 61 : index
    %61 = memref.load %arg4[%c61] : memref<98xf32, #tpu.memory_space<smem>>
    %c62 = arith.constant 62 : index
    %62 = memref.load %arg4[%c62] : memref<98xf32, #tpu.memory_space<smem>>
    %c63 = arith.constant 63 : index
    %63 = memref.load %arg4[%c63] : memref<98xf32, #tpu.memory_space<smem>>
    %c64 = arith.constant 64 : index
    %64 = memref.load %arg4[%c64] : memref<98xf32, #tpu.memory_space<smem>>
    %c65 = arith.constant 65 : index
    %65 = memref.load %arg4[%c65] : memref<98xf32, #tpu.memory_space<smem>>
    %c66 = arith.constant 66 : index
    %66 = memref.load %arg4[%c66] : memref<98xf32, #tpu.memory_space<smem>>
    %c67 = arith.constant 67 : index
    %67 = memref.load %arg4[%c67] : memref<98xf32, #tpu.memory_space<smem>>
    %c68 = arith.constant 68 : index
    %68 = memref.load %arg4[%c68] : memref<98xf32, #tpu.memory_space<smem>>
    %c69 = arith.constant 69 : index
    %69 = memref.load %arg4[%c69] : memref<98xf32, #tpu.memory_space<smem>>
    %c70 = arith.constant 70 : index
    %70 = memref.load %arg4[%c70] : memref<98xf32, #tpu.memory_space<smem>>
    %c71 = arith.constant 71 : index
    %71 = memref.load %arg4[%c71] : memref<98xf32, #tpu.memory_space<smem>>
    %c72 = arith.constant 72 : index
    %72 = memref.load %arg4[%c72] : memref<98xf32, #tpu.memory_space<smem>>
    %c73 = arith.constant 73 : index
    %73 = memref.load %arg4[%c73] : memref<98xf32, #tpu.memory_space<smem>>
    %c74 = arith.constant 74 : index
    %74 = memref.load %arg4[%c74] : memref<98xf32, #tpu.memory_space<smem>>
    %c75 = arith.constant 75 : index
    %75 = memref.load %arg4[%c75] : memref<98xf32, #tpu.memory_space<smem>>
    %c76 = arith.constant 76 : index
    %76 = memref.load %arg4[%c76] : memref<98xf32, #tpu.memory_space<smem>>
    %c77 = arith.constant 77 : index
    %77 = memref.load %arg4[%c77] : memref<98xf32, #tpu.memory_space<smem>>
    %c78 = arith.constant 78 : index
    %78 = memref.load %arg4[%c78] : memref<98xf32, #tpu.memory_space<smem>>
    %c79 = arith.constant 79 : index
    %79 = memref.load %arg4[%c79] : memref<98xf32, #tpu.memory_space<smem>>
    %c80 = arith.constant 80 : index
    %80 = memref.load %arg4[%c80] : memref<98xf32, #tpu.memory_space<smem>>
    %c81 = arith.constant 81 : index
    %81 = memref.load %arg4[%c81] : memref<98xf32, #tpu.memory_space<smem>>
    %c82 = arith.constant 82 : index
    %82 = memref.load %arg4[%c82] : memref<98xf32, #tpu.memory_space<smem>>
    %c83 = arith.constant 83 : index
    %83 = memref.load %arg4[%c83] : memref<98xf32, #tpu.memory_space<smem>>
    %c84 = arith.constant 84 : index
    %84 = memref.load %arg4[%c84] : memref<98xf32, #tpu.memory_space<smem>>
    %c85 = arith.constant 85 : index
    %85 = memref.load %arg4[%c85] : memref<98xf32, #tpu.memory_space<smem>>
    %c86 = arith.constant 86 : index
    %86 = memref.load %arg4[%c86] : memref<98xf32, #tpu.memory_space<smem>>
    %c87 = arith.constant 87 : index
    %87 = memref.load %arg4[%c87] : memref<98xf32, #tpu.memory_space<smem>>
    %c88 = arith.constant 88 : index
    %88 = memref.load %arg4[%c88] : memref<98xf32, #tpu.memory_space<smem>>
    %c89 = arith.constant 89 : index
    %89 = memref.load %arg4[%c89] : memref<98xf32, #tpu.memory_space<smem>>
    %c90 = arith.constant 90 : index
    %90 = memref.load %arg4[%c90] : memref<98xf32, #tpu.memory_space<smem>>
    %c91 = arith.constant 91 : index
    %91 = memref.load %arg4[%c91] : memref<98xf32, #tpu.memory_space<smem>>
    %c92 = arith.constant 92 : index
    %92 = memref.load %arg4[%c92] : memref<98xf32, #tpu.memory_space<smem>>
    %c93 = arith.constant 93 : index
    %93 = memref.load %arg4[%c93] : memref<98xf32, #tpu.memory_space<smem>>
    %c94 = arith.constant 94 : index
    %94 = memref.load %arg4[%c94] : memref<98xf32, #tpu.memory_space<smem>>
    %c95 = arith.constant 95 : index
    %95 = memref.load %arg4[%c95] : memref<98xf32, #tpu.memory_space<smem>>
    %c96 = arith.constant 96 : index
    %96 = memref.load %arg4[%c96] : memref<98xf32, #tpu.memory_space<smem>>
    %c97 = arith.constant 97 : index
    %97 = memref.load %arg4[%c97] : memref<98xf32, #tpu.memory_space<smem>>
    %c0_0 = arith.constant 0 : index
    %c0_1 = arith.constant 0 : index
    %98 = vector.load %arg2[%c0_0, %c0_1] : memref<2x32xf32, #tpu.memory_space<vmem>>, vector<2x32xf32>
    %c0_2 = arith.constant 0 : index
    %c0_3 = arith.constant 0 : index
    %99 = vector.load %arg3[%c0_2, %c0_3] : memref<32x2xf32, #tpu.memory_space<vmem>>, vector<32x2xf32>
    %c0_4 = arith.constant 0 : index
    %c0_5 = arith.constant 0 : index
    %c0_6 = arith.constant 0 : index
    %100 = vector.load %arg1[%c0_4, %c0_5, %c0_6] : memref<2x32x256xf32, #tpu.memory_space<vmem>>, vector<2x32x256xf32>
    %cst = arith.constant dense<0.000000e+00> : vector<2x32xf32>
    %101 = vector.multi_reduction <add>, %100, %cst [2] : vector<2x32x256xf32> to vector<2x32xf32>
    %cst_7 = arith.constant 2.560000e+02 : f32
    %102 = vector.broadcast %cst_7 : f32 to vector<2x32xf32>
    %103 = arith.divf %101, %102 : vector<2x32xf32>
    %104 = vector.shape_cast %103 : vector<2x32xf32> to vector<2x1x32xf32>
    %105 = vector.shape_cast %98 : vector<2x32xf32> to vector<1x2x32xf32>
    %106 = vector.broadcast %104 : vector<2x1x32xf32> to vector<2x2x32xf32>
    %107 = vector.broadcast %105 : vector<1x2x32xf32> to vector<2x2x32xf32>
    %108 = arith.mulf %106, %107 : vector<2x2x32xf32>
    %cst_8 = arith.constant dense<0.000000e+00> : vector<2x2xf32>
    %109 = vector.multi_reduction <add>, %108, %cst_8 [2] : vector<2x2x32xf32> to vector<2x2xf32>
    %cst_9 = arith.constant 0.000000e+00 : f32
    %110 = vector.broadcast %cst_9 : f32 to vector<2x2xf32>
    %111 = arith.maximumf %109, %110 : vector<2x2xf32>
    %112 = vector.shape_cast %111 : vector<2x2xf32> to vector<2x1x2xf32>
    %113 = vector.shape_cast %99 : vector<32x2xf32> to vector<1x32x2xf32>
    %114 = vector.broadcast %112 : vector<2x1x2xf32> to vector<2x32x2xf32>
    %115 = vector.broadcast %113 : vector<1x32x2xf32> to vector<2x32x2xf32>
    %116 = arith.mulf %114, %115 : vector<2x32x2xf32>
    %cst_10 = arith.constant dense<0.000000e+00> : vector<2x32xf32>
    %117 = vector.multi_reduction <add>, %116, %cst_10 [2] : vector<2x32x2xf32> to vector<2x32xf32>
    %118 = arith.negf %117 : vector<2x32xf32>
    %119 = math.exp %118 : vector<2x32xf32>
    %cst_11 = arith.constant 1.000000e+00 : f32
    %120 = vector.broadcast %cst_11 : f32 to vector<2x32xf32>
    %121 = arith.addf %120, %119 : vector<2x32xf32>
    %122 = arith.divf %120, %121 : vector<2x32xf32>
    %123 = vector.shape_cast %122 : vector<2x32xf32> to vector<2x32x1xf32>
    %124 = vector.broadcast %123 : vector<2x32x1xf32> to vector<2x32x256xf32>
    %125 = arith.mulf %100, %124 : vector<2x32x256xf32>
    %cst_12 = arith.constant dense<0.000000e+00> : vector<2x256xf32>
    %126 = vector.multi_reduction <add>, %125, %cst_12 [1] : vector<2x32x256xf32> to vector<2x256xf32>
    %cst_13 = arith.constant 3.200000e+01 : f32
    %127 = vector.broadcast %cst_13 : f32 to vector<2x256xf32>
    %128 = arith.divf %126, %127 : vector<2x256xf32>
    %cst_14 = arith.constant dense<0xFF800000> : vector<2x256xf32>
    %129 = vector.multi_reduction <maximumf>, %125, %cst_14 [1] : vector<2x32x256xf32> to vector<2x256xf32>
    %cst_15 = arith.constant 0.000000e+00 : f32
    %130 = vector.broadcast %cst_15 : f32 to vector<2x2x22x22xf32>
    %c0_16 = arith.constant 0 : index
    %c0_17 = arith.constant 0 : index
    %c0_18 = arith.constant 0 : index
    %c0_19 = arith.constant 0 : index
    %131 = vector.load %arg6[%c0_16, %c0_17, %c0_18, %c0_19] : memref<2x2x22x22xf32, #tpu.memory_space<vmem>>, vector<2x2x22x22xf32>
    tpu.vector_store %arg6[%c0_16, %c0_17, %c0_18, %c0_19], %130 {strides = array<i32>} : memref<2x2x22x22xf32, #tpu.memory_space<vmem>>, vector<2x2x22x22xf32>,
    %132 = vector.shape_cast %128 : vector<2x256xf32> to vector<2x16x16xf32>
    %c0_20 = arith.constant 0 : index
    %c0_21 = arith.constant 0 : index
    %c3_22 = arith.constant 3 : index
    %c3_23 = arith.constant 3 : index
    %133 = vector.load %arg6[%c0_20, %c0_21, %c3_22, %c3_23] : memref<2x2x22x22xf32, #tpu.memory_space<vmem>>, vector<1x2x16x16xf32>
    %134 = vector.shape_cast %133 : vector<1x2x16x16xf32> to vector<2x16x16xf32>
    %135 = vector.shape_cast %132 : vector<2x16x16xf32> to vector<1x2x16x16xf32>
    tpu.vector_store %arg6[%c0_20, %c0_21, %c3_22, %c3_23], %135 {strides = array<i32>} : memref<2x2x22x22xf32, #tpu.memory_space<vmem>>, vector<1x2x16x16xf32>,
    %136 = vector.shape_cast %129 : vector<2x256xf32> to vector<2x16x16xf32>
    %c1_24 = arith.constant 1 : index
    %c0_25 = arith.constant 0 : index
    %c3_26 = arith.constant 3 : index
    %c3_27 = arith.constant 3 : index
    %137 = vector.load %arg6[%c1_24, %c0_25, %c3_26, %c3_27] : memref<2x2x22x22xf32, #tpu.memory_space<vmem>>, vector<1x2x16x16xf32>
    %138 = vector.shape_cast %137 : vector<1x2x16x16xf32> to vector<2x16x16xf32>
    %139 = vector.shape_cast %136 : vector<2x16x16xf32> to vector<1x2x16x16xf32>
    tpu.vector_store %arg6[%c1_24, %c0_25, %c3_26, %c3_27], %139 {strides = array<i32>} : memref<2x2x22x22xf32, #tpu.memory_space<vmem>>, vector<1x2x16x16xf32>,
    %cst_28 = arith.constant 0.000000e+00 : f32
    %140 = vector.broadcast %cst_28 : f32 to vector<2x16x16xf32>
    %c0_29 = arith.constant 0 : index
    %c0_30 = arith.constant 0 : index
    %c0_31 = arith.constant 0 : index
    %c0_32 = arith.constant 0 : index
    %141 = vector.load %arg6[%c0_29, %c0_30, %c0_31, %c0_32] : memref<2x2x22x22xf32, #tpu.memory_space<vmem>>, vector<1x2x16x22xf32>
    %142 = vector.shape_cast %141 : vector<1x2x16x22xf32> to vector<2x16x22xf32>
    %143 = vector.extract_strided_slice %142 {offsets = [0, 0, 0], sizes = [2, 16, 16], strides = [1, 1, 1]} : vector<2x16x22xf32> to vector<2x16x16xf32>
    %144 = vector.broadcast %0 : f32 to vector<2x16x16xf32>
    %145 = arith.mulf %144, %143 : vector<2x16x16xf32>
    %146 = vector.extract_strided_slice %142 {offsets = [0, 0, 1], sizes = [2, 16, 16], strides = [1, 1, 1]} : vector<2x16x22xf32> to vector<2x16x16xf32>
    %147 = vector.broadcast %1 : f32 to vector<2x16x16xf32>
    %148 = arith.mulf %147, %146 : vector<2x16x16xf32>
    %149 = arith.addf %145, %148 : vector<2x16x16xf32>
    %150 = vector.extract_strided_slice %142 {offsets = [0, 0, 2], sizes = [2, 16, 16], strides = [1, 1, 1]} : vector<2x16x22xf32> to vector<2x16x16xf32>
    %151 = vector.broadcast %2 : f32 to vector<2x16x16xf32>
    %152 = arith.mulf %151, %150 : vector<2x16x16xf32>
    %153 = arith.addf %149, %152 : vector<2x16x16xf32>
    %154 = vector.extract_strided_slice %142 {offsets = [0, 0, 3], sizes = [2, 16, 16], strides = [1, 1, 1]} : vector<2x16x22xf32> to vector<2x16x16xf32>
    %155 = vector.broadcast %3 : f32 to vector<2x16x16xf32>
    %156 = arith.mulf %155, %154 : vector<2x16x16xf32>
    %157 = arith.addf %153, %156 : vector<2x16x16xf32>
    %158 = vector.extract_strided_slice %142 {offsets = [0, 0, 4], sizes = [2, 16, 16], strides = [1, 1, 1]} : vector<2x16x22xf32> to vector<2x16x16xf32>
    %159 = vector.broadcast %4 : f32 to vector<2x16x16xf32>
    %160 = arith.mulf %159, %158 : vector<2x16x16xf32>
    %161 = arith.addf %157, %160 : vector<2x16x16xf32>
    %162 = vector.extract_strided_slice %142 {offsets = [0, 0, 5], sizes = [2, 16, 16], strides = [1, 1, 1]} : vector<2x16x22xf32> to vector<2x16x16xf32>
    %163 = vector.broadcast %5 : f32 to vector<2x16x16xf32>
    %164 = arith.mulf %163, %162 : vector<2x16x16xf32>
    %165 = arith.addf %161, %164 : vector<2x16x16xf32>
    %166 = vector.extract_strided_slice %142 {offsets = [0, 0, 6], sizes = [2, 16, 16], strides = [1, 1, 1]} : vector<2x16x22xf32> to vector<2x16x16xf32>
    %167 = vector.broadcast %6 : f32 to vector<2x16x16xf32>
    %168 = arith.mulf %167, %166 : vector<2x16x16xf32>
    %169 = arith.addf %165, %168 : vector<2x16x16xf32>
    %170 = arith.addf %140, %169 : vector<2x16x16xf32>
    %c0_33 = arith.constant 0 : index
    %c0_34 = arith.constant 0 : index
    %c1_35 = arith.constant 1 : index
    %c0_36 = arith.constant 0 : index
    %171 = vector.load %arg6[%c0_33, %c0_34, %c1_35, %c0_36] : memref<2x2x22x22xf32, #tpu.memory_space<vmem>>, vector<1x2x16x22xf32>
    %172 = vector.shape_cast %171 : vector<1x2x16x22xf32> to vector<2x16x22xf32>
    %173 = vector.extract_strided_slice %172 {offsets = [0, 0, 0], sizes = [2, 16, 16], strides = [1, 1, 1]} : vector<2x16x22xf32> to vector<2x16x16xf32>
    %174 = vector.broadcast %7 : f32 to vector<2x16x16xf32>
    %175 = arith.mulf %174, %173 : vector<2x16x16xf32>
    %176 = vector.extract_strided_slice %172 {offsets = [0, 0, 1], sizes = [2, 16, 16], strides = [1, 1, 1]} : vector<2x16x22xf32> to vector<2x16x16xf32>
    %177 = vector.broadcast %8 : f32 to vector<2x16x16xf32>
    %178 = arith.mulf %177, %176 : vector<2x16x16xf32>
    %179 = arith.addf %175, %178 : vector<2x16x16xf32>
    %180 = vector.extract_strided_slice %172 {offsets = [0, 0, 2], sizes = [2, 16, 16], strides = [1, 1, 1]} : vector<2x16x22xf32> to vector<2x16x16xf32>
    %181 = vector.broadcast %9 : f32 to vector<2x16x16xf32>
    %182 = arith.mulf %181, %180 : vector<2x16x16xf32>
    %183 = arith.addf %179, %182 : vector<2x16x16xf32>
    %184 = vector.extract_strided_slice %172 {offsets = [0, 0, 3], sizes = [2, 16, 16], strides = [1, 1, 1]} : vector<2x16x22xf32> to vector<2x16x16xf32>
    %185 = vector.broadcast %10 : f32 to vector<2x16x16xf32>
    %186 = arith.mulf %185, %184 : vector<2x16x16xf32>
    %187 = arith.addf %183, %186 : vector<2x16x16xf32>
    %188 = vector.extract_strided_slice %172 {offsets = [0, 0, 4], sizes = [2, 16, 16], strides = [1, 1, 1]} : vector<2x16x22xf32> to vector<2x16x16xf32>
    %189 = vector.broadcast %11 : f32 to vector<2x16x16xf32>
    %190 = arith.mulf %189, %188 : vector<2x16x16xf32>
    %191 = arith.addf %187, %190 : vector<2x16x16xf32>
    %192 = vector.extract_strided_slice %172 {offsets = [0, 0, 5], sizes = [2, 16, 16], strides = [1, 1, 1]} : vector<2x16x22xf32> to vector<2x16x16xf32>
    %193 = vector.broadcast %12 : f32 to vector<2x16x16xf32>
    %194 = arith.mulf %193, %192 : vector<2x16x16xf32>
    %195 = arith.addf %191, %194 : vector<2x16x16xf32>
    %196 = vector.extract_strided_slice %172 {offsets = [0, 0, 6], sizes = [2, 16, 16], strides = [1, 1, 1]} : vector<2x16x22xf32> to vector<2x16x16xf32>
    %197 = vector.broadcast %13 : f32 to vector<2x16x16xf32>
    %198 = arith.mulf %197, %196 : vector<2x16x16xf32>
    %199 = arith.addf %195, %198 : vector<2x16x16xf32>
    %200 = arith.addf %170, %199 : vector<2x16x16xf32>
    %c0_37 = arith.constant 0 : index
    %c0_38 = arith.constant 0 : index
    %c2_39 = arith.constant 2 : index
    %c0_40 = arith.constant 0 : index
    %201 = vector.load %arg6[%c0_37, %c0_38, %c2_39, %c0_40] : memref<2x2x22x22xf32, #tpu.memory_space<vmem>>, vector<1x2x16x22xf32>
    %202 = vector.shape_cast %201 : vector<1x2x16x22xf32> to vector<2x16x22xf32>
    %203 = vector.extract_strided_slice %202 {offsets = [0, 0, 0], sizes = [2, 16, 16], strides = [1, 1, 1]} : vector<2x16x22xf32> to vector<2x16x16xf32>
    %204 = vector.broadcast %14 : f32 to vector<2x16x16xf32>
    %205 = arith.mulf %204, %203 : vector<2x16x16xf32>
    %206 = vector.extract_strided_slice %202 {offsets = [0, 0, 1], sizes = [2, 16, 16], strides = [1, 1, 1]} : vector<2x16x22xf32> to vector<2x16x16xf32>
    %207 = vector.broadcast %15 : f32 to vector<2x16x16xf32>
    %208 = arith.mulf %207, %206 : vector<2x16x16xf32>
    %209 = arith.addf %205, %208 : vector<2x16x16xf32>
    %210 = vector.extract_strided_slice %202 {offsets = [0, 0, 2], sizes = [2, 16, 16], strides = [1, 1, 1]} : vector<2x16x22xf32> to vector<2x16x16xf32>
    %211 = vector.broadcast %16 : f32 to vector<2x16x16xf32>
    %212 = arith.mulf %211, %210 : vector<2x16x16xf32>
    %213 = arith.addf %209, %212 : vector<2x16x16xf32>
    %214 = vector.extract_strided_slice %202 {offsets = [0, 0, 3], sizes = [2, 16, 16], strides = [1, 1, 1]} : vector<2x16x22xf32> to vector<2x16x16xf32>
    %215 = vector.broadcast %17 : f32 to vector<2x16x16xf32>
    %216 = arith.mulf %215, %214 : vector<2x16x16xf32>
    %217 = arith.addf %213, %216 : vector<2x16x16xf32>
    %218 = vector.extract_strided_slice %202 {offsets = [0, 0, 4], sizes = [2, 16, 16], strides = [1, 1, 1]} : vector<2x16x22xf32> to vector<2x16x16xf32>
    %219 = vector.broadcast %18 : f32 to vector<2x16x16xf32>
    %220 = arith.mulf %219, %218 : vector<2x16x16xf32>
    %221 = arith.addf %217, %220 : vector<2x16x16xf32>
    %222 = vector.extract_strided_slice %202 {offsets = [0, 0, 5], sizes = [2, 16, 16], strides = [1, 1, 1]} : vector<2x16x22xf32> to vector<2x16x16xf32>
    %223 = vector.broadcast %19 : f32 to vector<2x16x16xf32>
    %224 = arith.mulf %223, %222 : vector<2x16x16xf32>
    %225 = arith.addf %221, %224 : vector<2x16x16xf32>
    %226 = vector.extract_strided_slice %202 {offsets = [0, 0, 6], sizes = [2, 16, 16], strides = [1, 1, 1]} : vector<2x16x22xf32> to vector<2x16x16xf32>
    %227 = vector.broadcast %20 : f32 to vector<2x16x16xf32>
    %228 = arith.mulf %227, %226 : vector<2x16x16xf32>
    %229 = arith.addf %225, %228 : vector<2x16x16xf32>
    %230 = arith.addf %200, %229 : vector<2x16x16xf32>
    %c0_41 = arith.constant 0 : index
    %c0_42 = arith.constant 0 : index
    %c3_43 = arith.constant 3 : index
    %c0_44 = arith.constant 0 : index
    %231 = vector.load %arg6[%c0_41, %c0_42, %c3_43, %c0_44] : memref<2x2x22x22xf32, #tpu.memory_space<vmem>>, vector<1x2x16x22xf32>
    %232 = vector.shape_cast %231 : vector<1x2x16x22xf32> to vector<2x16x22xf32>
    %233 = vector.extract_strided_slice %232 {offsets = [0, 0, 0], sizes = [2, 16, 16], strides = [1, 1, 1]} : vector<2x16x22xf32> to vector<2x16x16xf32>
    %234 = vector.broadcast %21 : f32 to vector<2x16x16xf32>
    %235 = arith.mulf %234, %233 : vector<2x16x16xf32>
    %236 = vector.extract_strided_slice %232 {offsets = [0, 0, 1], sizes = [2, 16, 16], strides = [1, 1, 1]} : vector<2x16x22xf32> to vector<2x16x16xf32>
    %237 = vector.broadcast %22 : f32 to vector<2x16x16xf32>
    %238 = arith.mulf %237, %236 : vector<2x16x16xf32>
    %239 = arith.addf %235, %238 : vector<2x16x16xf32>
    %240 = vector.extract_strided_slice %232 {offsets = [0, 0, 2], sizes = [2, 16, 16], strides = [1, 1, 1]} : vector<2x16x22xf32> to vector<2x16x16xf32>
    %241 = vector.broadcast %23 : f32 to vector<2x16x16xf32>
    %242 = arith.mulf %241, %240 : vector<2x16x16xf32>
    %243 = arith.addf %239, %242 : vector<2x16x16xf32>
    %244 = vector.extract_strided_slice %232 {offsets = [0, 0, 3], sizes = [2, 16, 16], strides = [1, 1, 1]} : vector<2x16x22xf32> to vector<2x16x16xf32>
    %245 = vector.broadcast %24 : f32 to vector<2x16x16xf32>
    %246 = arith.mulf %245, %244 : vector<2x16x16xf32>
    %247 = arith.addf %243, %246 : vector<2x16x16xf32>
    %248 = vector.extract_strided_slice %232 {offsets = [0, 0, 4], sizes = [2, 16, 16], strides = [1, 1, 1]} : vector<2x16x22xf32> to vector<2x16x16xf32>
    %249 = vector.broadcast %25 : f32 to vector<2x16x16xf32>
    %250 = arith.mulf %249, %248 : vector<2x16x16xf32>
    %251 = arith.addf %247, %250 : vector<2x16x16xf32>
    %252 = vector.extract_strided_slice %232 {offsets = [0, 0, 5], sizes = [2, 16, 16], strides = [1, 1, 1]} : vector<2x16x22xf32> to vector<2x16x16xf32>
    %253 = vector.broadcast %26 : f32 to vector<2x16x16xf32>
    %254 = arith.mulf %253, %252 : vector<2x16x16xf32>
    %255 = arith.addf %251, %254 : vector<2x16x16xf32>
    %256 = vector.extract_strided_slice %232 {offsets = [0, 0, 6], sizes = [2, 16, 16], strides = [1, 1, 1]} : vector<2x16x22xf32> to vector<2x16x16xf32>
    %257 = vector.broadcast %27 : f32 to vector<2x16x16xf32>
    %258 = arith.mulf %257, %256 : vector<2x16x16xf32>
    %259 = arith.addf %255, %258 : vector<2x16x16xf32>
    %260 = arith.addf %230, %259 : vector<2x16x16xf32>
    %c0_45 = arith.constant 0 : index
    %c0_46 = arith.constant 0 : index
    %c4_47 = arith.constant 4 : index
    %c0_48 = arith.constant 0 : index
    %261 = vector.load %arg6[%c0_45, %c0_46, %c4_47, %c0_48] : memref<2x2x22x22xf32, #tpu.memory_space<vmem>>, vector<1x2x16x22xf32>
    %262 = vector.shape_cast %261 : vector<1x2x16x22xf32> to vector<2x16x22xf32>
    %263 = vector.extract_strided_slice %262 {offsets = [0, 0, 0], sizes = [2, 16, 16], strides = [1, 1, 1]} : vector<2x16x22xf32> to vector<2x16x16xf32>
    %264 = vector.broadcast %28 : f32 to vector<2x16x16xf32>
    %265 = arith.mulf %264, %263 : vector<2x16x16xf32>
    %266 = vector.extract_strided_slice %262 {offsets = [0, 0, 1], sizes = [2, 16, 16], strides = [1, 1, 1]} : vector<2x16x22xf32> to vector<2x16x16xf32>
    %267 = vector.broadcast %29 : f32 to vector<2x16x16xf32>
    %268 = arith.mulf %267, %266 : vector<2x16x16xf32>
    %269 = arith.addf %265, %268 : vector<2x16x16xf32>
    %270 = vector.extract_strided_slice %262 {offsets = [0, 0, 2], sizes = [2, 16, 16], strides = [1, 1, 1]} : vector<2x16x22xf32> to vector<2x16x16xf32>
    %271 = vector.broadcast %30 : f32 to vector<2x16x16xf32>
    %272 = arith.mulf %271, %270 : vector<2x16x16xf32>
    %273 = arith.addf %269, %272 : vector<2x16x16xf32>
    %274 = vector.extract_strided_slice %262 {offsets = [0, 0, 3], sizes = [2, 16, 16], strides = [1, 1, 1]} : vector<2x16x22xf32> to vector<2x16x16xf32>
    %275 = vector.broadcast %31 : f32 to vector<2x16x16xf32>
    %276 = arith.mulf %275, %274 : vector<2x16x16xf32>
    %277 = arith.addf %273, %276 : vector<2x16x16xf32>
    %278 = vector.extract_strided_slice %262 {offsets = [0, 0, 4], sizes = [2, 16, 16], strides = [1, 1, 1]} : vector<2x16x22xf32> to vector<2x16x16xf32>
    %279 = vector.broadcast %32 : f32 to vector<2x16x16xf32>
    %280 = arith.mulf %279, %278 : vector<2x16x16xf32>
    %281 = arith.addf %277, %280 : vector<2x16x16xf32>
    %282 = vector.extract_strided_slice %262 {offsets = [0, 0, 5], sizes = [2, 16, 16], strides = [1, 1, 1]} : vector<2x16x22xf32> to vector<2x16x16xf32>
    %283 = vector.broadcast %33 : f32 to vector<2x16x16xf32>
    %284 = arith.mulf %283, %282 : vector<2x16x16xf32>
    %285 = arith.addf %281, %284 : vector<2x16x16xf32>
    %286 = vector.extract_strided_slice %262 {offsets = [0, 0, 6], sizes = [2, 16, 16], strides = [1, 1, 1]} : vector<2x16x22xf32> to vector<2x16x16xf32>
    %287 = vector.broadcast %34 : f32 to vector<2x16x16xf32>
    %288 = arith.mulf %287, %286 : vector<2x16x16xf32>
    %289 = arith.addf %285, %288 : vector<2x16x16xf32>
    %290 = arith.addf %260, %289 : vector<2x16x16xf32>
    %c0_49 = arith.constant 0 : index
    %c0_50 = arith.constant 0 : index
    %c5_51 = arith.constant 5 : index
    %c0_52 = arith.constant 0 : index
    %291 = vector.load %arg6[%c0_49, %c0_50, %c5_51, %c0_52] : memref<2x2x22x22xf32, #tpu.memory_space<vmem>>, vector<1x2x16x22xf32>
    %292 = vector.shape_cast %291 : vector<1x2x16x22xf32> to vector<2x16x22xf32>
    %293 = vector.extract_strided_slice %292 {offsets = [0, 0, 0], sizes = [2, 16, 16], strides = [1, 1, 1]} : vector<2x16x22xf32> to vector<2x16x16xf32>
    %294 = vector.broadcast %35 : f32 to vector<2x16x16xf32>
    %295 = arith.mulf %294, %293 : vector<2x16x16xf32>
    %296 = vector.extract_strided_slice %292 {offsets = [0, 0, 1], sizes = [2, 16, 16], strides = [1, 1, 1]} : vector<2x16x22xf32> to vector<2x16x16xf32>
    %297 = vector.broadcast %36 : f32 to vector<2x16x16xf32>
    %298 = arith.mulf %297, %296 : vector<2x16x16xf32>
    %299 = arith.addf %295, %298 : vector<2x16x16xf32>
    %300 = vector.extract_strided_slice %292 {offsets = [0, 0, 2], sizes = [2, 16, 16], strides = [1, 1, 1]} : vector<2x16x22xf32> to vector<2x16x16xf32>
    %301 = vector.broadcast %37 : f32 to vector<2x16x16xf32>
    %302 = arith.mulf %301, %300 : vector<2x16x16xf32>
    %303 = arith.addf %299, %302 : vector<2x16x16xf32>
    %304 = vector.extract_strided_slice %292 {offsets = [0, 0, 3], sizes = [2, 16, 16], strides = [1, 1, 1]} : vector<2x16x22xf32> to vector<2x16x16xf32>
    %305 = vector.broadcast %38 : f32 to vector<2x16x16xf32>
    %306 = arith.mulf %305, %304 : vector<2x16x16xf32>
    %307 = arith.addf %303, %306 : vector<2x16x16xf32>
    %308 = vector.extract_strided_slice %292 {offsets = [0, 0, 4], sizes = [2, 16, 16], strides = [1, 1, 1]} : vector<2x16x22xf32> to vector<2x16x16xf32>
    %309 = vector.broadcast %39 : f32 to vector<2x16x16xf32>
    %310 = arith.mulf %309, %308 : vector<2x16x16xf32>
    %311 = arith.addf %307, %310 : vector<2x16x16xf32>
    %312 = vector.extract_strided_slice %292 {offsets = [0, 0, 5], sizes = [2, 16, 16], strides = [1, 1, 1]} : vector<2x16x22xf32> to vector<2x16x16xf32>
    %313 = vector.broadcast %40 : f32 to vector<2x16x16xf32>
    %314 = arith.mulf %313, %312 : vector<2x16x16xf32>
    %315 = arith.addf %311, %314 : vector<2x16x16xf32>
    %316 = vector.extract_strided_slice %292 {offsets = [0, 0, 6], sizes = [2, 16, 16], strides = [1, 1, 1]} : vector<2x16x22xf32> to vector<2x16x16xf32>
    %317 = vector.broadcast %41 : f32 to vector<2x16x16xf32>
    %318 = arith.mulf %317, %316 : vector<2x16x16xf32>
    %319 = arith.addf %315, %318 : vector<2x16x16xf32>
    %320 = arith.addf %290, %319 : vector<2x16x16xf32>
    %c0_53 = arith.constant 0 : index
    %c0_54 = arith.constant 0 : index
    %c6_55 = arith.constant 6 : index
    %c0_56 = arith.constant 0 : index
    %321 = vector.load %arg6[%c0_53, %c0_54, %c6_55, %c0_56] : memref<2x2x22x22xf32, #tpu.memory_space<vmem>>, vector<1x2x16x22xf32>
    %322 = vector.shape_cast %321 : vector<1x2x16x22xf32> to vector<2x16x22xf32>
    %323 = vector.extract_strided_slice %322 {offsets = [0, 0, 0], sizes = [2, 16, 16], strides = [1, 1, 1]} : vector<2x16x22xf32> to vector<2x16x16xf32>
    %324 = vector.broadcast %42 : f32 to vector<2x16x16xf32>
    %325 = arith.mulf %324, %323 : vector<2x16x16xf32>
    %326 = vector.extract_strided_slice %322 {offsets = [0, 0, 1], sizes = [2, 16, 16], strides = [1, 1, 1]} : vector<2x16x22xf32> to vector<2x16x16xf32>
    %327 = vector.broadcast %43 : f32 to vector<2x16x16xf32>
    %328 = arith.mulf %327, %326 : vector<2x16x16xf32>
    %329 = arith.addf %325, %328 : vector<2x16x16xf32>
    %330 = vector.extract_strided_slice %322 {offsets = [0, 0, 2], sizes = [2, 16, 16], strides = [1, 1, 1]} : vector<2x16x22xf32> to vector<2x16x16xf32>
    %331 = vector.broadcast %44 : f32 to vector<2x16x16xf32>
    %332 = arith.mulf %331, %330 : vector<2x16x16xf32>
    %333 = arith.addf %329, %332 : vector<2x16x16xf32>
    %334 = vector.extract_strided_slice %322 {offsets = [0, 0, 3], sizes = [2, 16, 16], strides = [1, 1, 1]} : vector<2x16x22xf32> to vector<2x16x16xf32>
    %335 = vector.broadcast %45 : f32 to vector<2x16x16xf32>
    %336 = arith.mulf %335, %334 : vector<2x16x16xf32>
    %337 = arith.addf %333, %336 : vector<2x16x16xf32>
    %338 = vector.extract_strided_slice %322 {offsets = [0, 0, 4], sizes = [2, 16, 16], strides = [1, 1, 1]} : vector<2x16x22xf32> to vector<2x16x16xf32>
    %339 = vector.broadcast %46 : f32 to vector<2x16x16xf32>
    %340 = arith.mulf %339, %338 : vector<2x16x16xf32>
    %341 = arith.addf %337, %340 : vector<2x16x16xf32>
    %342 = vector.extract_strided_slice %322 {offsets = [0, 0, 5], sizes = [2, 16, 16], strides = [1, 1, 1]} : vector<2x16x22xf32> to vector<2x16x16xf32>
    %343 = vector.broadcast %47 : f32 to vector<2x16x16xf32>
    %344 = arith.mulf %343, %342 : vector<2x16x16xf32>
    %345 = arith.addf %341, %344 : vector<2x16x16xf32>
    %346 = vector.extract_strided_slice %322 {offsets = [0, 0, 6], sizes = [2, 16, 16], strides = [1, 1, 1]} : vector<2x16x22xf32> to vector<2x16x16xf32>
    %347 = vector.broadcast %48 : f32 to vector<2x16x16xf32>
    %348 = arith.mulf %347, %346 : vector<2x16x16xf32>
    %349 = arith.addf %345, %348 : vector<2x16x16xf32>
    %350 = arith.addf %320, %349 : vector<2x16x16xf32>
    %c1_57 = arith.constant 1 : index
    %c0_58 = arith.constant 0 : index
    %c0_59 = arith.constant 0 : index
    %c0_60 = arith.constant 0 : index
    %351 = vector.load %arg6[%c1_57, %c0_58, %c0_59, %c0_60] : memref<2x2x22x22xf32, #tpu.memory_space<vmem>>, vector<1x2x16x22xf32>
    %352 = vector.shape_cast %351 : vector<1x2x16x22xf32> to vector<2x16x22xf32>
    %353 = vector.extract_strided_slice %352 {offsets = [0, 0, 0], sizes = [2, 16, 16], strides = [1, 1, 1]} : vector<2x16x22xf32> to vector<2x16x16xf32>
    %354 = vector.broadcast %49 : f32 to vector<2x16x16xf32>
    %355 = arith.mulf %354, %353 : vector<2x16x16xf32>
    %356 = vector.extract_strided_slice %352 {offsets = [0, 0, 1], sizes = [2, 16, 16], strides = [1, 1, 1]} : vector<2x16x22xf32> to vector<2x16x16xf32>
    %357 = vector.broadcast %50 : f32 to vector<2x16x16xf32>
    %358 = arith.mulf %357, %356 : vector<2x16x16xf32>
    %359 = arith.addf %355, %358 : vector<2x16x16xf32>
    %360 = vector.extract_strided_slice %352 {offsets = [0, 0, 2], sizes = [2, 16, 16], strides = [1, 1, 1]} : vector<2x16x22xf32> to vector<2x16x16xf32>
    %361 = vector.broadcast %51 : f32 to vector<2x16x16xf32>
    %362 = arith.mulf %361, %360 : vector<2x16x16xf32>
    %363 = arith.addf %359, %362 : vector<2x16x16xf32>
    %364 = vector.extract_strided_slice %352 {offsets = [0, 0, 3], sizes = [2, 16, 16], strides = [1, 1, 1]} : vector<2x16x22xf32> to vector<2x16x16xf32>
    %365 = vector.broadcast %52 : f32 to vector<2x16x16xf32>
    %366 = arith.mulf %365, %364 : vector<2x16x16xf32>
    %367 = arith.addf %363, %366 : vector<2x16x16xf32>
    %368 = vector.extract_strided_slice %352 {offsets = [0, 0, 4], sizes = [2, 16, 16], strides = [1, 1, 1]} : vector<2x16x22xf32> to vector<2x16x16xf32>
    %369 = vector.broadcast %53 : f32 to vector<2x16x16xf32>
    %370 = arith.mulf %369, %368 : vector<2x16x16xf32>
    %371 = arith.addf %367, %370 : vector<2x16x16xf32>
    %372 = vector.extract_strided_slice %352 {offsets = [0, 0, 5], sizes = [2, 16, 16], strides = [1, 1, 1]} : vector<2x16x22xf32> to vector<2x16x16xf32>
    %373 = vector.broadcast %54 : f32 to vector<2x16x16xf32>
    %374 = arith.mulf %373, %372 : vector<2x16x16xf32>
    %375 = arith.addf %371, %374 : vector<2x16x16xf32>
    %376 = vector.extract_strided_slice %352 {offsets = [0, 0, 6], sizes = [2, 16, 16], strides = [1, 1, 1]} : vector<2x16x22xf32> to vector<2x16x16xf32>
    %377 = vector.broadcast %55 : f32 to vector<2x16x16xf32>
    %378 = arith.mulf %377, %376 : vector<2x16x16xf32>
    %379 = arith.addf %375, %378 : vector<2x16x16xf32>
    %380 = arith.addf %350, %379 : vector<2x16x16xf32>
    %c1_61 = arith.constant 1 : index
    %c0_62 = arith.constant 0 : index
    %c1_63 = arith.constant 1 : index
    %c0_64 = arith.constant 0 : index
    %381 = vector.load %arg6[%c1_61, %c0_62, %c1_63, %c0_64] : memref<2x2x22x22xf32, #tpu.memory_space<vmem>>, vector<1x2x16x22xf32>
    %382 = vector.shape_cast %381 : vector<1x2x16x22xf32> to vector<2x16x22xf32>
    %383 = vector.extract_strided_slice %382 {offsets = [0, 0, 0], sizes = [2, 16, 16], strides = [1, 1, 1]} : vector<2x16x22xf32> to vector<2x16x16xf32>
    %384 = vector.broadcast %56 : f32 to vector<2x16x16xf32>
    %385 = arith.mulf %384, %383 : vector<2x16x16xf32>
    %386 = vector.extract_strided_slice %382 {offsets = [0, 0, 1], sizes = [2, 16, 16], strides = [1, 1, 1]} : vector<2x16x22xf32> to vector<2x16x16xf32>
    %387 = vector.broadcast %57 : f32 to vector<2x16x16xf32>
    %388 = arith.mulf %387, %386 : vector<2x16x16xf32>
    %389 = arith.addf %385, %388 : vector<2x16x16xf32>
    %390 = vector.extract_strided_slice %382 {offsets = [0, 0, 2], sizes = [2, 16, 16], strides = [1, 1, 1]} : vector<2x16x22xf32> to vector<2x16x16xf32>
    %391 = vector.broadcast %58 : f32 to vector<2x16x16xf32>
    %392 = arith.mulf %391, %390 : vector<2x16x16xf32>
    %393 = arith.addf %389, %392 : vector<2x16x16xf32>
    %394 = vector.extract_strided_slice %382 {offsets = [0, 0, 3], sizes = [2, 16, 16], strides = [1, 1, 1]} : vector<2x16x22xf32> to vector<2x16x16xf32>
    %395 = vector.broadcast %59 : f32 to vector<2x16x16xf32>
    %396 = arith.mulf %395, %394 : vector<2x16x16xf32>
    %397 = arith.addf %393, %396 : vector<2x16x16xf32>
    %398 = vector.extract_strided_slice %382 {offsets = [0, 0, 4], sizes = [2, 16, 16], strides = [1, 1, 1]} : vector<2x16x22xf32> to vector<2x16x16xf32>
    %399 = vector.broadcast %60 : f32 to vector<2x16x16xf32>
    %400 = arith.mulf %399, %398 : vector<2x16x16xf32>
    %401 = arith.addf %397, %400 : vector<2x16x16xf32>
    %402 = vector.extract_strided_slice %382 {offsets = [0, 0, 5], sizes = [2, 16, 16], strides = [1, 1, 1]} : vector<2x16x22xf32> to vector<2x16x16xf32>
    %403 = vector.broadcast %61 : f32 to vector<2x16x16xf32>
    %404 = arith.mulf %403, %402 : vector<2x16x16xf32>
    %405 = arith.addf %401, %404 : vector<2x16x16xf32>
    %406 = vector.extract_strided_slice %382 {offsets = [0, 0, 6], sizes = [2, 16, 16], strides = [1, 1, 1]} : vector<2x16x22xf32> to vector<2x16x16xf32>
    %407 = vector.broadcast %62 : f32 to vector<2x16x16xf32>
    %408 = arith.mulf %407, %406 : vector<2x16x16xf32>
    %409 = arith.addf %405, %408 : vector<2x16x16xf32>
    %410 = arith.addf %380, %409 : vector<2x16x16xf32>
    %c1_65 = arith.constant 1 : index
    %c0_66 = arith.constant 0 : index
    %c2_67 = arith.constant 2 : index
    %c0_68 = arith.constant 0 : index
    %411 = vector.load %arg6[%c1_65, %c0_66, %c2_67, %c0_68] : memref<2x2x22x22xf32, #tpu.memory_space<vmem>>, vector<1x2x16x22xf32>
    %412 = vector.shape_cast %411 : vector<1x2x16x22xf32> to vector<2x16x22xf32>
    %413 = vector.extract_strided_slice %412 {offsets = [0, 0, 0], sizes = [2, 16, 16], strides = [1, 1, 1]} : vector<2x16x22xf32> to vector<2x16x16xf32>
    %414 = vector.broadcast %63 : f32 to vector<2x16x16xf32>
    %415 = arith.mulf %414, %413 : vector<2x16x16xf32>
    %416 = vector.extract_strided_slice %412 {offsets = [0, 0, 1], sizes = [2, 16, 16], strides = [1, 1, 1]} : vector<2x16x22xf32> to vector<2x16x16xf32>
    %417 = vector.broadcast %64 : f32 to vector<2x16x16xf32>
    %418 = arith.mulf %417, %416 : vector<2x16x16xf32>
    %419 = arith.addf %415, %418 : vector<2x16x16xf32>
    %420 = vector.extract_strided_slice %412 {offsets = [0, 0, 2], sizes = [2, 16, 16], strides = [1, 1, 1]} : vector<2x16x22xf32> to vector<2x16x16xf32>
    %421 = vector.broadcast %65 : f32 to vector<2x16x16xf32>
    %422 = arith.mulf %421, %420 : vector<2x16x16xf32>
    %423 = arith.addf %419, %422 : vector<2x16x16xf32>
    %424 = vector.extract_strided_slice %412 {offsets = [0, 0, 3], sizes = [2, 16, 16], strides = [1, 1, 1]} : vector<2x16x22xf32> to vector<2x16x16xf32>
    %425 = vector.broadcast %66 : f32 to vector<2x16x16xf32>
    %426 = arith.mulf %425, %424 : vector<2x16x16xf32>
    %427 = arith.addf %423, %426 : vector<2x16x16xf32>
    %428 = vector.extract_strided_slice %412 {offsets = [0, 0, 4], sizes = [2, 16, 16], strides = [1, 1, 1]} : vector<2x16x22xf32> to vector<2x16x16xf32>
    %429 = vector.broadcast %67 : f32 to vector<2x16x16xf32>
    %430 = arith.mulf %429, %428 : vector<2x16x16xf32>
    %431 = arith.addf %427, %430 : vector<2x16x16xf32>
    %432 = vector.extract_strided_slice %412 {offsets = [0, 0, 5], sizes = [2, 16, 16], strides = [1, 1, 1]} : vector<2x16x22xf32> to vector<2x16x16xf32>
    %433 = vector.broadcast %68 : f32 to vector<2x16x16xf32>
    %434 = arith.mulf %433, %432 : vector<2x16x16xf32>
    %435 = arith.addf %431, %434 : vector<2x16x16xf32>
    %436 = vector.extract_strided_slice %412 {offsets = [0, 0, 6], sizes = [2, 16, 16], strides = [1, 1, 1]} : vector<2x16x22xf32> to vector<2x16x16xf32>
    %437 = vector.broadcast %69 : f32 to vector<2x16x16xf32>
    %438 = arith.mulf %437, %436 : vector<2x16x16xf32>
    %439 = arith.addf %435, %438 : vector<2x16x16xf32>
    %440 = arith.addf %410, %439 : vector<2x16x16xf32>
    %c1_69 = arith.constant 1 : index
    %c0_70 = arith.constant 0 : index
    %c3_71 = arith.constant 3 : index
    %c0_72 = arith.constant 0 : index
    %441 = vector.load %arg6[%c1_69, %c0_70, %c3_71, %c0_72] : memref<2x2x22x22xf32, #tpu.memory_space<vmem>>, vector<1x2x16x22xf32>
    %442 = vector.shape_cast %441 : vector<1x2x16x22xf32> to vector<2x16x22xf32>
    %443 = vector.extract_strided_slice %442 {offsets = [0, 0, 0], sizes = [2, 16, 16], strides = [1, 1, 1]} : vector<2x16x22xf32> to vector<2x16x16xf32>
    %444 = vector.broadcast %70 : f32 to vector<2x16x16xf32>
    %445 = arith.mulf %444, %443 : vector<2x16x16xf32>
    %446 = vector.extract_strided_slice %442 {offsets = [0, 0, 1], sizes = [2, 16, 16], strides = [1, 1, 1]} : vector<2x16x22xf32> to vector<2x16x16xf32>
    %447 = vector.broadcast %71 : f32 to vector<2x16x16xf32>
    %448 = arith.mulf %447, %446 : vector<2x16x16xf32>
    %449 = arith.addf %445, %448 : vector<2x16x16xf32>
    %450 = vector.extract_strided_slice %442 {offsets = [0, 0, 2], sizes = [2, 16, 16], strides = [1, 1, 1]} : vector<2x16x22xf32> to vector<2x16x16xf32>
    %451 = vector.broadcast %72 : f32 to vector<2x16x16xf32>
    %452 = arith.mulf %451, %450 : vector<2x16x16xf32>
    %453 = arith.addf %449, %452 : vector<2x16x16xf32>
    %454 = vector.extract_strided_slice %442 {offsets = [0, 0, 3], sizes = [2, 16, 16], strides = [1, 1, 1]} : vector<2x16x22xf32> to vector<2x16x16xf32>
    %455 = vector.broadcast %73 : f32 to vector<2x16x16xf32>
    %456 = arith.mulf %455, %454 : vector<2x16x16xf32>
    %457 = arith.addf %453, %456 : vector<2x16x16xf32>
    %458 = vector.extract_strided_slice %442 {offsets = [0, 0, 4], sizes = [2, 16, 16], strides = [1, 1, 1]} : vector<2x16x22xf32> to vector<2x16x16xf32>
    %459 = vector.broadcast %74 : f32 to vector<2x16x16xf32>
    %460 = arith.mulf %459, %458 : vector<2x16x16xf32>
    %461 = arith.addf %457, %460 : vector<2x16x16xf32>
    %462 = vector.extract_strided_slice %442 {offsets = [0, 0, 5], sizes = [2, 16, 16], strides = [1, 1, 1]} : vector<2x16x22xf32> to vector<2x16x16xf32>
    %463 = vector.broadcast %75 : f32 to vector<2x16x16xf32>
    %464 = arith.mulf %463, %462 : vector<2x16x16xf32>
    %465 = arith.addf %461, %464 : vector<2x16x16xf32>
    %466 = vector.extract_strided_slice %442 {offsets = [0, 0, 6], sizes = [2, 16, 16], strides = [1, 1, 1]} : vector<2x16x22xf32> to vector<2x16x16xf32>
    %467 = vector.broadcast %76 : f32 to vector<2x16x16xf32>
    %468 = arith.mulf %467, %466 : vector<2x16x16xf32>
    %469 = arith.addf %465, %468 : vector<2x16x16xf32>
    %470 = arith.addf %440, %469 : vector<2x16x16xf32>
    %c1_73 = arith.constant 1 : index
    %c0_74 = arith.constant 0 : index
    %c4_75 = arith.constant 4 : index
    %c0_76 = arith.constant 0 : index
    %471 = vector.load %arg6[%c1_73, %c0_74, %c4_75, %c0_76] : memref<2x2x22x22xf32, #tpu.memory_space<vmem>>, vector<1x2x16x22xf32>
    %472 = vector.shape_cast %471 : vector<1x2x16x22xf32> to vector<2x16x22xf32>
    %473 = vector.extract_strided_slice %472 {offsets = [0, 0, 0], sizes = [2, 16, 16], strides = [1, 1, 1]} : vector<2x16x22xf32> to vector<2x16x16xf32>
    %474 = vector.broadcast %77 : f32 to vector<2x16x16xf32>
    %475 = arith.mulf %474, %473 : vector<2x16x16xf32>
    %476 = vector.extract_strided_slice %472 {offsets = [0, 0, 1], sizes = [2, 16, 16], strides = [1, 1, 1]} : vector<2x16x22xf32> to vector<2x16x16xf32>
    %477 = vector.broadcast %78 : f32 to vector<2x16x16xf32>
    %478 = arith.mulf %477, %476 : vector<2x16x16xf32>
    %479 = arith.addf %475, %478 : vector<2x16x16xf32>
    %480 = vector.extract_strided_slice %472 {offsets = [0, 0, 2], sizes = [2, 16, 16], strides = [1, 1, 1]} : vector<2x16x22xf32> to vector<2x16x16xf32>
    %481 = vector.broadcast %79 : f32 to vector<2x16x16xf32>
    %482 = arith.mulf %481, %480 : vector<2x16x16xf32>
    %483 = arith.addf %479, %482 : vector<2x16x16xf32>
    %484 = vector.extract_strided_slice %472 {offsets = [0, 0, 3], sizes = [2, 16, 16], strides = [1, 1, 1]} : vector<2x16x22xf32> to vector<2x16x16xf32>
    %485 = vector.broadcast %80 : f32 to vector<2x16x16xf32>
    %486 = arith.mulf %485, %484 : vector<2x16x16xf32>
    %487 = arith.addf %483, %486 : vector<2x16x16xf32>
    %488 = vector.extract_strided_slice %472 {offsets = [0, 0, 4], sizes = [2, 16, 16], strides = [1, 1, 1]} : vector<2x16x22xf32> to vector<2x16x16xf32>
    %489 = vector.broadcast %81 : f32 to vector<2x16x16xf32>
    %490 = arith.mulf %489, %488 : vector<2x16x16xf32>
    %491 = arith.addf %487, %490 : vector<2x16x16xf32>
    %492 = vector.extract_strided_slice %472 {offsets = [0, 0, 5], sizes = [2, 16, 16], strides = [1, 1, 1]} : vector<2x16x22xf32> to vector<2x16x16xf32>
    %493 = vector.broadcast %82 : f32 to vector<2x16x16xf32>
    %494 = arith.mulf %493, %492 : vector<2x16x16xf32>
    %495 = arith.addf %491, %494 : vector<2x16x16xf32>
    %496 = vector.extract_strided_slice %472 {offsets = [0, 0, 6], sizes = [2, 16, 16], strides = [1, 1, 1]} : vector<2x16x22xf32> to vector<2x16x16xf32>
    %497 = vector.broadcast %83 : f32 to vector<2x16x16xf32>
    %498 = arith.mulf %497, %496 : vector<2x16x16xf32>
    %499 = arith.addf %495, %498 : vector<2x16x16xf32>
    %500 = arith.addf %470, %499 : vector<2x16x16xf32>
    %c1_77 = arith.constant 1 : index
    %c0_78 = arith.constant 0 : index
    %c5_79 = arith.constant 5 : index
    %c0_80 = arith.constant 0 : index
    %501 = vector.load %arg6[%c1_77, %c0_78, %c5_79, %c0_80] : memref<2x2x22x22xf32, #tpu.memory_space<vmem>>, vector<1x2x16x22xf32>
    %502 = vector.shape_cast %501 : vector<1x2x16x22xf32> to vector<2x16x22xf32>
    %503 = vector.extract_strided_slice %502 {offsets = [0, 0, 0], sizes = [2, 16, 16], strides = [1, 1, 1]} : vector<2x16x22xf32> to vector<2x16x16xf32>
    %504 = vector.broadcast %84 : f32 to vector<2x16x16xf32>
    %505 = arith.mulf %504, %503 : vector<2x16x16xf32>
    %506 = vector.extract_strided_slice %502 {offsets = [0, 0, 1], sizes = [2, 16, 16], strides = [1, 1, 1]} : vector<2x16x22xf32> to vector<2x16x16xf32>
    %507 = vector.broadcast %85 : f32 to vector<2x16x16xf32>
    %508 = arith.mulf %507, %506 : vector<2x16x16xf32>
    %509 = arith.addf %505, %508 : vector<2x16x16xf32>
    %510 = vector.extract_strided_slice %502 {offsets = [0, 0, 2], sizes = [2, 16, 16], strides = [1, 1, 1]} : vector<2x16x22xf32> to vector<2x16x16xf32>
    %511 = vector.broadcast %86 : f32 to vector<2x16x16xf32>
    %512 = arith.mulf %511, %510 : vector<2x16x16xf32>
    %513 = arith.addf %509, %512 : vector<2x16x16xf32>
    %514 = vector.extract_strided_slice %502 {offsets = [0, 0, 3], sizes = [2, 16, 16], strides = [1, 1, 1]} : vector<2x16x22xf32> to vector<2x16x16xf32>
    %515 = vector.broadcast %87 : f32 to vector<2x16x16xf32>
    %516 = arith.mulf %515, %514 : vector<2x16x16xf32>
    %517 = arith.addf %513, %516 : vector<2x16x16xf32>
    %518 = vector.extract_strided_slice %502 {offsets = [0, 0, 4], sizes = [2, 16, 16], strides = [1, 1, 1]} : vector<2x16x22xf32> to vector<2x16x16xf32>
    %519 = vector.broadcast %88 : f32 to vector<2x16x16xf32>
    %520 = arith.mulf %519, %518 : vector<2x16x16xf32>
    %521 = arith.addf %517, %520 : vector<2x16x16xf32>
    %522 = vector.extract_strided_slice %502 {offsets = [0, 0, 5], sizes = [2, 16, 16], strides = [1, 1, 1]} : vector<2x16x22xf32> to vector<2x16x16xf32>
    %523 = vector.broadcast %89 : f32 to vector<2x16x16xf32>
    %524 = arith.mulf %523, %522 : vector<2x16x16xf32>
    %525 = arith.addf %521, %524 : vector<2x16x16xf32>
    %526 = vector.extract_strided_slice %502 {offsets = [0, 0, 6], sizes = [2, 16, 16], strides = [1, 1, 1]} : vector<2x16x22xf32> to vector<2x16x16xf32>
    %527 = vector.broadcast %90 : f32 to vector<2x16x16xf32>
    %528 = arith.mulf %527, %526 : vector<2x16x16xf32>
    %529 = arith.addf %525, %528 : vector<2x16x16xf32>
    %530 = arith.addf %500, %529 : vector<2x16x16xf32>
    %c1_81 = arith.constant 1 : index
    %c0_82 = arith.constant 0 : index
    %c6_83 = arith.constant 6 : index
    %c0_84 = arith.constant 0 : index
    %531 = vector.load %arg6[%c1_81, %c0_82, %c6_83, %c0_84] : memref<2x2x22x22xf32, #tpu.memory_space<vmem>>, vector<1x2x16x22xf32>
    %532 = vector.shape_cast %531 : vector<1x2x16x22xf32> to vector<2x16x22xf32>
    %533 = vector.extract_strided_slice %532 {offsets = [0, 0, 0], sizes = [2, 16, 16], strides = [1, 1, 1]} : vector<2x16x22xf32> to vector<2x16x16xf32>
    %534 = vector.broadcast %91 : f32 to vector<2x16x16xf32>
    %535 = arith.mulf %534, %533 : vector<2x16x16xf32>
    %536 = vector.extract_strided_slice %532 {offsets = [0, 0, 1], sizes = [2, 16, 16], strides = [1, 1, 1]} : vector<2x16x22xf32> to vector<2x16x16xf32>
    %537 = vector.broadcast %92 : f32 to vector<2x16x16xf32>
    %538 = arith.mulf %537, %536 : vector<2x16x16xf32>
    %539 = arith.addf %535, %538 : vector<2x16x16xf32>
    %540 = vector.extract_strided_slice %532 {offsets = [0, 0, 2], sizes = [2, 16, 16], strides = [1, 1, 1]} : vector<2x16x22xf32> to vector<2x16x16xf32>
    %541 = vector.broadcast %93 : f32 to vector<2x16x16xf32>
    %542 = arith.mulf %541, %540 : vector<2x16x16xf32>
    %543 = arith.addf %539, %542 : vector<2x16x16xf32>
    %544 = vector.extract_strided_slice %532 {offsets = [0, 0, 3], sizes = [2, 16, 16], strides = [1, 1, 1]} : vector<2x16x22xf32> to vector<2x16x16xf32>
    %545 = vector.broadcast %94 : f32 to vector<2x16x16xf32>
    %546 = arith.mulf %545, %544 : vector<2x16x16xf32>
    %547 = arith.addf %543, %546 : vector<2x16x16xf32>
    %548 = vector.extract_strided_slice %532 {offsets = [0, 0, 4], sizes = [2, 16, 16], strides = [1, 1, 1]} : vector<2x16x22xf32> to vector<2x16x16xf32>
    %549 = vector.broadcast %95 : f32 to vector<2x16x16xf32>
    %550 = arith.mulf %549, %548 : vector<2x16x16xf32>
    %551 = arith.addf %547, %550 : vector<2x16x16xf32>
    %552 = vector.extract_strided_slice %532 {offsets = [0, 0, 5], sizes = [2, 16, 16], strides = [1, 1, 1]} : vector<2x16x22xf32> to vector<2x16x16xf32>
    %553 = vector.broadcast %96 : f32 to vector<2x16x16xf32>
    %554 = arith.mulf %553, %552 : vector<2x16x16xf32>
    %555 = arith.addf %551, %554 : vector<2x16x16xf32>
    %556 = vector.extract_strided_slice %532 {offsets = [0, 0, 6], sizes = [2, 16, 16], strides = [1, 1, 1]} : vector<2x16x22xf32> to vector<2x16x16xf32>
    %557 = vector.broadcast %97 : f32 to vector<2x16x16xf32>
    %558 = arith.mulf %557, %556 : vector<2x16x16xf32>
    %559 = arith.addf %555, %558 : vector<2x16x16xf32>
    %560 = arith.addf %530, %559 : vector<2x16x16xf32>
    %561 = vector.shape_cast %560 : vector<2x16x16xf32> to vector<2x256xf32>
    %562 = arith.negf %561 : vector<2x256xf32>
    %563 = math.exp %562 : vector<2x256xf32>
    %cst_85 = arith.constant 1.000000e+00 : f32
    %564 = vector.broadcast %cst_85 : f32 to vector<2x256xf32>
    %565 = arith.addf %564, %563 : vector<2x256xf32>
    %566 = arith.divf %564, %565 : vector<2x256xf32>
    %567 = vector.shape_cast %566 : vector<2x256xf32> to vector<2x1x256xf32>
    %568 = vector.broadcast %567 : vector<2x1x256xf32> to vector<2x32x256xf32>
    %569 = arith.mulf %125, %568 : vector<2x32x256xf32>
    %c0_86 = arith.constant 0 : index
    %c0_87 = arith.constant 0 : index
    %c0_88 = arith.constant 0 : index
    %570 = vector.load %arg5[%c0_86, %c0_87, %c0_88] : memref<2x32x256xf32, #tpu.memory_space<vmem>>, vector<2x32x256xf32>
    tpu.vector_store %arg5[%c0_86, %c0_87, %c0_88], %569 {strides = array<i32>} : memref<2x32x256xf32, #tpu.memory_space<vmem>>, vector<2x32x256xf32>,
    return
  }
  func.func @transform_0(%arg0: i32) -> (i32, i32, i32) {
    %c0_i32 = arith.constant 0 : i32
    %c0_i32_0 = arith.constant 0 : i32
    %c0_i32_1 = arith.constant 0 : i32
    return %arg0, %c0_i32, %c0_i32_0 : i32, i32, i32
  }
  func.func @transform_1(%arg0: i32) -> (i32, i32) {
    %c0_i32 = arith.constant 0 : i32
    %c0_i32_0 = arith.constant 0 : i32
    %c0_i32_1 = arith.constant 0 : i32
    return %c0_i32, %c0_i32_0 : i32, i32
  }
  func.func @transform_2(%arg0: i32) -> (i32, i32) {
    %c0_i32 = arith.constant 0 : i32
    %c0_i32_0 = arith.constant 0 : i32
    %c0_i32_1 = arith.constant 0 : i32
    return %c0_i32, %c0_i32_0 : i32, i32
  }
  func.func @transform_3(%arg0: i32) -> i32 {
    %c0_i32 = arith.constant 0 : i32
    %c0_i32_0 = arith.constant 0 : i32
    return %c0_i32 : i32
  }
  func.func @transform_4(%arg0: i32) -> (i32, i32, i32) {
    %c0_i32 = arith.constant 0 : i32
    %c0_i32_0 = arith.constant 0 : i32
    %c0_i32_1 = arith.constant 0 : i32
    return %arg0, %c0_i32, %c0_i32_0 : i32, i32, i32
  }
}

</mosaic_0001>

<bundles_post_ra>
// kernel: tpu_custom_call.1
= control target key start
LH: loop header
LB: loop body
LE: loop exit
PB: predicated region body
PF: predicated region fallthrough
CT: control target
= control target key end

     0   :  { %9 = vsyncpa [#allocation4], 0  ;;  %s7580_s0 = inlined_call_operand.hbm [shape: f32[2,32,256], index: 0, kind: input, shape index: {}]   ;;  %s7581_s1 = inlined_call_operand.vmem [shape: f32[2,32], index: 1, kind: input, shape index: {}]   ;;  %s7582_s2 = inlined_call_operand.vmem [shape: f32[32,2], index: 2, kind: input, shape index: {}]   ;;  %s7583_s3 = inlined_call_operand.vmem [shape: f32[98], index: 3, kind: input, shape index: {}]   ;;  %s7584_s4 = inlined_call_operand.hbm [shape: f32[2,32,256], index: 4, kind: output, shape index: {}]  }
   0x1   :  { %10 = vsyncpa [#allocation6], 0 }
   0x2   :  { %11 = vsyncpa [#allocation5], 0  ;;  %s4827_s15 = smov [#allocation3]   ;;  %s34_s19 = sshll.u32 %s7583_s3, 4  ;;  %s35_s19 = int_to_ptr.vmem [resolvable:$true] %s34_s19 }
   0x3   :  { %s17_s16 = sshll.u32 %s4827_s15, 4  ;;  %s18_s16 = int_to_ptr.vmem [resolvable:$true] %s17_s16 }
   0x4   :  { %s4777_s20 = scalar_lea.vmem %s18_s16, 2048  ;;  %p4782_p1 = scmp.lt.s32.totalorder %s18_s16, %s18_s16 }
   0x5   :  { %p4778_p0 = scmp.ne.s32.totalorder %s18_s16, %s4777_s20  ;;  %p4783_p2 = scmp.lt.s32.totalorder %s4777_s20, %s4777_s20 }
   0x7   :  { %p4784_p3 = por %p4783_p2, %p4782_p1 }
   0x9   :  { %p4785_p4 = pnand %p4784_p3, %p4778_p0 }
   0xb   :  { %4788 = shalt.err (!%p4785_p4)
}
   0xc   :  { %s4828_s21 = smov 256   ;;  %s4829_s22 = smov 16  }
   0xd   :  { %23 = dma.hbm_to_vmem [thread:$0]  %s7580_s0, 2048, %s18_s16, [#allocation4], %s4828_s21, %s4828_s21, %s4829_s22  }
   0xe   :  { %s4789_s25 = scalar_lea.vmem %s35_s19, 16  ;;  %p4794_p6 = scmp.lt.s32.totalorder %s35_s19, %s35_s19 }
   0xf   :  { %p4790_p5 = scmp.ne.s32.totalorder %s35_s19, %s4789_s25  ;;  %p4795_p7 = scmp.lt.s32.totalorder %s4789_s25, %s4789_s25 }
  0x11   :  { %p4796_p8 = por %p4795_p7, %p4794_p6 }
  0x13   :  { %p4797_p9 = pnand %p4796_p8, %p4790_p5 }
  0x15   :  { %4800 = shalt.err (!%p4797_p9)
}
  0x16   :  { %s4830_s3 = smov [#allocation7]  }
  0x17   :  { %37 = dma.vmem_to_smem %s35_s19, 16, %s4830_s3, [#allocation6]  }
  0x18   :  { %4821 = dma.done.wait [#allocation4], 2048  }
  0x19   :  { %4822 = vsyncadd [#allocation4], 4294965248 }
  0x1a   :  { %4823 = dma.done.wait [#allocation6], 16  }
  0x1b   :  { %4824 = vsyncadd [#allocation6], 4294967280 }
  0x1c   :  { %44 = sfence }
  0x1d   :  { %v152_v0 = vld [vmem:[#allocation3 + $0x20] sm:$0xff]  ;;  %v153_v1 = vld [vmem:[#allocation3 + $0x28] sm:$0xff]  ;;  %v154_v5 = vld [vmem:[#allocation3 + $0x30] sm:$0xff]  ;;  %v198_v24 = vlaneseq  ;;  %v4831_v29 = vmov 0   ;;  %vm335_vm0 = vcmask 130112   ;;  %vm342_vm1 = vcmask 195712  }
  0x1e   :  { %v148_v2 = vld [vmem:[#allocation3] sm:$0xff]  ;;  %v170_v3 = vadd.f32 %v153_v1, %v152_v0  ;;  %v149_v4 = vld [vmem:[#allocation3 + $0x8] sm:$0xff]  ;;  %v155_v6 = vld [vmem:[#allocation3 + $0x38] sm:$0xff]  ;;  %4695 = vset.pattern.permute.xlu1 %v4831_v29  ;;  %4694 = vset.pattern.permute.xlu0 %v4831_v29  ;;  %vm349_vm2 = vcmask 261312   ;;  %vm408_vm3 = vcmask 1041409   ;;  %vm413_vm4 = vcmask 254976  }
  0x1f   :  { %v164_v7 = vadd.f32 %v149_v4, %v148_v2  ;;  %v150_v8 = vld [vmem:[#allocation3 + $0x10] sm:$0xff]  ;;  %v151_v9 = vld [vmem:[#allocation3 + $0x18] sm:$0xff]  ;;  %v173_v10 = vadd.f32 %v155_v6, %v154_v5  ;;  %v156_v14 = vld [vmem:[#allocation3 + $0x40] sm:$0xff]  ;;  %v4885_v25 = vshrl.u32 %v198_v24, 7  ;;  %vm1259_vm5 = vcmask 1042434   ;;  %s4833_s8 = smov 96  }
  0x20   :  { %171 = vadd.xlane.f32.xlu1 %v170_v3  ;;  %v167_v11 = vadd.f32 %v151_v9, %v150_v8  ;;  %v158_v12 = vld [vmem:[#allocation3 + $0x50] sm:$0xff]  ;;  %v159_v13 = vld [vmem:[#allocation3 + $0x58] sm:$0xff]  ;;  %v157_v15 = vld [vmem:[#allocation3 + $0x48] sm:$0xff]  ;;  %vm1261_vm6 = vcmask 1043459   ;;  %vm1263_vm7 = vcmask 1044484   ;;  %vm1265_vm8 = vcmask 1045509  }
  0x21   :  { %165 = vadd.xlane.f32.xlu0 %v164_v7  ;;  %v179_v16 = vadd.f32 %v159_v13, %v158_v12  ;;  %v176_v17 = vadd.f32 %v157_v15, %v156_v14  ;;  %v162_v18 = vld [vmem:[#allocation3 + $0x70] sm:$0xff]  ;;  %v163_v19 = vld [vmem:[#allocation3 + $0x78] sm:$0xff]  ;;  %v160_v20 = vld [vmem:[#allocation3 + $0x60] sm:$0xff]  ;;  %7618 = vst [vmem:[#allocation12_spill] sm:$0xff] %v4885_v25  ;;  %v4888_v26 = vsub.s32 0, %v4885_v25  ;;  %v4895_v30 = vsub.s32 1, %v4885_v25 }
  0x22   :  { %v161_v21 = vld [vmem:[#allocation3 + $0x68] sm:$0xff]  ;;  %v185_v22 = vadd.f32 %v163_v19, %v162_v18  ;;  %v143_v27 = vld [vmem:[%s7581_s1] sm:$0x3]  ;;  %v4903_v34 = vsub.s32 3, %v4885_v25  ;;  %v4907_v36 = vsub.s32 2, %v4885_v25  ;;  %v4911_v38 = vsub.s32 5, %v4885_v25 }
  0x23   :  { %v182_v23 = vadd.f32 %v161_v21, %v160_v20  ;;  %7619 = vst [vmem:[#allocation13_spill] sm:$0xff] %v4888_v26  ;;  %v201_v28 = vrot.slane %v143_v27, %v4888_v26  ;;  %7620 = vst [vmem:[#allocation14_spill] sm:$0xff] %v4895_v30  ;;  %v220_v31 = vrot.slane %v143_v27, %v4895_v30  ;;  %v144_v32 = vld [vmem:[%s7582_s2] sm:$0xff]  ;;  %v4915_v40 = vsub.s32 4, %v4885_v25  ;;  %v145_v47 = vld [vmem:[%s7582_s2 + $0x8] sm:$0xff]  ;;  %s4834_s9 = smov 80  }
  0x24   :  { %174 = vadd.xlane.f32.xlu1 %v173_v10  ;;  %v429_v33 = vrot.slane %v144_v32, %v4888_v26  ;;  %v436_v35 = vrot.slane %v144_v32, %v4895_v30  ;;  %v450_v37 = vrot.slane %v144_v32, %v4903_v34  ;;  %v443_v39 = vrot.slane %v144_v32, %v4907_v36  ;;  %v146_v56 = vld [vmem:[%s7582_s2 + $0x10] sm:$0xff]  ;;  %v4952_v1 = vld [vmem:[%s7582_s2 + $0x18] sm:$0xff]  ;;  %s4832_s2 = smov 112   ;;  %s4835_s10 = smov 64  }
  0x25   :  { %168 = vadd.xlane.f32.xlu0 %v167_v11  ;;  %v464_v41 = vrot.slane %v144_v32, %v4911_v38  ;;  %v4919_v42 = vsub.s32 7, %v4885_v25  ;;  %v457_v43 = vrot.slane %v144_v32, %v4915_v40  ;;  %v4923_v44 = vsub.s32 6, %v4885_v25  ;;  %s4836_s11 = smov 48   ;;  %s4837_s12 = smov 32  }
  0x26   :  { %v492_v48 = vrot.slane %v145_v47, %v4895_v30  ;;  %v485_v49 = vrot.slane %v145_v47, %v4888_v26  ;;  %v506_v50 = vrot.slane %v145_v47, %v4903_v34  ;;  %v499_v51 = vrot.slane %v145_v47, %v4907_v36  ;;  %s4841_s13 = smov 3   ;;  %s4613_s14 = sld [smem:[#allocation7 + $0x32]] }
  0x27   :  { %v478_v45 = vrot.slane %v144_v32, %v4919_v42  ;;  %v471_v46 = vrot.slane %v144_v32, %v4923_v44  ;;  %v520_v52 = vrot.slane %v145_v47, %v4911_v38  ;;  %v513_v53 = vrot.slane %v145_v47, %v4915_v40  ;;  %s4614_s15 = sld [smem:[#allocation7 + $0x33]]  ;;  %s4842_s16 = smov 127  }
  0x28   :  { %180 = vadd.xlane.f32.xlu1 %v179_v16  ;;  %v534_v54 = vrot.slane %v145_v47, %v4919_v42  ;;  %v527_v55 = vrot.slane %v145_v47, %v4923_v44  ;;  %v548_v57 = vrot.slane %v146_v56, %v4895_v30  ;;  %v541_v58 = vrot.slane %v146_v56, %v4888_v26  ;;  %s4615_s17 = sld [smem:[#allocation7 + $0x34]]  ;;  %s4843_s18 = smov 126  }
  0x29   :  { %177 = vadd.xlane.f32.xlu0 %v176_v17  ;;  %v562_v59 = vrot.slane %v146_v56, %v4903_v34  ;;  %v555_v60 = vrot.slane %v146_v56, %v4907_v36  ;;  %v576_v61 = vrot.slane %v146_v56, %v4911_v38  ;;  %v569_v62 = vrot.slane %v146_v56, %v4915_v40  ;;  %s4616_s19 = sld [smem:[#allocation7 + $0x35]]  ;;  %s4844_s20 = smov 125  }
  0x2a   :  { %v590_v63 = vrot.slane %v146_v56, %v4919_v42  ;;  %v583_v0 = vrot.slane %v146_v56, %v4923_v44  ;;  %v597_v2 = vrot.slane %v4952_v1, %v4888_v26  ;;  %v639_v56 = vrot.slane %v4952_v1, %v4923_v44  ;;  %s4617_s23 = sld [smem:[#allocation7 + $0x36]]  ;;  %s4845_s24 = smov 124  }
  0x2b   :  { %vm1267_vm9 = vcmask 1046534   ;;  %vm1269_vm10 = vcmask 1047559   ;;  %vm1328_vm11 = vcmask 15360   ;;  %vm1494_vm12 = vcmask 179200   ;;  %s4618_s25 = sld [smem:[#allocation7 + $0x37]]  ;;  %s4846_s3 = smov 123  }
  0x2c   :  { %186 = vadd.xlane.f32.xlu1 %v185_v22  ;;  %vm1497_vm13 = vcmask 177152   ;;  %vm1732_vm14 = vcmask 154648   ;;  %s4620_s0 = sld [smem:[#allocation7 + $0x39]]  ;;  %s4847_s26 = smov 122   ;;  %vm4436_vm15 = vcmask 130048  }
  0x2d   :  { %183 = vadd.xlane.f32.xlu0 %v182_v23  ;;  %s4621_s27 = sld [smem:[#allocation7 + $0x3a]] }
  0x2e   :  { %s4622_s28 = sld [smem:[#allocation7 + $0x3b]] }
  0x2f   :  { %s4623_s1 = sld [smem:[#allocation7 + $0x3c]] }
  0x30   :  { %s4624_s29 = sld [smem:[#allocation7 + $0x3d]] }
  0x31   :  { %s4625_s30 = sld [smem:[#allocation7 + $0x3e]] }
  0x32   :  { %s4627_s5 = sld [smem:[#allocation7 + $0x40]] }
  0x33   :  { %s4628_s6 = sld [smem:[#allocation7 + $0x41]] }
  0x34   :  { %s4629_s7 = sld [smem:[#allocation7 + $0x42]] }
  0x3d   :  { %207 = vbcast.lane.b32.xlu1 %v201_v28, 264 }
  0x41   :  { %211 = vbcast.lane.b32.xlu1 %v201_v28, 272 }
  0x43   :  { %203 = vbcast.lane.b32.xlu0 %v201_v28, 256 }
  0x45   :  { %215 = vbcast.lane.b32.xlu1 %v201_v28, 280 }
  0x47   :  { %222 = vbcast.lane.b32.xlu0 %v220_v31, 256 }
  0x49   :  { %226 = vbcast.lane.b32.xlu1 %v220_v31, 264 }
  0x4b   :  { %230 = vbcast.lane.b32.xlu0 %v220_v31, 272 }
  0x4d   :  { %234 = vbcast.lane.b32.xlu1 %v220_v31, 280 }
  0x4f   :  { %431 = vbcast.lane.b32.xlu0 %v429_v33, 256 }
  0x51   :  { %438 = vbcast.lane.b32.xlu1 %v436_v35, 256 }
  0x53   :  { %452 = vbcast.lane.b32.xlu0 %v450_v37, 256 }
  0x55   :  { %445 = vbcast.lane.b32.xlu1 %v443_v39, 256 }
  0x57   :  { %466 = vbcast.lane.b32.xlu0 %v464_v41, 256 }
  0x59   :  { %459 = vbcast.lane.b32.xlu1 %v457_v43, 256 }
  0x5b   :  { %480 = vbcast.lane.b32.xlu0 %v478_v45, 256 }
  0x5d   :  { %473 = vbcast.lane.b32.xlu1 %v471_v46, 256 }
  0x5f   :  { %494 = vbcast.lane.b32.xlu0 %v492_v48, 256 }
  0x61   :  { %487 = vbcast.lane.b32.xlu1 %v485_v49, 256 }
  0x63   :  { %508 = vbcast.lane.b32.xlu0 %v506_v50, 256 }
  0x65   :  { %501 = vbcast.lane.b32.xlu1 %v499_v51, 256 }
  0x67   :  { %522 = vbcast.lane.b32.xlu0 %v520_v52, 256  ;;  %v611_v52 = vrot.slane %v4952_v1, %v4907_v36  ;;  %v632_v36 = vrot.slane %v4952_v1, %v4911_v38 }
  0x69   :  { %515 = vbcast.lane.b32.xlu1 %v513_v53, 256 }
  0x6b   :  { %536 = vbcast.lane.b32.xlu0 %v534_v54, 256  ;;  %v625_v54 = vrot.slane %v4952_v1, %v4915_v40  ;;  %v646_v40 = vrot.slane %v4952_v1, %v4919_v42 }
  0x6d   :  { %529 = vbcast.lane.b32.xlu1 %v527_v55, 256  ;;  %v604_v55 = vrot.slane %v4952_v1, %v4895_v30 }
  0x6f   :  { %550 = vbcast.lane.b32.xlu0 %v548_v57, 256  ;;  %v618_v57 = vrot.slane %v4952_v1, %v4903_v34 }
  0x71   :  { %543 = vbcast.lane.b32.xlu1 %v541_v58, 256 }
  0x73   :  { %564 = vbcast.lane.b32.xlu0 %v562_v59, 256 }
  0x75   :  { %557 = vbcast.lane.b32.xlu1 %v555_v60, 256 }
  0x77   :  { %578 = vbcast.lane.b32.xlu0 %v576_v61, 256 }
  0x79   :  { %571 = vbcast.lane.b32.xlu1 %v569_v62, 256 }
  0x7b   :  { %592 = vbcast.lane.b32.xlu0 %v590_v63, 256 }
  0x7d   :  { %585 = vbcast.lane.b32.xlu1 %v583_v0, 256 }
  0x81   :  { %599 = vbcast.lane.b32.xlu1 %v597_v2, 256 }
  0xa9   :  { %v172_v3 = vpop.xlane.xlu1 %171 }
  0xaa   :  { %v166_v4 = vpop.xlane.xlu0 %165  ;;  %v191_v17 = vmul.f32 0.00390625, %v172_v3 }
  0xab   :  { %v189_v12 = vmul.f32 0.00390625, %v166_v4 }
  0xad   :  { %v175_v5 = vpop.xlane.xlu1 %174 }
  0xae   :  { %v169_v6 = vpop.xlane.xlu0 %168  ;;  %v192_v21 = vmul.f32 0.00390625, %v175_v5 }
  0xaf   :  { %v190_v11 = vmul.f32 0.00390625, %v169_v6 }
  0xb1   :  { %v181_v7 = vpop.xlane.xlu1 %180 }
  0xb2   :  { %v178_v8 = vpop.xlane.xlu0 %177  ;;  %v194_v41 = vmul.f32 0.00390625, %v181_v7 }
  0xb3   :  { %v193_v33 = vmul.f32 0.00390625, %v178_v8 }
  0xb5   :  { %v187_v9 = vpop.xlane.xlu1 %186 }
  0xb6   :  { %v184_v10 = vpop.xlane.xlu0 %183  ;;  %v196_v47 = vmul.f32 0.00390625, %v187_v9 }
  0xb7   :  { %v195_v43 = vmul.f32 0.00390625, %v184_v10 }
  0xb9   :  { %v208_v13 = vpop.permute.xlu1 %207 }
  0xba   :  { %v245_v14 = vmul.f32 %v208_v13, %v190_v11  ;;  %v204_v15 = vpop.permute.xlu0 %203  ;;  %v253_v45 = vmul.f32 %v208_v13, %v194_v41 }
  0xbb   :  { %v244_v16 = vmul.f32 %v204_v15, %v189_v12  ;;  %v252_v37 = vmul.f32 %v204_v15, %v193_v33 }
  0xbc   :  { %280 = vperm.xlu1 %4695, %v245_v14  }
  0xbd   :  { %277 = vperm.xlu0 %4694, %v244_v16   ;;  %v212_v18 = vpop.permute.xlu1 %211  ;;  %v325_v16 = vand.u32 127, %v198_v24 }
  0xbe   :  { %v246_v19 = vmul.f32 %v212_v18, %v191_v17  ;;  %v223_v20 = vpop.permute.xlu0 %222  ;;  %v254_v46 = vmul.f32 %v212_v18, %v195_v43 }
  0xbf   :  { %v248_v23 = vmul.f32 %v223_v20, %v189_v12  ;;  %v256_v48 = vmul.f32 %v223_v20, %v193_v33  ;;  %v337_v20 = vadd.s32 4294967280, %v325_v16 }
  0xc0   :  { %283 = vperm.xlu1 %4695, %v246_v19   ;;  %v330_v19 = vadd.s32 4294967288, %v325_v16 }
  0xc1   :  { %v216_v22 = vpop.permute.xlu1 %215 }
  0xc2   :  { %v247_v27 = vmul.f32 %v216_v22, %v192_v21  ;;  %v231_v28 = vpop.permute.xlu0 %230  ;;  %v255_v49 = vmul.f32 %v216_v22, %v196_v47 }
  0xc3   :  { %v250_v31 = vmul.f32 %v231_v28, %v191_v17  ;;  %v258_v50 = vmul.f32 %v231_v28, %v195_v43  ;;  %v333_v28 = vsub.s32 %v330_v19, %v4885_v25 }
  0xc4   :  { %286 = vperm.xlu0 %4694, %v247_v27   ;;  %289 = vperm.xlu1 %4695, %v248_v23   ;;  %v5022_v27 = vsub.s32 %v325_v16, %v4885_v25 }
  0xc5   :  { %v227_v29 = vpop.permute.xlu1 %226 }
  0xc6   :  { %v249_v32 = vmul.f32 %v227_v29, %v190_v11  ;;  %v257_v51 = vmul.f32 %v227_v29, %v194_v41  ;;  %v4974_v60 = vpop.permute.xlu0 %431  ;;  %v340_v29 = vsub.s32 %v337_v20, %v4885_v25 }
  0xc8   :  { %292 = vperm.xlu0 %4694, %v249_v32   ;;  %295 = vperm.xlu1 %4695, %v250_v31  }
  0xc9   :  { %v235_v35 = vpop.permute.xlu1 %234 }
  0xca   :  { %v251_v39 = vmul.f32 %v235_v35, %v192_v21  ;;  %v259_v53 = vmul.f32 %v235_v35, %v196_v47  ;;  %v4978_v61 = vpop.permute.xlu0 %452  ;;  %v344_v21 = vadd.s32 4294967272, %v325_v16 }
  0xcc   :  { %298 = vperm.xlu0 %4694, %v251_v39   ;;  %301 = vperm.xlu1 %4695, %v252_v37   ;;  %v347_v31 = vsub.s32 %v344_v21, %v4885_v25 }
  0xcd   :  { %v4970_v58 = vpop.permute.xlu1 %438 }
  0xce   :  { %v4982_v62 = vpop.permute.xlu0 %466 }
  0xd0   :  { %304 = vperm.xlu0 %4694, %v253_v45   ;;  %307 = vperm.xlu1 %4695, %v254_v46  }
  0xd1   :  { %v4972_v59 = vpop.permute.xlu1 %445 }
  0xd2   :  { %v4986_v63 = vpop.permute.xlu0 %480 }
  0xd4   :  { %310 = vperm.xlu0 %4694, %v255_v49   ;;  %313 = vperm.xlu1 %4695, %v256_v48  }
  0xd5   :  { %v4976_v44 = vpop.permute.xlu1 %459 }
  0xd6   :  { %v4990_v0 = vpop.permute.xlu0 %494 }
  0xd8   :  { %316 = vperm.xlu0 %4694, %v257_v51   ;;  %319 = vperm.xlu1 %4695, %v258_v50  }
  0xd9   :  { %v4980_v34 = vpop.permute.xlu1 %473 }
  0xda   :  { %v4994_v2 = vpop.permute.xlu0 %508 }
  0xdc   :  { %322 = vperm.xlu0 %4694, %v259_v53   ;;  %613 = vbcast.lane.b32.xlu1 %v611_v52, 256 }
  0xdd   :  { %v4984_v38 = vpop.permute.xlu1 %487 }
  0xde   :  { %v4998_v4 = vpop.permute.xlu0 %522 }
  0xe0   :  { %627 = vbcast.lane.b32.xlu1 %v625_v54, 256  ;;  %606 = vbcast.lane.b32.xlu0 %v604_v55, 256 }
  0xe1   :  { %v4988_v42 = vpop.permute.xlu1 %501 }
  0xe2   :  { %v5002_v6 = vpop.permute.xlu0 %536 }
  0xe4   :  { %641 = vbcast.lane.b32.xlu1 %v639_v56, 256  ;;  %620 = vbcast.lane.b32.xlu0 %v618_v57, 256 }
  0xe5   :  { %v4992_v1 = vpop.permute.xlu1 %515 }
  0xe6   :  { %v5006_v8 = vpop.permute.xlu0 %550 }
  0xe8   :  { %634 = vbcast.lane.b32.xlu0 %v632_v36, 256 }
  0xe9   :  { %v4996_v3 = vpop.permute.xlu1 %529 }
  0xea   :  { %v5010_v10 = vpop.permute.xlu0 %564 }
  0xec   :  { %648 = vbcast.lane.b32.xlu0 %v646_v40, 256 }
  0xed   :  { %v5000_v5 = vpop.permute.xlu1 %543 }
  0xee   :  { %v5014_v12 = vpop.permute.xlu0 %578 }
  0xf1   :  { %v5004_v7 = vpop.permute.xlu1 %557 }
  0xf2   :  { %v5018_v14 = vpop.permute.xlu0 %592 }
  0xf5   :  { %v5008_v9 = vpop.permute.xlu1 %571 }
  0xf9   :  { %v5012_v11 = vpop.permute.xlu1 %585 }
  0xfd   :  { %v5016_v13 = vpop.permute.xlu1 %599 }
 0x137   :  { %v281_v15 = vpop.permute.xlu1 %280 }
 0x138   :  { %v278_v17 = vpop.permute.xlu0 %277  ;;  %v334_v35 = vrot.slane %v281_v15, %v333_v28 }
 0x139   :  { %v329_v24 = vrot.slane %v278_v17, %v5022_v27 }
 0x13b   :  { %v284_v18 = vpop.permute.xlu1 %283  ;;  %v336_v49 = vsel %vm335_vm0, %v334_v35, %v329_v24 }
 0x13c   :  { %v341_v41 = vrot.slane %v284_v18, %v340_v29 }
 0x13e   :  { %v343_v51 = vsel %vm342_vm1, %v341_v41, %v336_v49 }
 0x13f   :  { %v290_v22 = vpop.permute.xlu1 %289  ;;  %v287_v23 = vpop.permute.xlu0 %286 }
 0x140   :  { %v354_v37 = vrot.slane %v290_v22, %v5022_v27  ;;  %v348_v45 = vrot.slane %v287_v23, %v347_v31 }
 0x142   :  { %v350_v53 = vsel %vm349_vm2, %v348_v45, %v343_v51 }
 0x143   :  { %v296_v32 = vpop.permute.xlu1 %295  ;;  %v293_v33 = vpop.permute.xlu0 %292 }
 0x144   :  { %v358_v39 = vrot.slane %v293_v33, %v333_v28  ;;  %v363_v43 = vrot.slane %v296_v32, %v340_v29 }
 0x146   :  { %v359_v46 = vsel %vm335_vm0, %v358_v39, %v354_v37 }
 0x147   :  { %v302_v47 = vpop.permute.xlu1 %301  ;;  %v299_v48 = vpop.permute.xlu0 %298  ;;  %v364_v52 = vsel %vm342_vm1, %v363_v43, %v359_v46 }
 0x148   :  { %v368_v50 = vrot.slane %v299_v48, %v347_v31  ;;  %v373_v19 = vrot.slane %v302_v47, %v5022_v27 }
 0x14a   :  { %v369_v54 = vsel %vm349_vm2, %v368_v50, %v364_v52 }
 0x14b   :  { %v308_v55 = vpop.permute.xlu1 %307  ;;  %v305_v56 = vpop.permute.xlu0 %304  ;;  %v409_v57 = vsel %vm408_vm3, %v369_v54, %v350_v53 }
 0x14c   :  { %v414_v36 = vsel %vm413_vm4, %v409_v57, 0.0  ;;  %v377_v16 = vrot.slane %v305_v56, %v333_v28  ;;  %v382_v22 = vrot.slane %v308_v55, %v340_v29 }
 0x14d   :  { %415 = vadd.xlane.f32.xlu1 %v414_v36 }
 0x14e   :  { %v378_v32 = vsel %vm335_vm0, %v377_v16, %v373_v19 }
 0x14f   :  { %v314_v40 = vpop.permute.xlu1 %313  ;;  %v311_v15 = vpop.permute.xlu0 %310  ;;  %v383_v39 = vsel %vm342_vm1, %v382_v22, %v378_v32 }
 0x150   :  { %v392_v20 = vrot.slane %v314_v40, %v5022_v27  ;;  %v387_v33 = vrot.slane %v311_v15, %v347_v31 }
 0x152   :  { %v388_v43 = vsel %vm349_vm2, %v387_v33, %v383_v39 }
 0x153   :  { %v320_v17 = vpop.permute.xlu1 %319  ;;  %v317_v18 = vpop.permute.xlu0 %316 }
 0x154   :  { %v396_v21 = vrot.slane %v317_v18, %v333_v28  ;;  %v401_v23 = vrot.slane %v320_v17, %v340_v29 }
 0x156   :  { %v397_v35 = vsel %vm335_vm0, %v396_v21, %v392_v20  ;;  %vm4438_vm0 = vcmask 261120  }
 0x157   :  { %v323_v24 = vpop.permute.xlu0 %322  ;;  %v402_v41 = vsel %vm342_vm1, %v401_v23, %v397_v35  ;;  %v5047_v29 = vpop.permute.xlu1 %613  ;;  %vm4440_vm1 = vcmask 392192  }
 0x158   :  { %v406_v37 = vrot.slane %v323_v24, %v347_v31 }
 0x15a   :  { %v407_v45 = vsel %vm349_vm2, %v406_v37, %v402_v41  ;;  %vm4442_vm2 = vcmask 523264  }
 0x15b   :  { %v410_v46 = vsel %vm408_vm3, %v407_v45, %v388_v43  ;;  %v5049_v47 = vpop.permute.xlu1 %627  ;;  %v5091_v23 = vpop.permute.xlu0 %606 }
 0x15c   :  { %v417_v28 = vsel %vm413_vm4, %v410_v46, 0.0  ;;  %vm4446_vm4 = vcmask 785408  }
 0x15d   :  { %418 = vadd.xlane.f32.xlu0 %v417_v28 }
 0x15f   :  { %v5051_v48 = vpop.permute.xlu1 %641  ;;  %v5099_v24 = vpop.permute.xlu0 %620 }
 0x163   :  { %v5107_v43 = vpop.permute.xlu0 %634 }
 0x1d6   :  { %v416_v31 = vpop.xlane.xlu1 %415 }
 0x1d7   :  { %v5053_v49 = vmax.f32 %v416_v31, 0.0 }
 0x1d9   :  { %v682_v50 = vmul.f32 %v4974_v60, %v5053_v49  ;;  %v683_v51 = vmul.f32 %v4970_v58, %v5053_v49  ;;  %v684_v52 = vmul.f32 %v4972_v59, %v5053_v49  ;;  %v685_v53 = vmul.f32 %v4978_v61, %v5053_v49 }
 0x1da   :  { %v686_v54 = vmul.f32 %v4976_v44, %v5053_v49  ;;  %v687_v55 = vmul.f32 %v4982_v62, %v5053_v49  ;;  %v688_v56 = vmul.f32 %v4980_v34, %v5053_v49  ;;  %v689_v57 = vmul.f32 %v4986_v63, %v5053_v49 }
 0x1db   :  { %811 = vperm.xlu1 %4695, %v682_v50   ;;  %814 = vperm.xlu0 %4694, %v683_v51   ;;  %v690_v36 = vmul.f32 %v4984_v38, %v5053_v49  ;;  %v691_v40 = vmul.f32 %v4990_v0, %v5053_v49  ;;  %v692_v15 = vmul.f32 %v4988_v42, %v5053_v49  ;;  %v5117_v50 = vpop.permute.xlu0 %648 }
 0x1dc   :  { %v693_v16 = vmul.f32 %v4994_v2, %v5053_v49  ;;  %v694_v17 = vmul.f32 %v4992_v1, %v5053_v49  ;;  %v695_v18 = vmul.f32 %v4998_v4, %v5053_v49  ;;  %v696_v19 = vmul.f32 %v4996_v3, %v5053_v49 }
 0x1dd   :  { %v697_v20 = vmul.f32 %v5002_v6, %v5053_v49  ;;  %v698_v21 = vmul.f32 %v5000_v5, %v5053_v49  ;;  %v699_v22 = vmul.f32 %v5006_v8, %v5053_v49  ;;  %v700_v32 = vmul.f32 %v5004_v7, %v5053_v49 }
 0x1de   :  { %v701_v33 = vmul.f32 %v5010_v10, %v5053_v49  ;;  %v702_v35 = vmul.f32 %v5008_v9, %v5053_v49  ;;  %v703_v37 = vmul.f32 %v5014_v12, %v5053_v49  ;;  %v704_v39 = vmul.f32 %v5012_v11, %v5053_v49 }
 0x1df   :  { %817 = vperm.xlu1 %4695, %v684_v52   ;;  %820 = vperm.xlu0 %4694, %v685_v53   ;;  %v705_v41 = vmul.f32 %v5018_v14, %v5053_v49  ;;  %v706_v45 = vmul.f32 %v5016_v13, %v5053_v49  ;;  %v707_v46 = vmul.f32 %v5091_v23, %v5053_v49 }
 0x1e0   :  { %v708_v28 = vmul.f32 %v5047_v29, %v5053_v49  ;;  %v709_v31 = vmul.f32 %v5099_v24, %v5053_v49  ;;  %v710_v51 = vmul.f32 %v5049_v47, %v5053_v49  ;;  %v711_v52 = vmul.f32 %v5107_v43, %v5053_v49 }
 0x1e3   :  { %823 = vperm.xlu1 %4695, %v686_v54   ;;  %826 = vperm.xlu0 %4694, %v687_v55   ;;  %v712_v54 = vmul.f32 %v5051_v48, %v5053_v49 }
 0x1e6   :  { %v419_v53 = vpop.xlane.xlu0 %418 }
 0x1e7   :  { %829 = vperm.xlu1 %4695, %v688_v56   ;;  %832 = vperm.xlu0 %4694, %v689_v57   ;;  %v5125_v55 = vmax.f32 %v419_v53, 0.0  ;;  %v713_v56 = vmul.f32 %v5117_v50, %v5053_v49 }
 0x1e9   :  { %v714_v57 = vmul.f32 %v4974_v60, %v5125_v55  ;;  %v718_v49 = vmul.f32 %v4976_v44, %v5125_v55  ;;  %v721_v60 = vmul.f32 %v4986_v63, %v5125_v55  ;;  %v724_v44 = vmul.f32 %v4988_v42, %v5125_v55 }
 0x1ea   :  { %v727_v63 = vmul.f32 %v4998_v4, %v5125_v55  ;;  %v730_v42 = vmul.f32 %v5000_v5, %v5125_v55  ;;  %v733_v4 = vmul.f32 %v5010_v10, %v5125_v55  ;;  %v736_v5 = vmul.f32 %v5012_v11, %v5125_v55 }
 0x1eb   :  { %835 = vperm.xlu1 %4695, %v690_v36   ;;  %838 = vperm.xlu0 %4694, %v691_v40   ;;  %v715_v36 = vmul.f32 %v4970_v58, %v5125_v55  ;;  %v716_v40 = vmul.f32 %v4972_v59, %v5125_v55  ;;  %v720_v58 = vmul.f32 %v4980_v34, %v5125_v55 }
 0x1ec   :  { %v722_v59 = vmul.f32 %v4984_v38, %v5125_v55  ;;  %v726_v34 = vmul.f32 %v4992_v1, %v5125_v55  ;;  %v728_v38 = vmul.f32 %v4996_v3, %v5125_v55  ;;  %v732_v1 = vmul.f32 %v5004_v7, %v5125_v55 }
 0x1ed   :  { %v734_v3 = vmul.f32 %v5008_v9, %v5125_v55  ;;  %v738_v7 = vmul.f32 %v5016_v13, %v5125_v55  ;;  %v739_v10 = vmul.f32 %v5091_v23, %v5125_v55  ;;  %v740_v9 = vmul.f32 %v5047_v29, %v5125_v55 }
 0x1ee   :  { %v742_v11 = vmul.f32 %v5049_v47, %v5125_v55  ;;  %v744_v13 = vmul.f32 %v5051_v48, %v5125_v55 }
 0x1ef   :  { %841 = vperm.xlu1 %4695, %v692_v15   ;;  %844 = vperm.xlu0 %4694, %v693_v16   ;;  %v717_v15 = vmul.f32 %v4978_v61, %v5125_v55  ;;  %v719_v16 = vmul.f32 %v4982_v62, %v5125_v55  ;;  %v723_v61 = vmul.f32 %v4990_v0, %v5125_v55 }
 0x1f0   :  { %v725_v62 = vmul.f32 %v4994_v2, %v5125_v55  ;;  %v729_v0 = vmul.f32 %v5002_v6, %v5125_v55  ;;  %v731_v2 = vmul.f32 %v5006_v8, %v5125_v55  ;;  %v735_v6 = vmul.f32 %v5014_v12, %v5125_v55 }
 0x1f1   :  { %v737_v8 = vmul.f32 %v5018_v14, %v5125_v55  ;;  %v741_v12 = vmul.f32 %v5099_v24, %v5125_v55  ;;  %v743_v14 = vmul.f32 %v5107_v43, %v5125_v55 }
 0x1f3   :  { %847 = vperm.xlu1 %4695, %v694_v17   ;;  %850 = vperm.xlu0 %4694, %v695_v18   ;;  %v745_v17 = vmul.f32 %v5117_v50, %v5125_v55 }
 0x1f7   :  { %853 = vperm.xlu1 %4695, %v696_v19   ;;  %856 = vperm.xlu0 %4694, %v697_v20  }
 0x1fb   :  { %859 = vperm.xlu1 %4695, %v698_v21   ;;  %862 = vperm.xlu0 %4694, %v699_v22  }
 0x1ff   :  { %865 = vperm.xlu1 %4695, %v700_v32   ;;  %868 = vperm.xlu0 %4694, %v701_v33  }
 0x203   :  { %871 = vperm.xlu1 %4695, %v702_v35   ;;  %874 = vperm.xlu0 %4694, %v703_v37  }
 0x207   :  { %877 = vperm.xlu1 %4695, %v704_v39   ;;  %880 = vperm.xlu0 %4694, %v705_v41  }
 0x20b   :  { %883 = vperm.xlu1 %4695, %v706_v45   ;;  %886 = vperm.xlu0 %4694, %v707_v46  }
 0x20f   :  { %889 = vperm.xlu1 %4695, %v708_v28   ;;  %892 = vperm.xlu0 %4694, %v709_v31  }
 0x213   :  { %895 = vperm.xlu1 %4695, %v710_v51   ;;  %898 = vperm.xlu0 %4694, %v711_v52  }
 0x217   :  { %901 = vperm.xlu1 %4695, %v712_v54   ;;  %904 = vperm.xlu0 %4694, %v713_v56  }
 0x21b   :  { %907 = vperm.xlu1 %4695, %v714_v57   ;;  %910 = vperm.xlu0 %4694, %v715_v36  }
 0x21f   :  { %913 = vperm.xlu1 %4695, %v716_v40   ;;  %916 = vperm.xlu0 %4694, %v717_v15  }
 0x223   :  { %919 = vperm.xlu1 %4695, %v718_v49   ;;  %922 = vperm.xlu0 %4694, %v719_v16  }
 0x227   :  { %925 = vperm.xlu1 %4695, %v720_v58   ;;  %928 = vperm.xlu0 %4694, %v721_v60  }
 0x22b   :  { %931 = vperm.xlu1 %4695, %v722_v59   ;;  %934 = vperm.xlu0 %4694, %v723_v61  }
 0x22f   :  { %937 = vperm.xlu1 %4695, %v724_v44   ;;  %940 = vperm.xlu0 %4694, %v725_v62  }
 0x233   :  { %943 = vperm.xlu1 %4695, %v726_v34   ;;  %946 = vperm.xlu0 %4694, %v727_v63  }
 0x237   :  { %949 = vperm.xlu1 %4695, %v728_v38   ;;  %952 = vperm.xlu0 %4694, %v729_v0  }
 0x23b   :  { %955 = vperm.xlu1 %4695, %v730_v42   ;;  %958 = vperm.xlu0 %4694, %v731_v2  }
 0x23f   :  { %961 = vperm.xlu1 %4695, %v732_v1   ;;  %964 = vperm.xlu0 %4694, %v733_v4  }
 0x243   :  { %967 = vperm.xlu1 %4695, %v734_v3   ;;  %970 = vperm.xlu0 %4694, %v735_v6  }
 0x247   :  { %973 = vperm.xlu1 %4695, %v736_v5   ;;  %976 = vperm.xlu0 %4694, %v737_v8  }
 0x24b   :  { %979 = vperm.xlu1 %4695, %v738_v7   ;;  %982 = vperm.xlu0 %4694, %v739_v10  }
 0x24f   :  { %985 = vperm.xlu1 %4695, %v740_v9   ;;  %988 = vperm.xlu0 %4694, %v741_v12  }
 0x253   :  { %991 = vperm.xlu1 %4695, %v742_v11   ;;  %994 = vperm.xlu0 %4694, %v743_v14  }
 0x256   :  { %v812_v29 = vpop.permute.xlu1 %811  ;;  %v815_v18 = vpop.permute.xlu0 %814 }
 0x257   :  { %997 = vperm.xlu1 %4695, %v744_v13   ;;  %1000 = vperm.xlu0 %4694, %v745_v17   ;;  %v1005_v33 = vrot.slane %v812_v29, %v5022_v27  ;;  %v1009_v35 = vrot.slane %v815_v18, %v5022_v27 }
 0x259   :  { %v1258_v43 = vsel %vm408_vm3, %v1009_v35, %v1005_v33 }
 0x25a   :  { %v818_v19 = vpop.permute.xlu1 %817  ;;  %v821_v20 = vpop.permute.xlu0 %820 }
 0x25b   :  { %v1013_v48 = vrot.slane %v818_v19, %v5022_v27  ;;  %v1017_v45 = vrot.slane %v821_v20, %v5022_v27 }
 0x25d   :  { %v1260_v31 = vsel %vm1259_vm5, %v1013_v48, %v1258_v43 }
 0x25e   :  { %v824_v21 = vpop.permute.xlu1 %823  ;;  %v827_v22 = vpop.permute.xlu0 %826  ;;  %v1262_v55 = vsel %vm1261_vm6, %v1017_v45, %v1260_v31 }
 0x25f   :  { %v1021_v50 = vrot.slane %v824_v21, %v5022_v27  ;;  %v1025_v56 = vrot.slane %v827_v22, %v5022_v27 }
 0x261   :  { %v1264_v40 = vsel %vm1263_vm7, %v1021_v50, %v1262_v55 }
 0x262   :  { %v830_v47 = vpop.permute.xlu1 %829  ;;  %v833_v23 = vpop.permute.xlu0 %832  ;;  %v1266_v59 = vsel %vm1265_vm8, %v1025_v56, %v1264_v40 }
 0x263   :  { %v1029_v15 = vrot.slane %v830_v47, %v5022_v27  ;;  %v1033_v61 = vrot.slane %v833_v23, %v5022_v27 }
 0x265   :  { %v1268_v38 = vsel %vm1267_vm9, %v1029_v15, %v1266_v59 }
 0x266   :  { %v836_v32 = vpop.permute.xlu1 %835  ;;  %v839_v24 = vpop.permute.xlu0 %838  ;;  %v1270_v3 = vsel %vm1269_vm10, %v1033_v61, %v1268_v38 }
 0x267   :  { %v1037_v37 = vrot.slane %v836_v32, %v5022_v27  ;;  %v1041_v39 = vrot.slane %v839_v24, %v5022_v27  ;;  %v1329_v7 = vsel %vm1328_vm11, %v1270_v3, 0.0 }
 0x269   :  { %v1271_v51 = vsel %vm408_vm3, %v1041_v39, %v1037_v37 }
 0x26a   :  { %v842_v41 = vpop.permute.xlu1 %841  ;;  %v845_v28 = vpop.permute.xlu0 %844 }
 0x26b   :  { %v1045_v46 = vrot.slane %v842_v41, %v5022_v27  ;;  %v1049_v52 = vrot.slane %v845_v28, %v5022_v27 }
 0x26d   :  { %v1272_v53 = vsel %vm1259_vm5, %v1045_v46, %v1271_v51 }
 0x26e   :  { %v848_v54 = vpop.permute.xlu1 %847  ;;  %v851_v36 = vpop.permute.xlu0 %850  ;;  %v1273_v49 = vsel %vm1261_vm6, %v1049_v52, %v1272_v53 }
 0x26f   :  { %v1053_v57 = vrot.slane %v848_v54, %v5022_v27  ;;  %v1057_v16 = vrot.slane %v851_v36, %v5022_v27 }
 0x271   :  { %v1274_v58 = vsel %vm1263_vm7, %v1053_v57, %v1273_v49 }
 0x272   :  { %v854_v60 = vpop.permute.xlu1 %853  ;;  %v857_v62 = vpop.permute.xlu0 %856  ;;  %v1275_v34 = vsel %vm1265_vm8, %v1057_v16, %v1274_v58 }
 0x273   :  { %v1061_v44 = vrot.slane %v854_v60, %v5022_v27  ;;  %v1065_v63 = vrot.slane %v857_v62, %v5022_v27 }
 0x275   :  { %v1276_v0 = vsel %vm1267_vm9, %v1061_v44, %v1275_v34 }
 0x276   :  { %v860_v42 = vpop.permute.xlu1 %859  ;;  %v1277_v2 = vsel %vm1269_vm10, %v1065_v63, %v1276_v0  ;;  %v863_v1 = vpop.permute.xlu0 %862 }
 0x277   :  { %v1332_v4 = vsel %vm1328_vm11, %v1277_v2, 0.0  ;;  %v1069_v6 = vrot.slane %v860_v42, %v5022_v27  ;;  %v1073_v5 = vrot.slane %v863_v1, %v5022_v27 }
 0x278   :  { %1333 = vadd.xlane.f32.xlu0 %v1332_v4 }
 0x279   :  { %v1278_v12 = vsel %vm408_vm3, %v1073_v5, %v1069_v6 }
 0x27a   :  { %v866_v8 = vpop.permute.xlu1 %865  ;;  %v869_v9 = vpop.permute.xlu0 %868 }
 0x27b   :  { %v1077_v10 = vrot.slane %v866_v8, %v5022_v27  ;;  %1330 = vadd.xlane.f32.xlu1 %v1329_v7  ;;  %v1081_v11 = vrot.slane %v869_v9, %v5022_v27 }
 0x27d   :  { %v1279_v14 = vsel %vm1259_vm5, %v1077_v10, %v1278_v12 }
 0x27e   :  { %v872_v13 = vpop.permute.xlu1 %871  ;;  %v875_v29 = vpop.permute.xlu0 %874  ;;  %v1280_v18 = vsel %vm1261_vm6, %v1081_v11, %v1279_v14 }
 0x27f   :  { %v1085_v17 = vrot.slane %v872_v13, %v5022_v27  ;;  %v1089_v19 = vrot.slane %v875_v29, %v5022_v27 }
 0x281   :  { %v1281_v20 = vsel %vm1263_vm7, %v1085_v17, %v1280_v18 }
 0x282   :  { %v878_v21 = vpop.permute.xlu1 %877  ;;  %v881_v47 = vpop.permute.xlu0 %880  ;;  %v1282_v23 = vsel %vm1265_vm8, %v1089_v19, %v1281_v20 }
 0x283   :  { %v1093_v22 = vrot.slane %v878_v21, %v5022_v27  ;;  %v1097_v32 = vrot.slane %v881_v47, %v5022_v27 }
 0x285   :  { %v1283_v33 = vsel %vm1267_vm9, %v1093_v22, %v1282_v23 }
 0x286   :  { %v884_v35 = vpop.permute.xlu1 %883  ;;  %v1284_v24 = vsel %vm1269_vm10, %v1097_v32, %v1283_v33  ;;  %v887_v48 = vpop.permute.xlu0 %886 }
 0x287   :  { %v1335_v37 = vsel %vm1328_vm11, %v1284_v24, 0.0  ;;  %v1101_v39 = vrot.slane %v884_v35, %v5022_v27  ;;  %v1105_v41 = vrot.slane %v887_v48, %v5022_v27 }
 0x288   :  { %1336 = vadd.xlane.f32.xlu0 %v1335_v37 }
 0x289   :  { %v1285_v28 = vsel %vm408_vm3, %v1105_v41, %v1101_v39 }
 0x28a   :  { %v890_v43 = vpop.permute.xlu1 %889  ;;  %v893_v46 = vpop.permute.xlu0 %892 }
 0x28b   :  { %v1109_v45 = vrot.slane %v890_v43, %v5022_v27  ;;  %v1113_v31 = vrot.slane %v893_v46, %v5022_v27 }
 0x28d   :  { %v1286_v50 = vsel %vm1259_vm5, %v1109_v45, %v1285_v28 }
 0x28e   :  { %v896_v51 = vpop.permute.xlu1 %895  ;;  %v899_v53 = vpop.permute.xlu0 %898  ;;  %v1287_v54 = vsel %vm1261_vm6, %v1113_v31, %v1286_v50 }
 0x28f   :  { %v1117_v52 = vrot.slane %v896_v51, %v5022_v27  ;;  %v1121_v55 = vrot.slane %v899_v53, %v5022_v27 }
 0x291   :  { %v1288_v56 = vsel %vm1263_vm7, %v1117_v52, %v1287_v54 }
 0x292   :  { %v902_v57 = vpop.permute.xlu1 %901  ;;  %v905_v40 = vpop.permute.xlu0 %904  ;;  %v1289_v15 = vsel %vm1265_vm8, %v1121_v55, %v1288_v56 }
 0x293   :  { %v1125_v36 = vrot.slane %v902_v57, %v5022_v27  ;;  %v1129_v49 = vrot.slane %v905_v40, %v5022_v27 }
 0x295   :  { %v1290_v16 = vsel %vm1267_vm9, %v1125_v36, %v1289_v15 }
 0x296   :  { %v908_v58 = vpop.permute.xlu1 %907  ;;  %v1291_v60 = vsel %vm1269_vm10, %v1129_v49, %v1290_v16  ;;  %v911_v59 = vpop.permute.xlu0 %910 }
 0x297   :  { %v1338_v61 = vsel %vm1328_vm11, %v1291_v60, 0.0  ;;  %v1133_v44 = vrot.slane %v908_v58, %v5022_v27  ;;  %v1137_v62 = vrot.slane %v911_v59, %v5022_v27 }
 0x298   :  { %1339 = vadd.xlane.f32.xlu0 %v1338_v61 }
 0x299   :  { %v1292_v0 = vsel %vm408_vm3, %v1137_v62, %v1133_v44 }
 0x29a   :  { %v914_v34 = vpop.permute.xlu1 %913  ;;  %v917_v38 = vpop.permute.xlu0 %916 }
 0x29b   :  { %v1141_v63 = vrot.slane %v914_v34, %v5022_v27  ;;  %v1145_v42 = vrot.slane %v917_v38, %v5022_v27 }
 0x29d   :  { %v1293_v2 = vsel %vm1259_vm5, %v1141_v63, %v1292_v0 }
 0x29e   :  { %v920_v1 = vpop.permute.xlu1 %919  ;;  %v923_v3 = vpop.permute.xlu0 %922  ;;  %v1294_v6 = vsel %vm1261_vm6, %v1145_v42, %v1293_v2 }
 0x29f   :  { %v1149_v4 = vrot.slane %v920_v1, %v5022_v27  ;;  %v1153_v5 = vrot.slane %v923_v3, %v5022_v27 }
 0x2a1   :  { %v1295_v8 = vsel %vm1263_vm7, %v1149_v4, %v1294_v6 }
 0x2a2   :  { %v926_v7 = vpop.permute.xlu1 %925  ;;  %v929_v9 = vpop.permute.xlu0 %928  ;;  %v1296_v12 = vsel %vm1265_vm8, %v1153_v5, %v1295_v8 }
 0x2a3   :  { %v1157_v10 = vrot.slane %v926_v7, %v5022_v27  ;;  %v1161_v11 = vrot.slane %v929_v9, %v5022_v27 }
 0x2a5   :  { %v1297_v14 = vsel %vm1267_vm9, %v1157_v10, %v1296_v12 }
 0x2a6   :  { %v932_v13 = vpop.permute.xlu1 %931  ;;  %v1298_v17 = vsel %vm1269_vm10, %v1161_v11, %v1297_v14  ;;  %v935_v29 = vpop.permute.xlu0 %934 }
 0x2a7   :  { %v1341_v18 = vsel %vm1328_vm11, %v1298_v17, 0.0  ;;  %v1165_v19 = vrot.slane %v932_v13, %v5022_v27  ;;  %v1169_v20 = vrot.slane %v935_v29, %v5022_v27 }
 0x2a8   :  { %1342 = vadd.xlane.f32.xlu1 %v1341_v18 }
 0x2a9   :  { %v1299_v23 = vsel %vm408_vm3, %v1169_v20, %v1165_v19 }
 0x2aa   :  { %v938_v21 = vpop.permute.xlu1 %937  ;;  %v941_v47 = vpop.permute.xlu0 %940 }
 0x2ab   :  { %v1173_v22 = vrot.slane %v938_v21, %v5022_v27  ;;  %v1177_v32 = vrot.slane %v941_v47, %v5022_v27 }
 0x2ad   :  { %v1300_v33 = vsel %vm1259_vm5, %v1173_v22, %v1299_v23 }
 0x2ae   :  { %v944_v35 = vpop.permute.xlu1 %943  ;;  %v947_v48 = vpop.permute.xlu0 %946  ;;  %v1301_v37 = vsel %vm1261_vm6, %v1177_v32, %v1300_v33 }
 0x2af   :  { %v1181_v24 = vrot.slane %v944_v35, %v5022_v27  ;;  %v1185_v39 = vrot.slane %v947_v48, %v5022_v27 }
 0x2b1   :  { %v1302_v41 = vsel %vm1263_vm7, %v1181_v24, %v1301_v37 }
 0x2b2   :  { %v950_v43 = vpop.permute.xlu1 %949  ;;  %v953_v46 = vpop.permute.xlu0 %952  ;;  %v1303_v28 = vsel %vm1265_vm8, %v1185_v39, %v1302_v41 }
 0x2b3   :  { %v1189_v45 = vrot.slane %v950_v43, %v5022_v27  ;;  %v1193_v31 = vrot.slane %v953_v46, %v5022_v27 }
 0x2b5   :  { %v1304_v50 = vsel %vm1267_vm9, %v1189_v45, %v1303_v28 }
 0x2b6   :  { %v956_v51 = vpop.permute.xlu1 %955  ;;  %v1305_v52 = vsel %vm1269_vm10, %v1193_v31, %v1304_v50  ;;  %v959_v53 = vpop.permute.xlu0 %958 }
 0x2b7   :  { %v1344_v54 = vsel %vm1328_vm11, %v1305_v52, 0.0  ;;  %v1197_v55 = vrot.slane %v956_v51, %v5022_v27  ;;  %v1201_v56 = vrot.slane %v959_v53, %v5022_v27 }
 0x2b8   :  { %1345 = vadd.xlane.f32.xlu0 %v1344_v54 }
 0x2b9   :  { %v1306_v15 = vsel %vm408_vm3, %v1201_v56, %v1197_v55 }
 0x2ba   :  { %v962_v57 = vpop.permute.xlu1 %961  ;;  %v965_v40 = vpop.permute.xlu0 %964 }
 0x2bb   :  { %v1205_v36 = vrot.slane %v962_v57, %v5022_v27  ;;  %v1209_v49 = vrot.slane %v965_v40, %v5022_v27  ;;  %v4736_v40 = vld [vmem:[#allocation3] sm:$0xff] }
 0x2bd   :  { %v1307_v16 = vsel %vm1259_vm5, %v1205_v36, %v1306_v15 }
 0x2be   :  { %v968_v58 = vpop.permute.xlu1 %967  ;;  %v971_v59 = vpop.permute.xlu0 %970  ;;  %v1308_v61 = vsel %vm1261_vm6, %v1209_v49, %v1307_v16  ;;  %v4737_v49 = vld [vmem:[#allocation3 + $0x10] sm:$0xff] }
 0x2bf   :  { %v1213_v60 = vrot.slane %v968_v58, %v5022_v27  ;;  %v1217_v44 = vrot.slane %v971_v59, %v5022_v27  ;;  %v4738_v58 = vld [vmem:[#allocation3 + $0x20] sm:$0xff] }
 0x2c1   :  { %v1309_v62 = vsel %vm1263_vm7, %v1213_v60, %v1308_v61 }
 0x2c2   :  { %v974_v34 = vpop.permute.xlu1 %973  ;;  %v977_v38 = vpop.permute.xlu0 %976  ;;  %v1310_v0 = vsel %vm1265_vm8, %v1217_v44, %v1309_v62  ;;  %v4739_v62 = vld [vmem:[#allocation3 + $0x30] sm:$0xff] }
 0x2c3   :  { %v1221_v63 = vrot.slane %v974_v34, %v5022_v27  ;;  %v1225_v42 = vrot.slane %v977_v38, %v5022_v27 }
 0x2c5   :  { %v1311_v2 = vsel %vm1267_vm9, %v1221_v63, %v1310_v0 }
 0x2c6   :  { %v980_v1 = vpop.permute.xlu1 %979  ;;  %v1312_v4 = vsel %vm1269_vm10, %v1225_v42, %v1311_v2  ;;  %v983_v3 = vpop.permute.xlu0 %982  ;;  %v4740_v2 = vld [vmem:[#allocation3 + $0x8] sm:$0xff] }
 0x2c7   :  { %v1347_v6 = vsel %vm1328_vm11, %v1312_v4, 0.0  ;;  %v1229_v5 = vrot.slane %v980_v1, %v5022_v27  ;;  %v1233_v8 = vrot.slane %v983_v3, %v5022_v27  ;;  %v4741_v3 = vld [vmem:[#allocation3 + $0x18] sm:$0xff] }
 0x2c8   :  { %1348 = vadd.xlane.f32.xlu1 %v1347_v6 }
 0x2c9   :  { %v1313_v12 = vsel %vm408_vm3, %v1233_v8, %v1229_v5  ;;  %v4742_v5 = vld [vmem:[#allocation3 + $0x28] sm:$0xff] }
 0x2ca   :  { %v986_v7 = vpop.permute.xlu1 %985  ;;  %v989_v9 = vpop.permute.xlu0 %988 }
 0x2cb   :  { %v1237_v10 = vrot.slane %v986_v7, %v5022_v27  ;;  %v1241_v11 = vrot.slane %v989_v9, %v5022_v27  ;;  %v4743_v9 = vld [vmem:[#allocation3 + $0x38] sm:$0xff] }
 0x2cd   :  { %v1314_v14 = vsel %vm1259_vm5, %v1237_v10, %v1313_v12  ;;  %vm4448_vm5 = vcmask 916480  }
 0x2ce   :  { %v992_v13 = vpop.permute.xlu1 %991  ;;  %v995_v29 = vpop.permute.xlu0 %994  ;;  %v1315_v18 = vsel %vm1261_vm6, %v1241_v11, %v1314_v14 }
 0x2cf   :  { %v1245_v17 = vrot.slane %v992_v13, %v5022_v27  ;;  %v1249_v19 = vrot.slane %v995_v29, %v5022_v27 }
 0x2d1   :  { %v1316_v20 = vsel %vm1263_vm7, %v1245_v17, %v1315_v18 }
 0x2d2   :  { %v998_v21 = vpop.permute.xlu1 %997  ;;  %v1001_v47 = vpop.permute.xlu0 %1000  ;;  %v1317_v23 = vsel %vm1265_vm8, %v1249_v19, %v1316_v20 }
 0x2d3   :  { %v1253_v22 = vrot.slane %v998_v21, %v5022_v27  ;;  %v1257_v32 = vrot.slane %v1001_v47, %v5022_v27 }
 0x2d5   :  { %v1318_v33 = vsel %vm1267_vm9, %v1253_v22, %v1317_v23 }
 0x2d6   :  { %v1319_v35 = vsel %vm1269_vm10, %v1257_v32, %v1318_v33 }
 0x2d7   :  { %v1350_v24 = vsel %vm1328_vm11, %v1319_v35, 0.0 }
 0x2d8   :  { %1351 = vadd.xlane.f32.xlu0 %v1350_v24 }
 0x301   :  { %v1334_v48 = vpop.xlane.xlu0 %1333 }
 0x302   :  { %v4662_v43 = vmul.f32 -1.442695, %v1334_v48 }
 0x304   :  { %v1331_v37 = vpop.xlane.xlu1 %1330 }
 0x305   :  { %v4661_v41 = vmul.f32 -1.442695, %v1331_v37 }
 0x307   :  { %4696 = vpow2.f32 %v4661_v41 }
 0x308   :  { %4698 = vpow2.f32 %v4662_v43 }
 0x311   :  { %v1337_v39 = vpop.xlane.xlu0 %1336 }
 0x312   :  { %v4663_v45 = vmul.f32 -1.442695, %v1337_v39 }
 0x314   :  { %4700 = vpow2.f32 %v4663_v45  ;;  %v4697_v27 = vpop.eup %4696 }
 0x315   :  { %v4699_v31 = vpop.eup %4698  ;;  %v1377_v51 = vadd.f32 1.0, %v4697_v27 }
 0x316   :  { %v1378_v52 = vadd.f32 1.0, %v4699_v31 }
 0x321   :  { %v1340_v46 = vpop.xlane.xlu0 %1339  ;;  %v4701_v50 = vpop.eup %4700 }
 0x322   :  { %v4664_v28 = vmul.f32 -1.442695, %v1340_v46  ;;  %v1379_v53 = vadd.f32 1.0, %v4701_v50 }
 0x324   :  { %4702 = vpow2.f32 %v4664_v28 }
 0x325   :  { %4704 = vrcp.f32 %v1377_v51 }
 0x326   :  { %4706 = vrcp.f32 %v1378_v52 }
 0x327   :  { %4708 = vrcp.f32 %v1379_v53 }
 0x331   :  { %v4703_v54 = vpop.eup %4702  ;;  %v1343_v14 = vpop.xlane.xlu1 %1342 }
 0x332   :  { %v1380_v55 = vadd.f32 1.0, %v4703_v54  ;;  %v4705_v56 = vpop.eup %4704  ;;  %v4665_v20 = vmul.f32 -1.442695, %v1343_v14 }
 0x333   :  { %v4707_v57 = vpop.eup %4706  ;;  %v5321_v15 = vmul.f32 %v4736_v40, %v4705_v56  ;;  %v5333_v1 = vmul.f32 %v4740_v2, %v4705_v56  ;;  %v4744_v40 = vld [vmem:[#allocation3 + $0x50] sm:$0xff]  ;;  %v4749_v2 = vld [vmem:[#allocation3 + $0x68] sm:$0xff] }
 0x334   :  { %4710 = vrcp.f32 %v1380_v55  ;;  %v4709_v36 = vpop.eup %4708  ;;  %v5323_v16 = vmul.f32 %v4737_v49, %v4707_v57  ;;  %v5335_v6 = vmul.f32 %v4741_v3, %v4707_v57 }
 0x335   :  { %7621 = vst [vmem:[#allocation15_spill] sm:$0xff] %v5321_v15  ;;  %v5325_v60 = vmul.f32 %v4738_v58, %v4709_v36  ;;  %7625 = vst [vmem:[#allocation19_spill] sm:$0xff] %v5333_v1  ;;  %v5337_v8 = vmul.f32 %v4742_v5, %v4709_v36  ;;  %v4745_v58 = vld [vmem:[#allocation3 + $0x58] sm:$0xff] }
 0x336   :  { %7622 = vst [vmem:[#allocation16_spill] sm:$0xff] %v5323_v16  ;;  %v1458_v59 = vmax.f32 %v5321_v15, %v5323_v16  ;;  %7626 = vst [vmem:[#allocation20_spill] sm:$0xff] %v5335_v6  ;;  %v1467_v10 = vmax.f32 %v5333_v1, %v5335_v6  ;;  %v1417_v37 = vadd.f32 %v5323_v16, %v5321_v15 }
 0x337   :  { %7623 = vst [vmem:[#allocation17_spill] sm:$0xff] %v5325_v60  ;;  %7627 = vst [vmem:[#allocation21_spill] sm:$0xff] %v5337_v8 }
 0x338   :  { %v1459_v44 = vmax.f32 %v1458_v59, %v5325_v60  ;;  %v1468_v13 = vmax.f32 %v1467_v10, %v5337_v8  ;;  %v1418_v43 = vadd.f32 %v1417_v37, %v5325_v60 }
 0x341   :  { %v4711_v61 = vpop.eup %4710  ;;  %v1346_v17 = vpop.xlane.xlu0 %1345 }
 0x342   :  { %v5330_v34 = vmul.f32 %v4739_v62, %v4711_v61  ;;  %v5341_v12 = vmul.f32 %v4743_v9, %v4711_v61  ;;  %v4666_v19 = vmul.f32 -1.442695, %v1346_v17 }
 0x344   :  { %7624 = vst [vmem:[#allocation18_spill] sm:$0xff] %v5330_v34  ;;  %v1460_v63 = vmax.f32 %v1459_v44, %v5330_v34  ;;  %7628 = vst [vmem:[#allocation22_spill] sm:$0xff] %v5341_v12  ;;  %v1469_v29 = vmax.f32 %v1468_v13, %v5341_v12  ;;  %4712 = vpow2.f32 %v4666_v19  ;;  %v1419_v28 = vadd.f32 %v1418_v43, %v5330_v34  ;;  %v4746_v44 = vld [vmem:[#allocation3 + $0x40] sm:$0xff]  ;;  %v4751_v19 = vld [vmem:[#allocation3 + $0x78] sm:$0xff] }
 0x345   :  { %4714 = vpow2.f32 %v4665_v20 }
 0x346   :  { %v1461_v38 = vrot.slane %v1460_v63, 4  ;;  %v1470_v21 = vrot.slane %v1469_v29, 4  ;;  %v1420_v50 = vrot.slane %v1419_v28, 4 }
 0x348   :  { %v1462_v0 = vmax.f32 %v1460_v63, %v1461_v38  ;;  %v1471_v47 = vmax.f32 %v1469_v29, %v1470_v21  ;;  %v1421_v52 = vadd.f32 %v1420_v50, %v1419_v28  ;;  %v4747_v63 = vld [vmem:[#allocation3 + $0x60] sm:$0xff]  ;;  %v4750_v29 = vld [vmem:[#allocation3 + $0x70] sm:$0xff] }
 0x34a   :  { %v1463_v42 = vrot.slane %v1462_v0, 2  ;;  %v1472_v23 = vrot.slane %v1471_v47, 2  ;;  %v1422_v54 = vrot.slane %v1421_v52, 2 }
 0x34c   :  { %v1464_v4 = vmax.f32 %v1462_v0, %v1463_v42  ;;  %v1473_v35 = vmax.f32 %v1471_v47, %v1472_v23  ;;  %v1423_v57 = vadd.f32 %v1422_v54, %v1421_v52  ;;  %v4748_v0 = vld [vmem:[#allocation3 + $0x48] sm:$0xff] }
 0x34e   :  { %v1465_v7 = vrot.slane %v1464_v4, 1  ;;  %v1474_v39 = vrot.slane %v1473_v35, 1  ;;  %v1424_v61 = vrot.slane %v1423_v57, 1 }
 0x350   :  { %v5343_v11 = vmax.f32 %v1464_v4, %v1465_v7  ;;  %v5365_v27 = vmax.f32 %v1473_v35, %v1474_v39  ;;  %v1425_v9 = vadd.f32 %v1424_v61, %v1423_v57  ;;  %v1426_v39 = vadd.f32 %v5335_v6, %v5333_v1 }
 0x351   :  { %v1349_v18 = vpop.xlane.xlu1 %1348  ;;  %v4713_v24 = vpop.eup %4712 }
 0x352   :  { %1739 = vrot.lane.b32.xlu1 %v5343_v11, %s4832_s2  ;;  %v4667_v22 = vmul.f32 -1.442695, %v1349_v18  ;;  %v4715_v48 = vpop.eup %4714  ;;  %v1382_v45 = vadd.f32 1.0, %v4713_v24  ;;  %v5409_v23 = vmul.f32 0.03125, %v1425_v9 }
 0x353   :  { %v1381_v46 = vadd.f32 1.0, %v4715_v48 }
 0x354   :  { %4716 = vpow2.f32 %v4667_v22 }
 0x356   :  { %1743 = vrot.lane.b32.xlu1 %v5343_v11, %s4833_s8 }
 0x35a   :  { %1747 = vrot.lane.b32.xlu1 %v5343_v11, %s4834_s9 }
 0x35e   :  { %1751 = vrot.lane.b32.xlu1 %v5343_v11, %s4835_s10 }
 0x361   :  { %v1352_v32 = vpop.xlane.xlu0 %1351  ;;  %v4717_v41 = vpop.eup %4716 }
 0x362   :  { %v4668_v33 = vmul.f32 -1.442695, %v1352_v32  ;;  %1755 = vrot.lane.b32.xlu1 %v5343_v11, %s4836_s11  ;;  %v1383_v31 = vadd.f32 1.0, %v4717_v41 }
 0x364   :  { %4718 = vpow2.f32 %v4668_v33 }
 0x365   :  { %4720 = vrcp.f32 %v1382_v45 }
 0x366   :  { %1759 = vrot.lane.b32.xlu1 %v5343_v11, %s4837_s12  ;;  %4722 = vrcp.f32 %v1381_v46  ;;  %v1427_v46 = vadd.f32 %v1426_v39, %v5337_v8 }
 0x367   :  { %4724 = vrcp.f32 %v1383_v31 }
 0x36a   :  { %1763 = vrot.lane.b32.xlu1 %v5343_v11, %s4829_s22 }
 0x36e   :  { %1769 = vrot.lane.b32.xlu1 %v5365_v27, %s4832_s2 }
 0x371   :  { %v4719_v51 = vpop.eup %4718 }
 0x372   :  { %1773 = vrot.lane.b32.xlu1 %v5365_v27, %s4833_s8  ;;  %v1384_v53 = vadd.f32 1.0, %v4719_v51  ;;  %v4721_v55 = vpop.eup %4720  ;;  %v1428_v51 = vadd.f32 %v1427_v46, %v5341_v12 }
 0x373   :  { %v4723_v56 = vpop.eup %4722  ;;  %v5375_v49 = vmul.f32 %v4744_v40, %v4721_v55  ;;  %v5379_v59 = vmul.f32 %v4745_v58, %v4721_v55 }
 0x374   :  { %4726 = vrcp.f32 %v1384_v53  ;;  %v4725_v36 = vpop.eup %4724  ;;  %v5381_v62 = vmul.f32 %v4746_v44, %v4723_v56  ;;  %v5385_v42 = vmul.f32 %v4748_v0, %v4723_v56 }
 0x375   :  { %7629 = vst [vmem:[#allocation23_spill] sm:$0xff] %v5375_v49  ;;  %7630 = vst [vmem:[#allocation24_spill] sm:$0xff] %v5379_v59  ;;  %v5383_v38 = vmul.f32 %v4747_v63, %v4725_v36  ;;  %v5387_v4 = vmul.f32 %v4749_v2, %v4725_v36  ;;  %v1429_v36 = vrot.slane %v1428_v51, 4 }
 0x376   :  { %1777 = vrot.lane.b32.xlu1 %v5365_v27, %s4834_s9  ;;  %7631 = vst [vmem:[#allocation25_spill] sm:$0xff] %v5381_v62  ;;  %7633 = vst [vmem:[#allocation27_spill] sm:$0xff] %v5385_v42  ;;  %v1435_v3 = vadd.f32 %v5375_v49, %v5381_v62  ;;  %v1476_v5 = vmax.f32 %v5381_v62, %v5375_v49  ;;  %v1485_v7 = vmax.f32 %v5385_v42, %v5379_v59 }
 0x377   :  { %7632 = vst [vmem:[#allocation26_spill] sm:$0xff] %v5383_v38  ;;  %7634 = vst [vmem:[#allocation28_spill] sm:$0xff] %v5387_v4  ;;  %v1430_v44 = vadd.f32 %v1429_v36, %v1428_v51 }
 0x378   :  { %v1436_v14 = vadd.f32 %v1435_v3, %v5383_v38  ;;  %v1477_v13 = vmax.f32 %v1476_v5, %v5383_v38  ;;  %v1486_v17 = vmax.f32 %v1485_v7, %v5387_v4  ;;  %v1444_v5 = vadd.f32 %v5379_v59, %v5385_v42 }
 0x379   :  { %v1431_v63 = vrot.slane %v1430_v44, 2 }
 0x37a   :  { %1781 = vrot.lane.b32.xlu1 %v5365_v27, %s4835_s10  ;;  %v1445_v7 = vadd.f32 %v1444_v5, %v5387_v4 }
 0x37b   :  { %v1432_v0 = vadd.f32 %v1431_v63, %v1430_v44 }
 0x37e   :  { %1785 = vrot.lane.b32.xlu1 %v5365_v27, %s4836_s11 }
 0x381   :  { %v4727_v10 = vpop.eup %4726 }
 0x382   :  { %1789 = vrot.lane.b32.xlu1 %v5365_v27, %s4837_s12  ;;  %v5400_v18 = vmul.f32 %v4750_v29, %v4727_v10  ;;  %v5402_v20 = vmul.f32 %v4751_v19, %v4727_v10 }
 0x384   :  { %7635 = vst [vmem:[#allocation29_spill] sm:$0xff] %v5400_v18  ;;  %7636 = vst [vmem:[#allocation30_spill] sm:$0xff] %v5402_v20  ;;  %v1437_v21 = vadd.f32 %v1436_v14, %v5400_v18  ;;  %v1478_v22 = vmax.f32 %v1477_v13, %v5400_v18  ;;  %v1487_v47 = vmax.f32 %v1486_v17, %v5402_v20 }
 0x385   :  { %v1446_v10 = vadd.f32 %v1445_v7, %v5402_v20 }
 0x386   :  { %1793 = vrot.lane.b32.xlu1 %v5365_v27, %s4829_s22  ;;  %v1438_v32 = vrot.slane %v1437_v21, 4  ;;  %v1479_v33 = vrot.slane %v1478_v22, 4  ;;  %v1488_v35 = vrot.slane %v1487_v47, 4 }
 0x387   :  { %v1447_v9 = vrot.slane %v1446_v10, 4 }
 0x388   :  { %v1439_v24 = vadd.f32 %v1438_v32, %v1437_v21  ;;  %v1480_v48 = vmax.f32 %v1478_v22, %v1479_v33  ;;  %v1489_v37 = vmax.f32 %v1487_v47, %v1488_v35 }
 0x389   :  { %v1448_v13 = vadd.f32 %v1447_v9, %v1446_v10 }
 0x38a   :  { %1510 = vrot.lane.b32.xlu1 %v5409_v23, %s4832_s2  ;;  %v1440_v41 = vrot.slane %v1439_v24, 2  ;;  %v1481_v43 = vrot.slane %v1480_v48, 2  ;;  %v1490_v45 = vrot.slane %v1489_v37, 2 }
 0x38b   :  { %v1449_v29 = vrot.slane %v1448_v13, 2 }
 0x38c   :  { %v1441_v28 = vadd.f32 %v1440_v41, %v1439_v24  ;;  %v1482_v31 = vmax.f32 %v1480_v48, %v1481_v43  ;;  %v1491_v50 = vmax.f32 %v1489_v37, %v1490_v45  ;;  %v7585_v43 = vmov 0.0  }
 0x38d   :  { %v1450_v19 = vadd.f32 %v1449_v29, %v1448_v13  ;;  %1502 = vst.msk [vmem:[#allocation2 + $0x30] sm:$0xff] %vm1494_vm12, %v7585_v43  ;;  %1503 = vst.msk [vmem:[#allocation2 + $0x38] sm:$0xff] %vm1494_vm12, %v7585_v43  ;;  %v4840_v29 = vmov 1934713408  }
 0x38e   :  { %1514 = vrot.lane.b32.xlu1 %v5409_v23, %s4833_s8  ;;  %v1442_v52 = vrot.slane %v1441_v28, 1  ;;  %v1483_v53 = vrot.slane %v1482_v31, 1  ;;  %v1492_v54 = vrot.slane %v1491_v50, 1  ;;  %1495 = vst.msk [vmem:[#allocation2] sm:$0xff] %vm1494_vm12, %v7585_v43  ;;  %1496 = vst.msk [vmem:[#allocation2 + $0x8] sm:$0xff] %vm1494_vm12, %v7585_v43 }
 0x38f   :  { %v1451_v22 = vrot.slane %v1450_v19, 1  ;;  %1499 = vst.msk [vmem:[#allocation2 + $0x18] sm:$0xff] %vm1494_vm12, %v7585_v43  ;;  %1500 = vst.msk [vmem:[#allocation2 + $0x20] sm:$0xff] %vm1494_vm12, %v7585_v43 }
 0x390   :  { %v1443_v55 = vadd.f32 %v1442_v52, %v1441_v28  ;;  %v5419_v56 = vmax.f32 %v1482_v31, %v1483_v53  ;;  %v1493_v57 = vmax.f32 %v1491_v50, %v1492_v54  ;;  %1505 = vst.msk [vmem:[#allocation2 + $0x48] sm:$0xff] %vm1494_vm12, %v7585_v43  ;;  %1506 = vst.msk [vmem:[#allocation2 + $0x50] sm:$0xff] %vm1494_vm12, %v7585_v43  ;;  %v4839_v54 = vmov 1983009808  }
 0x391   :  { %v1452_v32 = vadd.f32 %v1451_v22, %v1450_v19  ;;  %v1650_v19 = vunpack.c.l.s4 %v4840_v29  ;;  %1504 = vst.msk [vmem:[#allocation2 + $0x40] sm:$0x3f] %vm1497_vm13, %v7585_v43  ;;  %1498 = vst.msk [vmem:[#allocation2 + $0x10] sm:$0x3f] %vm1497_vm13, %v7585_v43 }
 0x392   :  { %v5421_v40 = vmul.f32 0.03125, %v1443_v55  ;;  %1741 = vrot.lane.b32.xlu0 %v5419_v56, %s4832_s2  ;;  %v1813_v58 = vrot.slane %v1493_v57, 7  ;;  %v1618_v55 = vunpack.c.l.s4 %v4839_v54  ;;  %v1797_v63 = vrot.slane %v5419_v56, 7  ;;  %1501 = vst.msk [vmem:[#allocation2 + $0x28] sm:$0x3f] %vm1497_vm13, %v7585_v43 }
 0x393   :  { %v5492_v33 = vmul.f32 0.03125, %v1452_v32  ;;  %v1651_v54 = vunpack.c.0.s8 %v1650_v19  ;;  %1507 = vst.msk [vmem:[#allocation2 + $0x58] sm:$0x3f] %vm1497_vm13, %v7585_v43 }
 0x394   :  { %1516 = vrot.lane.b32.xlu1 %v5421_v40, %s4833_s8  ;;  %v5429_v61 = vsel %vm408_vm3, %v1813_v58, %v5365_v27  ;;  %v1433_v27 = vrot.slane %v1432_v0, 1  ;;  %v1798_v22 = vsel %vm408_vm3, %v1797_v63, %v5343_v11 }
 0x396   :  { %1745 = vrot.lane.b32.xlu0 %v5419_v56, %s4833_s8  ;;  %v1434_v2 = vadd.f32 %v1433_v27, %v1432_v0  ;;  %v1619_v27 = vunpack.c.0.s8 %v1618_v55 }
 0x398   :  { %1518 = vrot.lane.b32.xlu1 %v5409_v23, %s4834_s9  ;;  %v5451_v3 = vmul.f32 0.03125, %v1434_v2 }
 0x39a   :  { %1749 = vrot.lane.b32.xlu0 %v5419_v56, %s4834_s9 }
 0x39c   :  { %1522 = vrot.lane.b32.xlu1 %v5409_v23, %s4835_s10 }
 0x39e   :  { %1753 = vrot.lane.b32.xlu0 %v5419_v56, %s4835_s10 }
 0x3a0   :  { %1526 = vrot.lane.b32.xlu1 %v5409_v23, %s4836_s11 }
 0x3a2   :  { %1757 = vrot.lane.b32.xlu0 %v5419_v56, %s4836_s11 }
 0x3a4   :  { %1530 = vrot.lane.b32.xlu1 %v5409_v23, %s4837_s12 }
 0x3a6   :  { %1761 = vrot.lane.b32.xlu0 %v5419_v56, %s4837_s12 }
 0x3a8   :  { %1534 = vrot.lane.b32.xlu1 %v5409_v23, %s4829_s22 }
 0x3aa   :  { %1765 = vrot.lane.b32.xlu0 %v5419_v56, %s4829_s22  ;;  %v5538_v56 = vsub.s32 %v1619_v27, %v4885_v25  ;;  %v5552_v27 = vsub.s32 %v1651_v54, %v4885_v25 }
 0x3ac   :  { %1540 = vrot.lane.b32.xlu1 %v5451_v3, %s4832_s2  ;;  %7637 = vst [vmem:[#allocation31_spill] sm:$0xff] %v5538_v56  ;;  %7638 = vst [vmem:[#allocation32_spill] sm:$0xff] %v5552_v27 }
 0x3ae   :  { %1771 = vrot.lane.b32.xlu0 %v1493_v57, %s4832_s2 }
 0x3b0   :  { %1544 = vrot.lane.b32.xlu1 %v5451_v3, %s4833_s8 }
 0x3b2   :  { %1775 = vrot.lane.b32.xlu0 %v1493_v57, %s4833_s8 }
 0x3b4   :  { %1548 = vrot.lane.b32.xlu1 %v5451_v3, %s4834_s9 }
 0x3b6   :  { %1779 = vrot.lane.b32.xlu0 %v1493_v57, %s4834_s9 }
 0x3b8   :  { %1552 = vrot.lane.b32.xlu1 %v5451_v3, %s4835_s10 }
 0x3ba   :  { %1783 = vrot.lane.b32.xlu0 %v1493_v57, %s4835_s10 }
 0x3bc   :  { %1556 = vrot.lane.b32.xlu1 %v5451_v3, %s4836_s11 }
 0x3be   :  { %1787 = vrot.lane.b32.xlu0 %v1493_v57, %s4836_s11 }
 0x3c0   :  { %1560 = vrot.lane.b32.xlu1 %v5451_v3, %s4837_s12 }
 0x3c2   :  { %1791 = vrot.lane.b32.xlu0 %v1493_v57, %s4837_s12 }
 0x3c4   :  { %1564 = vrot.lane.b32.xlu1 %v5451_v3, %s4829_s22  ;;  %v1740_v14 = vpop.permute.xlu1 %1739 }
 0x3c6   :  { %1795 = vrot.lane.b32.xlu0 %v1493_v57, %s4829_s22 }
 0x3c8   :  { %v1744_v17 = vpop.permute.xlu1 %1743 }
 0x3ca   :  { %1512 = vrot.lane.b32.xlu0 %v5421_v40, %s4832_s2 }
 0x3cc   :  { %v1748_v21 = vpop.permute.xlu1 %1747 }
 0x3ce   :  { %1520 = vrot.lane.b32.xlu0 %v5421_v40, %s4834_s9 }
 0x3d0   :  { %v1752_v47 = vpop.permute.xlu1 %1751 }
 0x3d2   :  { %1524 = vrot.lane.b32.xlu0 %v5421_v40, %s4835_s10 }
 0x3d4   :  { %v1756_v35 = vpop.permute.xlu1 %1755 }
 0x3d6   :  { %1528 = vrot.lane.b32.xlu0 %v5421_v40, %s4836_s11 }
 0x3d8   :  { %v1760_v24 = vpop.permute.xlu1 %1759 }
 0x3da   :  { %1532 = vrot.lane.b32.xlu0 %v5421_v40, %s4837_s12 }
 0x3dc   :  { %v1764_v48 = vpop.permute.xlu1 %1763 }
 0x3de   :  { %1536 = vrot.lane.b32.xlu0 %v5421_v40, %s4829_s22 }
 0x3e0   :  { %v5502_v37 = vpop.permute.xlu1 %1769 }
 0x3e2   :  { %1542 = vrot.lane.b32.xlu0 %v5492_v33, %s4832_s2 }
 0x3e4   :  { %v5508_v39 = vpop.permute.xlu1 %1773 }
 0x3e6   :  { %1546 = vrot.lane.b32.xlu0 %v5492_v33, %s4833_s8 }
 0x3e8   :  { %v5512_v41 = vpop.permute.xlu1 %1777 }
 0x3ea   :  { %1550 = vrot.lane.b32.xlu0 %v5492_v33, %s4834_s9 }
 0x3ec   :  { %v5522_v45 = vpop.permute.xlu1 %1781 }
 0x3ee   :  { %1554 = vrot.lane.b32.xlu0 %v5492_v33, %s4835_s10 }
 0x3f0   :  { %v5524_v31 = vpop.permute.xlu1 %1785 }
 0x3f2   :  { %1558 = vrot.lane.b32.xlu0 %v5492_v33, %s4836_s11 }
 0x3f4   :  { %v5526_v51 = vpop.permute.xlu1 %1789 }
 0x3f6   :  { %1562 = vrot.lane.b32.xlu0 %v5492_v33, %s4837_s12 }
 0x3f8   :  { %v5528_v44 = vpop.permute.xlu1 %1793 }
 0x3fa   :  { %1566 = vrot.lane.b32.xlu0 %v5492_v33, %s4829_s22 }
 0x404   :  { %v1742_v46 = vpop.permute.xlu0 %1741 }
 0x405   :  { %v1799_v36 = vrot.slane %v1742_v46, 7 }
 0x407   :  { %v1800_v5 = vsel %vm408_vm3, %v1799_v36, %v1740_v14 }
 0x408   :  { %v1746_v28 = vpop.permute.xlu0 %1745 }
 0x409   :  { %v1801_v58 = vrot.slane %v1746_v28, 7 }
 0x40b   :  { %v1802_v7 = vsel %vm408_vm3, %v1801_v58, %v1744_v17 }
 0x40c   :  { %v1750_v50 = vpop.permute.xlu0 %1749  ;;  %v1845_v28 = vcombine.low %v1798_v22, %v1802_v7 }
 0x40d   :  { %v1803_v53 = vrot.slane %v1750_v50, 7 }
 0x40f   :  { %v1804_v0 = vsel %vm408_vm3, %v1803_v53, %v1748_v21  ;;  %v5540_v21 = vpop.permute.xlu1 %1510 }
 0x410   :  { %v1754_v52 = vpop.permute.xlu0 %1753  ;;  %v1853_v13 = vcombine.low %v1800_v5, %v1804_v0 }
 0x411   :  { %v1805_v10 = vrot.slane %v1754_v52, 7 }
 0x412   :  { %v1860_v52 = vrot.slane %v1853_v13, %v5538_v56 }
 0x413   :  { %v1806_v17 = vsel %vm408_vm3, %v1805_v10, %v1752_v47  ;;  %v5547_v58 = vpop.permute.xlu1 %1514 }
 0x414   :  { %v1758_v57 = vpop.permute.xlu0 %1757 }
 0x415   :  { %v1807_v32 = vrot.slane %v1758_v57, 7 }
 0x417   :  { %v1808_v55 = vsel %vm408_vm3, %v1807_v32, %v1756_v35  ;;  %v5554_v7 = vpop.permute.xlu1 %1516 }
 0x418   :  { %v1762_v2 = vpop.permute.xlu0 %1761 }
 0x419   :  { %v1809_v9 = vrot.slane %v1762_v2, 7 }
 0x41b   :  { %v1810_v46 = vsel %vm408_vm3, %v1809_v9, %v1760_v24  ;;  %v1852_v24 = vrot.slane %v1845_v28, %v5538_v56  ;;  %v1519_v13 = vpop.permute.xlu1 %1518 }
 0x41c   :  { %v1766_v14 = vpop.permute.xlu0 %1765  ;;  %v1861_v53 = vcombine.low %v1806_v17, %v1810_v46 }
 0x41d   :  { %v1811_v50 = vrot.slane %v1766_v14, 7  ;;  %v1877_v63 = vcombine.low %v1852_v24, %v1860_v52 }
 0x41e   :  { %v1868_v0 = vrot.slane %v1861_v53, %v5538_v56 }
 0x41f   :  { %v1812_v11 = vsel %vm408_vm3, %v1811_v50, %v1764_v48  ;;  %v1884_v35 = vrot.slane %v1877_v63, %v5552_v27  ;;  %v1523_v14 = vpop.permute.xlu1 %1522 }
 0x420   :  { %v1869_v57 = vcombine.low %v1808_v55, %v1812_v11  ;;  %v1772_v36 = vpop.permute.xlu0 %1771 }
 0x421   :  { %v1815_v46 = vrot.slane %v1772_v36, 7 }
 0x422   :  { %v1876_v47 = vrot.slane %v1869_v57, %v5538_v56 }
 0x423   :  { %v1816_v52 = vsel %vm408_vm3, %v1815_v46, %v5502_v37  ;;  %v1527_v36 = vpop.permute.xlu1 %1526 }
 0x424   :  { %v1885_v2 = vcombine.low %v1868_v0, %v1876_v47  ;;  %v1776_v5 = vpop.permute.xlu0 %1775 }
 0x425   :  { %v1817_v28 = vrot.slane %v1776_v5, 7 }
 0x426   :  { %v1892_v48 = vrot.slane %v1885_v2, %v5552_v27 }
 0x427   :  { %v1818_v53 = vsel %vm408_vm3, %v1817_v28, %v5508_v39 }
 0x428   :  { %v1780_v10 = vpop.permute.xlu0 %1779  ;;  %v1893_v9 = vcombine.low %v1884_v35, %v1892_v48  ;;  %v1894_v19 = vcombine.high %v1884_v35, %v1892_v48  ;;  %v1895_v63 = vcombine.low %v5429_v61, %v1818_v53  ;;  %v1531_v48 = vpop.permute.xlu1 %1530 }
 0x429   :  { %v1819_v22 = vrot.slane %v1780_v10, 7 }
 0x42a   :  { %1949 = vrot.lane.b32.xlu1 %v1893_v9, %s4841_s13  ;;  %v1902_v2 = vrot.slane %v1895_v63, %v5538_v56 }
 0x42b   :  { %v1820_v17 = vsel %vm408_vm3, %v1819_v22, %v5512_v41 }
 0x42c   :  { %v1784_v29 = vpop.permute.xlu0 %1783  ;;  %v1903_v11 = vcombine.low %v1816_v52, %v1820_v17  ;;  %v1572_v52 = vrot.slane %v5554_v7, 7 }
 0x42d   :  { %v1821_v54 = vrot.slane %v1784_v29, 7 }
 0x42e   :  { %1953 = vrot.lane.b32.xlu1 %v1894_v19, %s4841_s13  ;;  %v1910_v41 = vrot.slane %v1903_v11, %v5538_v56 }
 0x42f   :  { %v1822_v37 = vsel %vm408_vm3, %v1821_v54, %v5522_v45 }
 0x430   :  { %v1788_v32 = vpop.permute.xlu0 %1787  ;;  %v1927_v10 = vcombine.low %v1902_v2, %v1910_v41 }
 0x431   :  { %v1823_v24 = vrot.slane %v1788_v32, 7 }
 0x432   :  { %v1934_v22 = vrot.slane %v1927_v10, %v5552_v27 }
 0x433   :  { %v1824_v47 = vsel %vm408_vm3, %v1823_v24, %v5524_v31  ;;  %v1535_v31 = vpop.permute.xlu1 %1534 }
 0x434   :  { %v1792_v50 = vpop.permute.xlu0 %1791 }
 0x435   :  { %v1825_v55 = vrot.slane %v1792_v50, 7 }
 0x437   :  { %v1826_v57 = vsel %vm408_vm3, %v1825_v55, %v5526_v51  ;;  %v1541_v54 = vpop.permute.xlu1 %1540  ;;  %v1568_v55 = vrot.slane %v5421_v40, 7 }
 0x438   :  { %v1796_v0 = vpop.permute.xlu0 %1795  ;;  %v1911_v51 = vcombine.low %v1822_v37, %v1826_v57  ;;  %v1573_v57 = vsel %vm408_vm3, %v1572_v52, %v5547_v58 }
 0x439   :  { %v1827_v39 = vrot.slane %v1796_v0, 7  ;;  %v1569_v7 = vsel %vm408_vm3, %v1568_v55, %v5409_v23 }
 0x43a   :  { %v1918_v9 = vrot.slane %v1911_v51, %v5538_v56 }
 0x43b   :  { %v1828_v61 = vsel %vm408_vm3, %v1827_v39, %v5528_v44  ;;  %v1545_v40 = vpop.permute.xlu1 %1544 }
 0x43c   :  { %v1919_v5 = vcombine.low %v1824_v47, %v1828_v61  ;;  %v1513_v35 = vpop.permute.xlu0 %1512  ;;  %v1616_v47 = vcombine.low %v1569_v7, %v1573_v57 }
 0x43d   :  { %v1570_v53 = vrot.slane %v1513_v35, 7 }
 0x43e   :  { %v1926_v45 = vrot.slane %v1919_v5, %v5538_v56  ;;  %v1623_v10 = vrot.slane %v1616_v47, %v5538_v56 }
 0x43f   :  { %v1571_v63 = vsel %vm408_vm3, %v1570_v53, %v5540_v21 }
 0x440   :  { %v1935_v29 = vcombine.low %v1918_v9, %v1926_v45  ;;  %v1521_v19 = vpop.permute.xlu0 %1520  ;;  %v1549_v45 = vpop.permute.xlu1 %1548 }
 0x441   :  { %v1574_v44 = vrot.slane %v1521_v19, 7 }
 0x442   :  { %v1942_v32 = vrot.slane %v1935_v29, %v5552_v27 }
 0x443   :  { %v1575_v11 = vsel %vm408_vm3, %v1574_v44, %v1519_v13 }
 0x444   :  { %v1525_v46 = vpop.permute.xlu0 %1524  ;;  %v1943_v28 = vcombine.low %v1934_v22, %v1942_v32  ;;  %v1944_v50 = vcombine.high %v1934_v22, %v1942_v32  ;;  %v1624_v39 = vcombine.low %v1571_v63, %v1575_v11 }
 0x445   :  { %v1576_v0 = vrot.slane %v1525_v46, 7 }
 0x446   :  { %1951 = vrot.lane.b32.xlu0 %v1943_v28, %s4841_s13  ;;  %v1631_v58 = vrot.slane %v1624_v39, %v5538_v56  ;;  %v1553_v28 = vpop.permute.xlu1 %1552 }
 0x447   :  { %v1577_v13 = vsel %vm408_vm3, %v1576_v0, %v1523_v14 }
 0x448   :  { %v1529_v17 = vpop.permute.xlu0 %1528  ;;  %v1648_v29 = vcombine.low %v1623_v10, %v1631_v58 }
 0x449   :  { %v1578_v41 = vrot.slane %v1529_v17, 7 }
 0x44a   :  { %1955 = vrot.lane.b32.xlu0 %v1944_v50, %s4841_s13  ;;  %v1655_v32 = vrot.slane %v1648_v29, %v5552_v27  ;;  %v1557_v50 = vpop.permute.xlu1 %1556 }
 0x44b   :  { %v1579_v21 = vsel %vm408_vm3, %v1578_v41, %v1527_v36 }
 0x44c   :  { %v1533_v24 = vpop.permute.xlu0 %1532 }
 0x44d   :  { %v1580_v37 = vrot.slane %v1533_v24, 7  ;;  %v1584_v24 = vrot.slane %v5492_v33, 7 }
 0x44e   :  { %v1561_v63 = vpop.permute.xlu1 %1560 }
 0x44f   :  { %v1581_v51 = vsel %vm408_vm3, %v1580_v37, %v1531_v48  ;;  %v1585_v47 = vsel %vm408_vm3, %v1584_v24, %v5451_v3 }
 0x450   :  { %v1537_v61 = vpop.permute.xlu0 %1536  ;;  %v1632_v5 = vcombine.low %v1577_v13, %v1581_v51 }
 0x451   :  { %v1582_v2 = vrot.slane %v1537_v61, 7 }
 0x452   :  { %v1639_v48 = vrot.slane %v1632_v5, %v5538_v56 }
 0x453   :  { %v1583_v35 = vsel %vm408_vm3, %v1582_v2, %v1535_v31 }
 0x454   :  { %v1640_v9 = vcombine.low %v1579_v21, %v1583_v35  ;;  %v1543_v23 = vpop.permute.xlu0 %1542  ;;  %v1565_v21 = vpop.permute.xlu1 %1564 }
 0x455   :  { %v1586_v55 = vrot.slane %v1543_v23, 7 }
 0x456   :  { %v1647_v19 = vrot.slane %v1640_v9, %v5538_v56 }
 0x457   :  { %v1587_v37 = vsel %vm408_vm3, %v1586_v55, %v1541_v54 }
 0x458   :  { %v1656_v22 = vcombine.low %v1639_v48, %v1647_v19  ;;  %v1547_v14 = vpop.permute.xlu0 %1546 }
 0x459   :  { %v1588_v11 = vrot.slane %v1547_v14, 7 }
 0x45a   :  { %v1663_v46 = vrot.slane %v1656_v22, %v5552_v27 }
 0x45b   :  { %v1589_v39 = vsel %vm408_vm3, %v1588_v11, %v1545_v40  ;;  %v3166_v11 = vstv %s4615_s17  ;;  %s4634_s17 = sld [smem:[#allocation7 + $0x47]] }
 0x45c   :  { %v1551_v36 = vpop.permute.xlu0 %1550  ;;  %v1664_v44 = vcombine.low %v1655_v32, %v1663_v46  ;;  %v1665_v17 = vcombine.high %v1655_v32, %v1663_v46  ;;  %v1666_v2 = vcombine.low %v1585_v47, %v1589_v39  ;;  %v3216_v47 = vstv %s4617_s23  ;;  %s4565_s23 = sld [smem:[#allocation7 + $0x2]] }
 0x45d   :  { %v1590_v52 = vrot.slane %v1551_v36, 7  ;;  %v3116_v36 = vstv %s4613_s14  ;;  %s4631_s14 = sld [smem:[#allocation7 + $0x44]] }
 0x45e   :  { %1720 = vrot.lane.b32.xlu1 %v1664_v44, %s4841_s13  ;;  %v1673_v9 = vrot.slane %v1666_v2, %v5538_v56 }
 0x45f   :  { %v1591_v57 = vsel %vm408_vm3, %v1590_v52, %v1549_v45  ;;  %v3141_v52 = vstv %s4614_s15  ;;  %s4632_s15 = sld [smem:[#allocation7 + $0x45]] }
 0x460   :  { %v1555_v31 = vpop.permute.xlu0 %1554  ;;  %v1674_v51 = vcombine.low %v1587_v37, %v1591_v57 }
 0x461   :  { %v1592_v7 = vrot.slane %v1555_v31, 7 }
 0x462   :  { %1724 = vrot.lane.b32.xlu1 %v1665_v17, %s4841_s13  ;;  %v1681_v35 = vrot.slane %v1674_v51, %v5538_v56 }
 0x463   :  { %v1593_v33 = vsel %vm408_vm3, %v1592_v7, %v1553_v28 }
 0x464   :  { %v1559_v53 = vpop.permute.xlu0 %1558  ;;  %v1698_v3 = vcombine.low %v1673_v9, %v1681_v35 }
 0x465   :  { %v1594_v61 = vrot.slane %v1559_v53, 7 }
 0x466   :  { %v1705_v19 = vrot.slane %v1698_v3, %v5552_v27 }
 0x467   :  { %v1595_v40 = vsel %vm408_vm3, %v1594_v61, %v1557_v50 }
 0x468   :  { %v1563_v0 = vpop.permute.xlu0 %1562 }
 0x469   :  { %v1596_v41 = vrot.slane %v1563_v0, 7  ;;  %v3191_v0 = vstv %s4616_s19  ;;  %s4564_s19 = sld [smem:[#allocation7 + $0x1]] }
 0x46b   :  { %v1597_v13 = vsel %vm408_vm3, %v1596_v41, %v1561_v63 }
 0x46c   :  { %v1567_v58 = vpop.permute.xlu0 %1566  ;;  %v1682_v54 = vcombine.low %v1593_v33, %v1597_v13 }
 0x46d   :  { %v1598_v5 = vrot.slane %v1567_v58, 7 }
 0x46e   :  { %v1689_v45 = vrot.slane %v1682_v54, %v5538_v56 }
 0x46f   :  { %v1599_v10 = vsel %vm408_vm3, %v1598_v5, %v1565_v21  ;;  %v3241_v5 = vstv %s4618_s25  ;;  %s4566_s25 = sld [smem:[#allocation7 + $0x3]]  ;;  %vm4444_vm3 = vcmask 654336  }
 0x470   :  { %v1690_v23 = vcombine.low %v1595_v40, %v1599_v10 }
 0x472   :  { %v1697_v29 = vrot.slane %v1690_v23, %v5538_v56  ;;  %v3279_v23 = vstv %s4620_s0  ;;  %s4567_s0 = sld [smem:[#allocation7 + $0x4]] }
 0x474   :  { %v1706_v48 = vcombine.low %v1689_v45, %v1697_v29 }
 0x476   :  { %v1713_v22 = vrot.slane %v1706_v48, %v5552_v27 }
 0x478   :  { %v1714_v14 = vcombine.low %v1705_v19, %v1713_v22  ;;  %v1715_v32 = vcombine.high %v1705_v19, %v1713_v22 }
 0x47a   :  { %1722 = vrot.lane.b32.xlu0 %v1714_v14, %s4841_s13  ;;  %v3304_v14 = vstv %s4621_s27  ;;  %s4568_s27 = sld [smem:[#allocation7 + $0x5]] }
 0x47e   :  { %1726 = vrot.lane.b32.xlu0 %v1715_v32, %s4841_s13  ;;  %s4630_s13 = sld [smem:[#allocation7 + $0x43]] }
 0x49c   :  { %v1950_v46 = vpop.permute.xlu1 %1949 }
 0x49d   :  { %1962 = vst.msk [vmem:[#allocation2 + $0x33] sm:$0xff] %vm1732_vm14, %v1950_v46 }
 0x4a0   :  { %v1954_v28 = vpop.permute.xlu1 %1953 }
 0x4a1   :  { %1964 = vst.msk [vmem:[#allocation2 + $0x4b] sm:$0xff] %vm1732_vm14, %v1954_v28 }
 0x4a4   :  { %v3107_v44 = vld [vmem:[#allocation2 + $0x30] sm:$0xff] }
 0x4a5   :  { %v3117_v31 = vmul.f32 %v3116_v36, %v3107_v44  ;;  %v3142_v53 = vmul.f32 %v3141_v52, %v3107_v44  ;;  %v3167_v24 = vmul.f32 %v3166_v11, %v3107_v44  ;;  %v3192_v39 = vmul.f32 %v3191_v0, %v3107_v44  ;;  %v5646_v9 = vld [vmem:[#allocation2 + $0x31] sm:$0xff] }
 0x4a6   :  { %v3217_v2 = vmul.f32 %v3216_v47, %v3107_v44  ;;  %v3242_v35 = vmul.f32 %v3241_v5, %v3107_v44  ;;  %v3280_v29 = vmul.f32 %v3279_v23, %v5646_v9  ;;  %v3305_v46 = vmul.f32 %v3304_v14, %v5646_v9 }
 0x4a7   :  { %3125 = vrot.lane.b32.xlu1 %v3117_v31, %s4842_s16  ;;  %v3329_v44 = vstv %s4622_s28  ;;  %s4569_s28 = sld [smem:[#allocation7 + $0x6]] }
 0x4a8   :  { %v3109_v17 = vld [vmem:[#allocation2 + $0x48] sm:$0xff] }
 0x4a9   :  { %v3119_v50 = vmul.f32 %v3116_v36, %v3109_v17  ;;  %v3144_v55 = vmul.f32 %v3141_v52, %v3109_v17  ;;  %v3169_v63 = vmul.f32 %v3166_v11, %v3109_v17  ;;  %v3194_v51 = vmul.f32 %v3191_v0, %v3109_v17  ;;  %v3272_v48 = vld [vmem:[#allocation2 + $0x49] sm:$0xff] }
 0x4aa   :  { %v3219_v33 = vmul.f32 %v3216_v47, %v3109_v17  ;;  %v3244_v10 = vmul.f32 %v3241_v5, %v3109_v17  ;;  %v3282_v22 = vmul.f32 %v3279_v23, %v3272_v48  ;;  %v3330_v17 = vmul.f32 %v3329_v44, %v5646_v9 }
 0x4ab   :  { %3129 = vrot.lane.b32.xlu1 %v3119_v50, %s4842_s16 }
 0x4ad   :  { %v5879_v18 = vstv %s4569_s28  ;;  %s4588_s28 = sld [smem:[#allocation7 + $0x19]] }
 0x4af   :  { %3150 = vrot.lane.b32.xlu1 %v3142_v53, %s4843_s18  ;;  %v3354_v53 = vstv %s4623_s1  ;;  %s4571_s1 = sld [smem:[#allocation7 + $0x8]] }
 0x4b3   :  { %3154 = vrot.lane.b32.xlu1 %v3144_v55, %s4843_s18 }
 0x4b7   :  { %3175 = vrot.lane.b32.xlu1 %v3167_v24, %s4844_s20  ;;  %v3355_v24 = vmul.f32 %v3354_v53, %v5646_v9 }
 0x4b8   :  { %v1952_v57 = vpop.permute.xlu0 %1951 }
 0x4b9   :  { %1963 = vst.msk [vmem:[#allocation2 + $0x3b] sm:$0xff] %vm1732_vm14, %v1952_v57 }
 0x4bb   :  { %3179 = vrot.lane.b32.xlu1 %v3169_v63, %s4844_s20 }
 0x4bc   :  { %v1956_v37 = vpop.permute.xlu0 %1955 }
 0x4bd   :  { %1965 = vst.msk [vmem:[#allocation2 + $0x53] sm:$0xff] %vm1732_vm14, %v1956_v37  ;;  %v3357_v37 = vmul.f32 %v3354_v53, %v3272_v48 }
 0x4bf   :  { %3200 = vrot.lane.b32.xlu1 %v3192_v39, %s4845_s24 }
 0x4c0   :  { %v3108_v7 = vld [vmem:[#allocation2 + $0x38] sm:$0xff] }
 0x4c1   :  { %v3118_v41 = vmul.f32 %v3116_v36, %v3108_v7  ;;  %v3143_v58 = vmul.f32 %v3141_v52, %v3108_v7  ;;  %v3168_v40 = vmul.f32 %v3166_v11, %v3108_v7  ;;  %v3193_v19 = vmul.f32 %v3191_v0, %v3108_v7  ;;  %v3271_v57 = vld [vmem:[#allocation2 + $0x39] sm:$0xff] }
 0x4c2   :  { %v3218_v28 = vmul.f32 %v3216_v47, %v3108_v7  ;;  %v3243_v50 = vmul.f32 %v3241_v5, %v3108_v7  ;;  %v3379_v7 = vstv %s4624_s29  ;;  %s4572_s29 = sld [smem:[#allocation7 + $0x9]] }
 0x4c3   :  { %3127 = vrot.lane.b32.xlu0 %v3118_v41, %s4842_s16  ;;  %3204 = vrot.lane.b32.xlu1 %v3194_v51, %s4845_s24  ;;  %v3380_v51 = vmul.f32 %v3379_v7, %v5646_v9 }
 0x4c4   :  { %v3110_v61 = vld [vmem:[#allocation2 + $0x50] sm:$0xff] }
 0x4c5   :  { %v3120_v13 = vmul.f32 %v3116_v36, %v3110_v61  ;;  %v3145_v21 = vmul.f32 %v3141_v52, %v3110_v61  ;;  %v3170_v45 = vmul.f32 %v3166_v11, %v3110_v61  ;;  %v3195_v32 = vmul.f32 %v3191_v0, %v3110_v61  ;;  %v3273_v39 = vld [vmem:[#allocation2 + $0x51] sm:$0xff] }
 0x4c6   :  { %v3307_v36 = vmul.f32 %v3304_v14, %v3272_v48  ;;  %v3220_v31 = vmul.f32 %v3216_v47, %v3110_v61  ;;  %v3332_v52 = vmul.f32 %v3329_v44, %v3272_v48  ;;  %v3245_v11 = vmul.f32 %v3241_v5, %v3110_v61 }
 0x4c7   :  { %3131 = vrot.lane.b32.xlu0 %v3120_v13, %s4842_s16  ;;  %3225 = vrot.lane.b32.xlu1 %v3217_v2, %s4846_s3  ;;  %v3281_v0 = vmul.f32 %v3279_v23, %v3271_v57  ;;  %v3283_v41 = vmul.f32 %v3279_v23, %v3273_v39  ;;  %v3306_v47 = vmul.f32 %v3304_v14, %v3271_v57  ;;  %v3404_v13 = vstv %s4625_s30  ;;  %s4573_s30 = sld [smem:[#allocation7 + $0xa]] }
 0x4c8   :  { %v3382_v61 = vmul.f32 %v3379_v7, %v3272_v48  ;;  %v3308_v2 = vmul.f32 %v3304_v14, %v3273_v39  ;;  %v3407_v5 = vmul.f32 %v3404_v13, %v3272_v48  ;;  %v3381_v48 = vmul.f32 %v3379_v7, %v3271_v57 }
 0x4c9   :  { %v3383_v14 = vmul.f32 %v3379_v7, %v3273_v39 }
 0x4cb   :  { %3152 = vrot.lane.b32.xlu0 %v3143_v58, %s4843_s18  ;;  %3229 = vrot.lane.b32.xlu1 %v3219_v33, %s4846_s3  ;;  %v3405_v58 = vmul.f32 %v3404_v13, %v5646_v9  ;;  %v3331_v33 = vmul.f32 %v3329_v44, %v3271_v57  ;;  %v3356_v9 = vmul.f32 %v3354_v53, %v3271_v57 }
 0x4cd   :  { %v5949_v15 = vstv %s4573_s30  ;;  %s45_s30 = sld [smem:[#allocation7]] }
 0x4cf   :  { %3156 = vrot.lane.b32.xlu0 %v3145_v21, %s4843_s18  ;;  %3250 = vrot.lane.b32.xlu1 %v3242_v35, %s4847_s26  ;;  %v5681_v21 = vld [vmem:[#allocation2 + $0x32] sm:$0xff]  ;;  %v3442_v35 = vstv %s4627_s5  ;;  %s4574_s5 = sld [smem:[#allocation7 + $0xb]] }
 0x4d0   :  { %v1721_v54 = vpop.permute.xlu1 %1720 }
 0x4d1   :  { %1733 = vst.msk [vmem:[#allocation2 + $0x3] sm:$0xff] %vm1732_vm14, %v1721_v54  ;;  %v3333_v54 = vmul.f32 %v3329_v44, %v3273_v39  ;;  %v3517_v44 = vstv %s4630_s13  ;;  %s4578_s13 = sld [smem:[#allocation7 + $0xf]] }
 0x4d3   :  { %3177 = vrot.lane.b32.xlu0 %v3168_v40, %s4844_s20  ;;  %3254 = vrot.lane.b32.xlu1 %v3244_v10, %s4847_s26  ;;  %v3443_v40 = vmul.f32 %v3442_v35, %v5681_v21  ;;  %v5686_v10 = vld [vmem:[#allocation2 + $0x4a] sm:$0xff] }
 0x4d4   :  { %v1725_v3 = vpop.permute.xlu1 %1724  ;;  %v3445_v23 = vmul.f32 %v3442_v35, %v5686_v10 }
 0x4d5   :  { %1735 = vst.msk [vmem:[#allocation2 + $0x1b] sm:$0xff] %vm1732_vm14, %v1725_v3  ;;  %v3467_v3 = vstv %s4628_s6  ;;  %v5971_v27 = vstv %s4574_s5  ;;  %s4575_s6 = sld [smem:[#allocation7 + $0xc]] }
 0x4d6   :  { %s4592_s5 = sld [smem:[#allocation7 + $0x1d]] }
 0x4d7   :  { %3181 = vrot.lane.b32.xlu0 %v3170_v45, %s4844_s20  ;;  %3288 = vrot.lane.b32.xlu1 %v3280_v29, %s4842_s16  ;;  %v3358_v45 = vmul.f32 %v3354_v53, %v3273_v39  ;;  %v3468_v29 = vmul.f32 %v3467_v3, %v5681_v21 }
 0x4d8   :  { %v5901_v49 = vld [vmem:[#allocation2 + $0x1] sm:$0xff] }
 0x4d9   :  { %v2189_v30 = vmul.f32 %v5949_v15, %v5901_v49  ;;  %v2214_v56 = vmul.f32 %v5971_v27, %v5901_v49 }
 0x4db   :  { %3202 = vrot.lane.b32.xlu0 %v3193_v19, %s4845_s24  ;;  %3292 = vrot.lane.b32.xlu1 %v3282_v22, %s4842_s16  ;;  %v3470_v19 = vmul.f32 %v3467_v3, %v5686_v10  ;;  %v3492_v22 = vstv %s4629_s7  ;;  %s4576_s7 = sld [smem:[#allocation7 + $0xd]] }
 0x4dc   :  { %v5915_v12 = vld [vmem:[#allocation2 + $0x19] sm:$0xff] }
 0x4df   :  { %3206 = vrot.lane.b32.xlu0 %v3195_v32, %s4845_s24  ;;  %3313 = vrot.lane.b32.xlu1 %v3305_v46, %s4843_s18  ;;  %v3493_v32 = vmul.f32 %v3492_v22, %v5681_v21 }
 0x4e3   :  { %3227 = vrot.lane.b32.xlu0 %v3218_v28, %s4846_s3  ;;  %3317 = vrot.lane.b32.xlu1 %v3307_v36, %s4843_s18  ;;  %v3406_v28 = vmul.f32 %v3404_v13, %v3271_v57  ;;  %v3495_v36 = vmul.f32 %v3492_v22, %v5686_v10  ;;  %v3542_v57 = vstv %s4631_s14  ;;  %s4579_s14 = sld [smem:[#allocation7 + $0x10]] }
 0x4e7   :  { %3231 = vrot.lane.b32.xlu0 %v3220_v31, %s4846_s3  ;;  %3338 = vrot.lane.b32.xlu1 %v3330_v17, %s4844_s20  ;;  %v3408_v17 = vmul.f32 %v3404_v13, %v3273_v39 }
 0x4eb   :  { %3252 = vrot.lane.b32.xlu0 %v3243_v50, %s4847_s26  ;;  %3342 = vrot.lane.b32.xlu1 %v3332_v52, %s4844_s20  ;;  %v3518_v50 = vmul.f32 %v3517_v44, %v5681_v21  ;;  %v5710_v52 = vld [vmem:[#allocation2 + $0x3a] sm:$0xff] }
 0x4ec   :  { %v1723_v55 = vpop.permute.xlu0 %1722  ;;  %v3469_v7 = vmul.f32 %v3467_v3, %v5710_v52 }
 0x4ed   :  { %1734 = vst.msk [vmem:[#allocation2 + $0xb] sm:$0xff] %vm1732_vm14, %v1723_v55  ;;  %v3444_v55 = vmul.f32 %v3442_v35, %v5710_v52 }
 0x4ef   :  { %3256 = vrot.lane.b32.xlu0 %v3245_v11, %s4847_s26  ;;  %3363 = vrot.lane.b32.xlu1 %v3355_v24, %s4845_s24  ;;  %v3520_v11 = vmul.f32 %v3517_v44, %v5686_v10  ;;  %v5718_v24 = vld [vmem:[#allocation2 + $0x52] sm:$0xff] }
 0x4f0   :  { %v1727_v63 = vpop.permute.xlu0 %1726 }
 0x4f1   :  { %1736 = vst.msk [vmem:[#allocation2 + $0x23] sm:$0xff] %vm1732_vm14, %v1727_v63 }
 0x4f3   :  { %3290 = vrot.lane.b32.xlu0 %v3281_v0, %s4842_s16  ;;  %3367 = vrot.lane.b32.xlu1 %v3357_v37, %s4845_s24  ;;  %v3446_v0 = vmul.f32 %v3442_v35, %v5718_v24  ;;  %v3543_v37 = vmul.f32 %v3542_v57, %v5681_v21  ;;  %v5748_v35 = vstv %s4634_s17  ;;  %s4581_s17 = sld [smem:[#allocation7 + $0x12]] }
 0x4f7   :  { %3294 = vrot.lane.b32.xlu0 %v3283_v41, %s4842_s16  ;;  %3388 = vrot.lane.b32.xlu1 %v3380_v51, %s4846_s3  ;;  %v3545_v41 = vmul.f32 %v3542_v57, %v5686_v10  ;;  %v5732_v51 = vstv %s4632_s15  ;;  %s4580_s15 = sld [smem:[#allocation7 + $0x11]] }
 0x4f8   :  { %v3568_v13 = vmul.f32 %v5732_v51, %v5681_v21 }
 0x4fb   :  { %3315 = vrot.lane.b32.xlu0 %v3306_v47, %s4843_s18  ;;  %3392 = vrot.lane.b32.xlu1 %v3382_v61, %s4846_s3  ;;  %v3471_v61 = vmul.f32 %v3467_v3, %v5718_v24 }
 0x4ff   :  { %3319 = vrot.lane.b32.xlu0 %v3308_v2, %s4843_s18  ;;  %3413 = vrot.lane.b32.xlu1 %v3405_v58, %s4847_s26  ;;  %v3494_v58 = vmul.f32 %v3492_v22, %v5710_v52 }
 0x503   :  { %3340 = vrot.lane.b32.xlu0 %v3331_v33, %s4844_s20  ;;  %3417 = vrot.lane.b32.xlu1 %v3407_v5, %s4847_s26  ;;  %v3570_v33 = vmul.f32 %v5732_v51, %v5686_v10  ;;  %v3596_v5 = vld [vmem:[#allocation2 + $0x33] sm:$0xff] }
 0x507   :  { %3344 = vrot.lane.b32.xlu0 %v3333_v54, %s4844_s20  ;;  %3451 = vrot.lane.b32.xlu1 %v3443_v40, %s4842_s16  ;;  %v3496_v40 = vmul.f32 %v3492_v22, %v5718_v24 }
 0x50b   :  { %3365 = vrot.lane.b32.xlu0 %v3356_v9, %s4845_s24  ;;  %3455 = vrot.lane.b32.xlu1 %v3445_v23, %s4842_s16  ;;  %v3606_v9 = vmul.f32 %v5748_v35, %v3596_v5  ;;  %v3598_v23 = vld [vmem:[#allocation2 + $0x4b] sm:$0xff]  ;;  %v5811_v5 = vstv %s4566_s25  ;;  %s4585_s25 = sld [smem:[#allocation7 + $0x16]] }
 0x50f   :  { %3369 = vrot.lane.b32.xlu0 %v3358_v45, %s4845_s24  ;;  %3476 = vrot.lane.b32.xlu1 %v3468_v29, %s4843_s18  ;;  %v3519_v45 = vmul.f32 %v3517_v44, %v5710_v52  ;;  %v3608_v29 = vmul.f32 %v5748_v35, %v3598_v23  ;;  %v3597_v23 = vld [vmem:[#allocation2 + $0x3b] sm:$0xff] }
 0x513   :  { %3390 = vrot.lane.b32.xlu0 %v3381_v48, %s4846_s3  ;;  %3480 = vrot.lane.b32.xlu1 %v3470_v19, %s4843_s18  ;;  %v5766_v48 = vld [vmem:[#allocation2] sm:$0xff]  ;;  %v5768_v19 = vstv %s4564_s19  ;;  %s4582_s19 = sld [smem:[#allocation7 + $0x13]] }
 0x514   :  { %v2101_v4 = vmul.f32 %v5879_v18, %v5766_v48 }
 0x517   :  { %3394 = vrot.lane.b32.xlu0 %v3383_v14, %s4846_s3  ;;  %3501 = vrot.lane.b32.xlu1 %v3493_v32, %s4844_s20  ;;  %v3521_v32 = vmul.f32 %v3517_v44, %v5718_v24 }
 0x519   :  { %v5702_v46 = vpop.permute.xlu1 %3125 }
 0x51a   :  { %7639 = vst [vmem:[#allocation33_spill] sm:$0xff] %v5702_v46  ;;  %v6333_v46 = vld [vmem:[#allocation2 + $0x1c] sm:$0xff] }
 0x51b   :  { %3415 = vrot.lane.b32.xlu0 %v3406_v28, %s4847_s26  ;;  %3505 = vrot.lane.b32.xlu1 %v3495_v36, %s4844_s20  ;;  %v1976_v28 = vmul.f32 %v5768_v19, %v5766_v48  ;;  %v5779_v36 = vld [vmem:[#allocation2 + $0x18] sm:$0xff] }
 0x51d   :  { %v5707_v31 = vpop.permute.xlu1 %3129 }
 0x51e   :  { %7640 = vst [vmem:[#allocation34_spill] sm:$0xff] %v5707_v31 }
 0x51f   :  { %3419 = vrot.lane.b32.xlu0 %v3408_v17, %s4847_s26  ;;  %3526 = vrot.lane.b32.xlu1 %v3518_v50, %s4845_s24 }
 0x521   :  { %v5714_v53 = vpop.permute.xlu1 %3150 }
 0x522   :  { %7641 = vst [vmem:[#allocation35_spill] sm:$0xff] %v5714_v53 }
 0x523   :  { %3453 = vrot.lane.b32.xlu0 %v3444_v55, %s4842_s16  ;;  %3530 = vrot.lane.b32.xlu1 %v3520_v11, %s4845_s24  ;;  %v3544_v55 = vmul.f32 %v3542_v57, %v5710_v52  ;;  %v1978_v11 = vmul.f32 %v5768_v19, %v5779_v36 }
 0x525   :  { %v5722_v63 = vpop.permute.xlu1 %3154 }
 0x526   :  { %7642 = vst [vmem:[#allocation36_spill] sm:$0xff] %v5722_v63 }
 0x527   :  { %3457 = vrot.lane.b32.xlu0 %v3446_v0, %s4842_s16  ;;  %3551 = vrot.lane.b32.xlu1 %v3543_v37, %s4846_s3  ;;  %v5790_v0 = vstv %s4565_s23  ;;  %s4583_s23 = sld [smem:[#allocation7 + $0x14]] }
 0x529   :  { %v5728_v39 = vpop.permute.xlu1 %3175 }
 0x52a   :  { %7643 = vst [vmem:[#allocation37_spill] sm:$0xff] %v5728_v39 }
 0x52b   :  { %3478 = vrot.lane.b32.xlu0 %v3469_v7, %s4843_s18  ;;  %3555 = vrot.lane.b32.xlu1 %v3545_v41, %s4846_s3  ;;  %v3546_v7 = vmul.f32 %v3542_v57, %v5718_v24  ;;  %v2001_v41 = vmul.f32 %v5790_v0, %v5766_v48 }
 0x52d   :  { %v5736_v47 = vpop.permute.xlu1 %3179 }
 0x52e   :  { %7644 = vst [vmem:[#allocation38_spill] sm:$0xff] %v5736_v47  ;;  %v6313_v47 = vld [vmem:[#allocation2 + $0x4] sm:$0xff] }
 0x52f   :  { %3482 = vrot.lane.b32.xlu0 %v3471_v61, %s4843_s18  ;;  %3576 = vrot.lane.b32.xlu1 %v3568_v13, %s4847_s26 }
 0x531   :  { %v5743_v2 = vpop.permute.xlu1 %3200 }
 0x532   :  { %7645 = vst [vmem:[#allocation39_spill] sm:$0xff] %v5743_v2 }
 0x533   :  { %3503 = vrot.lane.b32.xlu0 %v3494_v58, %s4844_s20  ;;  %3580 = vrot.lane.b32.xlu1 %v3570_v33, %s4847_s26  ;;  %v3569_v58 = vmul.f32 %v5732_v51, %v5710_v52  ;;  %v2003_v33 = vmul.f32 %v5790_v0, %v5779_v36  ;;  %v2026_v52 = vmul.f32 %v5811_v5, %v5766_v48 }
 0x535   :  { %v5752_v21 = vpop.permute.xlu0 %3127  ;;  %v5754_v54 = vpop.permute.xlu1 %3204 }
 0x536   :  { %7646 = vst [vmem:[#allocation40_spill] sm:$0xff] %v5752_v21  ;;  %7647 = vst [vmem:[#allocation41_spill] sm:$0xff] %v5754_v54 }
 0x537   :  { %3507 = vrot.lane.b32.xlu0 %v3496_v40, %s4844_s20  ;;  %3614 = vrot.lane.b32.xlu1 %v3606_v9, %s4842_s16  ;;  %v3571_v9 = vmul.f32 %v5732_v51, %v5718_v24 }
 0x539   :  { %v5760_v10 = vpop.permute.xlu0 %3131  ;;  %v5762_v3 = vpop.permute.xlu1 %3225 }
 0x53a   :  { %7648 = vst [vmem:[#allocation42_spill] sm:$0xff] %v5760_v10  ;;  %7649 = vst [vmem:[#allocation43_spill] sm:$0xff] %v5762_v3 }
 0x53b   :  { %3528 = vrot.lane.b32.xlu0 %v3519_v45, %s4845_s24  ;;  %3618 = vrot.lane.b32.xlu1 %v3608_v29, %s4842_s16 }
 0x53d   :  { %v5772_v22 = vpop.permute.xlu0 %3152  ;;  %v5774_v14 = vpop.permute.xlu1 %3229 }
 0x53e   :  { %7650 = vst [vmem:[#allocation44_spill] sm:$0xff] %v5772_v22  ;;  %7651 = vst [vmem:[#allocation45_spill] sm:$0xff] %v5774_v14  ;;  %v6137_v22 = vstv %s4582_s19  ;;  %s4599_s19 = sld [smem:[#allocation7 + $0x24]] }
 0x53f   :  { %3532 = vrot.lane.b32.xlu0 %v3521_v32, %s4845_s24  ;;  %1984 = vrot.lane.b32.xlu1 %v1976_v28, %s4842_s16  ;;  %v3607_v32 = vmul.f32 %v5748_v35, %v3597_v23  ;;  %v2028_v28 = vmul.f32 %v5811_v5, %v5779_v36 }
 0x541   :  { %v5783_v17 = vpop.permute.xlu0 %3156  ;;  %v5785_v50 = vpop.permute.xlu1 %3250 }
 0x542   :  { %7652 = vst [vmem:[#allocation46_spill] sm:$0xff] %v5783_v17  ;;  %7653 = vst [vmem:[#allocation47_spill] sm:$0xff] %v5785_v50  ;;  %v6263_v50 = vld [vmem:[#allocation2 + $0xb] sm:$0xff] }
 0x543   :  { %3553 = vrot.lane.b32.xlu0 %v3544_v55, %s4846_s3  ;;  %1988 = vrot.lane.b32.xlu1 %v1978_v11, %s4842_s16  ;;  %v3599_v55 = vld [vmem:[#allocation2 + $0x53] sm:$0xff]  ;;  %v5832_v11 = vstv %s4567_s0  ;;  %s4586_s0 = sld [smem:[#allocation7 + $0x17]] }
 0x544   :  { %v2053_v23 = vmul.f32 %v5832_v11, %v5779_v36 }
 0x545   :  { %v5794_v44 = vpop.permute.xlu0 %3177  ;;  %v5796_v37 = vpop.permute.xlu1 %3254 }
 0x546   :  { %7654 = vst [vmem:[#allocation48_spill] sm:$0xff] %v5794_v44  ;;  %7655 = vst [vmem:[#allocation49_spill] sm:$0xff] %v5796_v37 }
 0x547   :  { %3557 = vrot.lane.b32.xlu0 %v3546_v7, %s4846_s3  ;;  %2009 = vrot.lane.b32.xlu1 %v2001_v41, %s4843_s18  ;;  %v3609_v7 = vmul.f32 %v5748_v35, %v3599_v55  ;;  %v2051_v41 = vmul.f32 %v5832_v11, %v5766_v48  ;;  %v5855_v35 = vld [vmem:[#allocation2 + $0x20] sm:$0xff] }
 0x548   :  { %v2029_v42 = vmul.f32 %v5811_v5, %v5855_v35  ;;  %v2054_v60 = vmul.f32 %v5832_v11, %v5855_v35 }
 0x549   :  { %v5803_v61 = vpop.permute.xlu0 %3181  ;;  %v5805_v13 = vpop.permute.xlu1 %3288 }
 0x54a   :  { %7656 = vst [vmem:[#allocation50_spill] sm:$0xff] %v5803_v61  ;;  %7657 = vst [vmem:[#allocation51_spill] sm:$0xff] %v5805_v13 }
 0x54b   :  { %3578 = vrot.lane.b32.xlu0 %v3569_v58, %s4847_s26  ;;  %2013 = vrot.lane.b32.xlu1 %v2003_v33, %s4843_s18  ;;  %v5843_v58 = vld [vmem:[#allocation2 + $0x8] sm:$0xff] }
 0x54d   :  { %v5815_v57 = vpop.permute.xlu0 %3202  ;;  %v5817_v40 = vpop.permute.xlu1 %3292 }
 0x54e   :  { %7658 = vst [vmem:[#allocation52_spill] sm:$0xff] %v5815_v57  ;;  %7659 = vst [vmem:[#allocation53_spill] sm:$0xff] %v5817_v40 }
 0x54f   :  { %3582 = vrot.lane.b32.xlu0 %v3571_v9, %s4847_s26  ;;  %2034 = vrot.lane.b32.xlu1 %v2026_v52, %s4844_s20  ;;  %v1977_v52 = vmul.f32 %v5768_v19, %v5843_v58 }
 0x551   :  { %v5825_v45 = vpop.permute.xlu0 %3206  ;;  %v5827_v29 = vpop.permute.xlu1 %3313 }
 0x552   :  { %7660 = vst [vmem:[#allocation54_spill] sm:$0xff] %v5825_v45  ;;  %7661 = vst [vmem:[#allocation55_spill] sm:$0xff] %v5827_v29  ;;  %v6041_v45 = vld [vmem:[#allocation2 + $0x2] sm:$0xff]  ;;  %v6317_v29 = vstv %s45_s30  ;;  %s4584_s30 = sld [smem:[#allocation7 + $0x15]] }
 0x553   :  { %3616 = vrot.lane.b32.xlu0 %v3607_v32, %s4842_s16  ;;  %2038 = vrot.lane.b32.xlu1 %v2028_v28, %s4844_s20  ;;  %v5857_v32 = vstv %s4568_s27  ;;  %v2402_v10 = vmul.f32 %v6137_v22, %v6041_v45  ;;  %s4587_s27 = sld [smem:[#allocation7 + $0x18]]  ;;  %v1971_v53 = vmul.f32 %v6317_v29, %v5766_v48 }
 0x555   :  { %v5836_v24 = vpop.permute.xlu0 %3227  ;;  %v5838_v51 = vpop.permute.xlu1 %3317 }
 0x556   :  { %7662 = vst [vmem:[#allocation56_spill] sm:$0xff] %v5836_v24  ;;  %7663 = vst [vmem:[#allocation57_spill] sm:$0xff] %v5838_v51 }
 0x557   :  { %3620 = vrot.lane.b32.xlu0 %v3609_v7, %s4842_s16  ;;  %2059 = vrot.lane.b32.xlu1 %v2051_v41, %s4845_s24  ;;  %v1979_v7 = vmul.f32 %v5768_v19, %v5855_v35  ;;  %v2076_v41 = vmul.f32 %v5857_v32, %v5766_v48 }
 0x559   :  { %v5847_v33 = vpop.permute.xlu0 %3231  ;;  %v5849_v9 = vpop.permute.xlu1 %3338 }
 0x55a   :  { %7664 = vst [vmem:[#allocation58_spill] sm:$0xff] %v5847_v33  ;;  %7665 = vst [vmem:[#allocation59_spill] sm:$0xff] %v5849_v9  ;;  %v2216_v33 = vmul.f32 %v5971_v27, %v5915_v12 }
 0x55b   :  { %1986 = vrot.lane.b32.xlu0 %v1977_v52, %s4842_s16  ;;  %2063 = vrot.lane.b32.xlu1 %v2053_v23, %s4845_s24  ;;  %v2002_v52 = vmul.f32 %v5790_v0, %v5843_v58  ;;  %v2078_v23 = vmul.f32 %v5857_v32, %v5779_v36 }
 0x55d   :  { %v5861_v28 = vpop.permute.xlu0 %3252  ;;  %v5863_v55 = vpop.permute.xlu1 %3342 }
 0x55e   :  { %7666 = vst [vmem:[#allocation60_spill] sm:$0xff] %v5861_v28  ;;  %7667 = vst [vmem:[#allocation61_spill] sm:$0xff] %v5863_v55  ;;  %v5997_v28 = vstv %s4575_s6  ;;  %s4570_s6 = sld [smem:[#allocation7 + $0x7]] }
 0x55f   :  { %1990 = vrot.lane.b32.xlu0 %v1979_v7, %s4842_s16  ;;  %2084 = vrot.lane.b32.xlu1 %v2076_v41, %s4846_s3  ;;  %v2004_v41 = vmul.f32 %v5790_v0, %v5855_v35  ;;  %v5903_v0 = vstv %s4571_s1  ;;  %s4589_s1 = sld [smem:[#allocation7 + $0x1a]] }
 0x560   :  { %v2139_v62 = vmul.f32 %v5903_v0, %v5901_v49  ;;  %v2141_v8 = vmul.f32 %v5903_v0, %v5915_v12 }
 0x561   :  { %v5871_v43 = vpop.permute.xlu0 %3256  ;;  %v5873_v20 = vpop.permute.xlu1 %3363 }
 0x562   :  { %7668 = vst [vmem:[#allocation62_spill] sm:$0xff] %v5871_v43  ;;  %7669 = vst [vmem:[#allocation63_spill] sm:$0xff] %v5873_v20  ;;  %v5983_v43 = vld [vmem:[#allocation2 + $0x9] sm:$0xff] }
 0x563   :  { %2011 = vrot.lane.b32.xlu0 %v2002_v52, %s4843_s18  ;;  %2088 = vrot.lane.b32.xlu1 %v2078_v23, %s4846_s3  ;;  %v2027_v52 = vmul.f32 %v5811_v5, %v5843_v58  ;;  %v2103_v23 = vmul.f32 %v5879_v18, %v5779_v36  ;;  %v5927_v5 = vstv %s4572_s29  ;;  %v6273_v20 = vld [vmem:[#allocation2 + $0x23] sm:$0xff]  ;;  %s4590_s29 = sld [smem:[#allocation7 + $0x1b]] }
 0x564   :  { %v2164_v6 = vmul.f32 %v5927_v5, %v5901_v49  ;;  %v6319_v39 = vstv %s4570_s6  ;;  %s4608_s6 = sld [smem:[#allocation7 + $0x2d]] }
 0x565   :  { %v5883_v19 = vpop.permute.xlu0 %3290  ;;  %v5885_v7 = vpop.permute.xlu1 %3367  ;;  %v2134_v31 = vmul.f32 %v6319_v39, %v5901_v49 }
 0x566   :  { %7670 = vst [vmem:[#allocation64_spill] sm:$0xff] %v5883_v19  ;;  %7671 = vst [vmem:[#allocation65_spill] sm:$0xff] %v5885_v7  ;;  %v6229_v7 = vstv %s4587_s27  ;;  %s4602_s27 = sld [smem:[#allocation7 + $0x27]] }
 0x567   :  { %2015 = vrot.lane.b32.xlu0 %v2004_v41, %s4843_s18  ;;  %2109 = vrot.lane.b32.xlu1 %v2101_v4, %s4847_s26  ;;  %v2518_v63 = vmul.f32 %v6229_v7, %v6273_v20 }
 0x569   :  { %v5893_v38 = vpop.permute.xlu0 %3294  ;;  %v5895_v59 = vpop.permute.xlu1 %3388  ;;  %v6295_v9 = vstv %s4590_s29  ;;  %s4606_s29 = sld [smem:[#allocation7 + $0x2b]] }
 0x56a   :  { %7672 = vst [vmem:[#allocation66_spill] sm:$0xff] %v5893_v38  ;;  %7673 = vst [vmem:[#allocation67_spill] sm:$0xff] %v5895_v59  ;;  %v6055_v38 = vld [vmem:[#allocation2 + $0x1a] sm:$0xff]  ;;  %v6251_v59 = vstv %s4588_s28  ;;  %s4603_s28 = sld [smem:[#allocation7 + $0x28]] }
 0x56b   :  { %2036 = vrot.lane.b32.xlu0 %v2027_v52, %s4844_s20  ;;  %2113 = vrot.lane.b32.xlu1 %v2103_v23, %s4847_s26  ;;  %v2052_v23 = vmul.f32 %v5832_v11, %v5843_v58  ;;  %v2079_v11 = vmul.f32 %v5857_v32, %v5855_v35  ;;  %7700 = vst [vmem:[#allocation94_spill] sm:$0xff] %v6055_v38 }
 0x56d   :  { %v5907_v4 = vpop.permute.xlu0 %3315  ;;  %v5909_v41 = vpop.permute.xlu1 %3392 }
 0x56e   :  { %7674 = vst [vmem:[#allocation68_spill] sm:$0xff] %v5907_v4  ;;  %7675 = vst [vmem:[#allocation69_spill] sm:$0xff] %v5909_v41 }
 0x56f   :  { %2040 = vrot.lane.b32.xlu0 %v2029_v42, %s4844_s20  ;;  %2147 = vrot.lane.b32.xlu1 %v2139_v62, %s4842_s16 }
 0x571   :  { %v5919_v34 = vpop.permute.xlu0 %3319  ;;  %v5921_v52 = vpop.permute.xlu1 %3413 }
 0x572   :  { %7676 = vst [vmem:[#allocation70_spill] sm:$0xff] %v5919_v34  ;;  %7677 = vst [vmem:[#allocation71_spill] sm:$0xff] %v5921_v52 }
 0x573   :  { %2061 = vrot.lane.b32.xlu0 %v2052_v23, %s4845_s24  ;;  %2151 = vrot.lane.b32.xlu1 %v2141_v8, %s4842_s16  ;;  %v2077_v8 = vmul.f32 %v5857_v32, %v5843_v58  ;;  %v2166_v23 = vmul.f32 %v5927_v5, %v5915_v12 }
 0x575   :  { %v5931_v42 = vpop.permute.xlu0 %3340  ;;  %v5933_v62 = vpop.permute.xlu1 %3417 }
 0x576   :  { %7678 = vst [vmem:[#allocation72_spill] sm:$0xff] %v5931_v42  ;;  %7679 = vst [vmem:[#allocation73_spill] sm:$0xff] %v5933_v62 }
 0x577   :  { %2065 = vrot.lane.b32.xlu0 %v2054_v60, %s4845_s24  ;;  %2172 = vrot.lane.b32.xlu1 %v2164_v6, %s4843_s18 }
 0x579   :  { %v5941_v16 = vpop.permute.xlu0 %3344  ;;  %v5943_v1 = vpop.permute.xlu1 %3451 }
 0x57a   :  { %7680 = vst [vmem:[#allocation74_spill] sm:$0xff] %v5941_v16  ;;  %7681 = vst [vmem:[#allocation75_spill] sm:$0xff] %v5943_v1 }
 0x57b   :  { %2086 = vrot.lane.b32.xlu0 %v2077_v8, %s4846_s3  ;;  %2176 = vrot.lane.b32.xlu1 %v2166_v23, %s4843_s18  ;;  %v2102_v8 = vmul.f32 %v5879_v18, %v5843_v58  ;;  %v2191_v23 = vmul.f32 %v5949_v15, %v5915_v12 }
 0x57d   :  { %v5953_v60 = vpop.permute.xlu0 %3365  ;;  %v5955_v6 = vpop.permute.xlu1 %3455 }
 0x57e   :  { %7682 = vst [vmem:[#allocation76_spill] sm:$0xff] %v5953_v60  ;;  %7683 = vst [vmem:[#allocation77_spill] sm:$0xff] %v5955_v6 }
 0x57f   :  { %2090 = vrot.lane.b32.xlu0 %v2079_v11, %s4846_s3  ;;  %2197 = vrot.lane.b32.xlu1 %v2189_v30, %s4844_s20  ;;  %v2104_v11 = vmul.f32 %v5879_v18, %v5855_v35  ;;  %v5995_v18 = vld [vmem:[#allocation2 + $0x21] sm:$0xff] }
 0x581   :  { %v5963_v26 = vpop.permute.xlu0 %3369  ;;  %v5965_v25 = vpop.permute.xlu1 %3476 }
 0x582   :  { %7684 = vst [vmem:[#allocation78_spill] sm:$0xff] %v5963_v26  ;;  %7685 = vst [vmem:[#allocation79_spill] sm:$0xff] %v5965_v25 }
 0x583   :  { %2111 = vrot.lane.b32.xlu0 %v2102_v8, %s4847_s26  ;;  %2201 = vrot.lane.b32.xlu1 %v2191_v23, %s4844_s20  ;;  %v2140_v23 = vmul.f32 %v5903_v0, %v5983_v43 }
 0x585   :  { %v5975_v32 = vpop.permute.xlu0 %3390  ;;  %v5977_v30 = vpop.permute.xlu1 %3480 }
 0x586   :  { %7686 = vst [vmem:[#allocation80_spill] sm:$0xff] %v5975_v32  ;;  %7687 = vst [vmem:[#allocation81_spill] sm:$0xff] %v5977_v30  ;;  %v2239_v32 = vmul.f32 %v5997_v28, %v5901_v49 }
 0x587   :  { %2115 = vrot.lane.b32.xlu0 %v2104_v11, %s4847_s26  ;;  %2222 = vrot.lane.b32.xlu1 %v2214_v56, %s4845_s24 }
 0x589   :  { %v5987_v26 = vpop.permute.xlu0 %3394  ;;  %v5989_v8 = vpop.permute.xlu1 %3501 }
 0x58a   :  { %7688 = vst [vmem:[#allocation82_spill] sm:$0xff] %v5987_v26  ;;  %7689 = vst [vmem:[#allocation83_spill] sm:$0xff] %v5989_v8  ;;  %v2142_v26 = vmul.f32 %v5903_v0, %v5995_v18 }
 0x58b   :  { %2149 = vrot.lane.b32.xlu0 %v2140_v23, %s4842_s16  ;;  %2226 = vrot.lane.b32.xlu1 %v2216_v33, %s4845_s24  ;;  %v2165_v33 = vmul.f32 %v5927_v5, %v5983_v43  ;;  %v2241_v23 = vmul.f32 %v5997_v28, %v5915_v12 }
 0x58d   :  { %v6001_v56 = vpop.permute.xlu0 %3415  ;;  %v6003_v11 = vpop.permute.xlu1 %3505 }
 0x58e   :  { %7690 = vst [vmem:[#allocation84_spill] sm:$0xff] %v6001_v56  ;;  %7691 = vst [vmem:[#allocation85_spill] sm:$0xff] %v6003_v11  ;;  %v6019_v56 = vstv %s4576_s7  ;;  %s4593_s7 = sld [smem:[#allocation7 + $0x1e]] }
 0x58f   :  { %2153 = vrot.lane.b32.xlu0 %v2142_v26, %s4842_s16  ;;  %2247 = vrot.lane.b32.xlu1 %v2239_v32, %s4846_s3  ;;  %v2167_v32 = vmul.f32 %v5927_v5, %v5995_v18  ;;  %v6043_v5 = vstv %s4578_s13  ;;  %s4594_s13 = sld [smem:[#allocation7 + $0x1f]] }
 0x590   :  { %v2302_v42 = vmul.f32 %v6043_v5, %v6041_v45 }
 0x591   :  { %v6011_v16 = vpop.permute.xlu0 %3419  ;;  %v6013_v60 = vpop.permute.xlu1 %3526 }
 0x592   :  { %7692 = vst [vmem:[#allocation86_spill] sm:$0xff] %v6011_v16  ;;  %7693 = vst [vmem:[#allocation87_spill] sm:$0xff] %v6013_v60  ;;  %v2264_v16 = vmul.f32 %v6019_v56, %v5901_v49 }
 0x593   :  { %2174 = vrot.lane.b32.xlu0 %v2165_v33, %s4843_s18  ;;  %2251 = vrot.lane.b32.xlu1 %v2241_v23, %s4846_s3  ;;  %v2190_v33 = vmul.f32 %v5949_v15, %v5983_v43  ;;  %v2266_v23 = vmul.f32 %v6019_v56, %v5915_v12 }
 0x594   :  { %v6345_v49 = vstv %s4593_s7  ;;  %s4609_s7 = sld [smem:[#allocation7 + $0x2e]] }
 0x595   :  { %v6023_v26 = vpop.permute.xlu0 %3453  ;;  %v6025_v0 = vpop.permute.xlu1 %3530 }
 0x596   :  { %7694 = vst [vmem:[#allocation88_spill] sm:$0xff] %v6023_v26  ;;  %7695 = vst [vmem:[#allocation89_spill] sm:$0xff] %v6025_v0 }
 0x597   :  { %2178 = vrot.lane.b32.xlu0 %v2167_v32, %s4843_s18  ;;  %2272 = vrot.lane.b32.xlu1 %v2264_v16, %s4847_s26 }
 0x599   :  { %v6033_v34 = vpop.permute.xlu0 %3457  ;;  %v6035_v24 = vpop.permute.xlu1 %3551 }
 0x59a   :  { %7696 = vst [vmem:[#allocation90_spill] sm:$0xff] %v6033_v34  ;;  %7697 = vst [vmem:[#allocation91_spill] sm:$0xff] %v6035_v24  ;;  %v2192_v34 = vmul.f32 %v5949_v15, %v5995_v18  ;;  %v6067_v15 = vstv %s4579_s14  ;;  %s4595_s14 = sld [smem:[#allocation7 + $0x20]] }
 0x59b   :  { %2199 = vrot.lane.b32.xlu0 %v2190_v33, %s4844_s20  ;;  %2276 = vrot.lane.b32.xlu1 %v2266_v23, %s4847_s26  ;;  %v2215_v23 = vmul.f32 %v5971_v27, %v5983_v43  ;;  %v2327_v26 = vmul.f32 %v6067_v15, %v6041_v45 }
 0x59d   :  { %v6047_v16 = vpop.permute.xlu0 %3478  ;;  %v6049_v32 = vpop.permute.xlu1 %3555 }
 0x59e   :  { %7698 = vst [vmem:[#allocation92_spill] sm:$0xff] %v6047_v16  ;;  %7699 = vst [vmem:[#allocation93_spill] sm:$0xff] %v6049_v32  ;;  %v2304_v16 = vmul.f32 %v6043_v5, %v6055_v38 }
 0x59f   :  { %2203 = vrot.lane.b32.xlu0 %v2192_v34, %s4844_s20  ;;  %2310 = vrot.lane.b32.xlu1 %v2302_v42, %s4842_s16 }
 0x5a1   :  { %v6059_v57 = vpop.permute.xlu0 %3482  ;;  %v6061_v33 = vpop.permute.xlu1 %3576 }
 0x5a2   :  { %7701 = vst [vmem:[#allocation95_spill] sm:$0xff] %v6059_v57  ;;  %7702 = vst [vmem:[#allocation96_spill] sm:$0xff] %v6061_v33  ;;  %v2217_v57 = vmul.f32 %v5971_v27, %v5995_v18  ;;  %v6195_v33 = vld [vmem:[#allocation2 + $0x1b] sm:$0xff] }
 0x5a3   :  { %2224 = vrot.lane.b32.xlu0 %v2215_v23, %s4845_s24  ;;  %2314 = vrot.lane.b32.xlu1 %v2304_v16, %s4842_s16  ;;  %v2240_v16 = vmul.f32 %v5997_v28, %v5983_v43  ;;  %v2329_v23 = vmul.f32 %v6067_v15, %v6055_v38  ;;  %7719 = vst [vmem:[#allocation113_spill] sm:$0xff] %v6195_v33 }
 0x5a4   :  { %v2542_v6 = vmul.f32 %v6251_v59, %v6195_v33 }
 0x5a5   :  { %v6071_v34 = vpop.permute.xlu0 %3503  ;;  %v6073_v42 = vpop.permute.xlu1 %3580 }
 0x5a6   :  { %7703 = vst [vmem:[#allocation97_spill] sm:$0xff] %v6071_v34  ;;  %7704 = vst [vmem:[#allocation98_spill] sm:$0xff] %v6073_v42  ;;  %v6089_v34 = vstv %s4580_s15  ;;  %s4596_s15 = sld [smem:[#allocation7 + $0x21]] }
 0x5a7   :  { %2228 = vrot.lane.b32.xlu0 %v2217_v57, %s4845_s24  ;;  %2335 = vrot.lane.b32.xlu1 %v2327_v26, %s4843_s18  ;;  %v2242_v26 = vmul.f32 %v5997_v28, %v5995_v18 }
 0x5a9   :  { %v6081_v4 = vpop.permute.xlu0 %3507  ;;  %v6083_v61 = vpop.permute.xlu1 %3614 }
 0x5aa   :  { %7705 = vst [vmem:[#allocation99_spill] sm:$0xff] %v6081_v4  ;;  %7706 = vst [vmem:[#allocation100_spill] sm:$0xff] %v6083_v61  ;;  %v2352_v4 = vmul.f32 %v6089_v34, %v6041_v45 }
 0x5ab   :  { %2249 = vrot.lane.b32.xlu0 %v2240_v16, %s4846_s3  ;;  %2339 = vrot.lane.b32.xlu1 %v2329_v23, %s4843_s18  ;;  %v2265_v16 = vmul.f32 %v6019_v56, %v5983_v43  ;;  %v2354_v23 = vmul.f32 %v6089_v34, %v6055_v38 }
 0x5ad   :  { %v6093_v27 = vpop.permute.xlu0 %3528  ;;  %v6095_v57 = vpop.permute.xlu1 %3618 }
 0x5ae   :  { %7707 = vst [vmem:[#allocation101_spill] sm:$0xff] %v6093_v27  ;;  %7708 = vst [vmem:[#allocation102_spill] sm:$0xff] %v6095_v57  ;;  %v6111_v57 = vstv %s4581_s17  ;;  %v6123_v27 = vld [vmem:[#allocation2 + $0xa] sm:$0xff]  ;;  %s4597_s17 = sld [smem:[#allocation7 + $0x22]] }
 0x5af   :  { %2253 = vrot.lane.b32.xlu0 %v2242_v26, %s4846_s3  ;;  %2360 = vrot.lane.b32.xlu1 %v2352_v4, %s4844_s20  ;;  %v2267_v26 = vmul.f32 %v6019_v56, %v5995_v18  ;;  %7711 = vst [vmem:[#allocation105_spill] sm:$0xff] %v6123_v27  ;;  %v6135_v56 = vld [vmem:[#allocation2 + $0x22] sm:$0xff] }
 0x5b0   :  { %7713 = vst [vmem:[#allocation107_spill] sm:$0xff] %v6135_v56  ;;  %v2380_v37 = vmul.f32 %v6111_v57, %v6135_v56 }
 0x5b1   :  { %v6103_v44 = vpop.permute.xlu0 %3532  ;;  %v6105_v19 = vpop.permute.xlu1 %1984 }
 0x5b2   :  { %7709 = vst [vmem:[#allocation103_spill] sm:$0xff] %v6103_v44  ;;  %v2377_v44 = vmul.f32 %v6111_v57, %v6041_v45 }
 0x5b3   :  { %2274 = vrot.lane.b32.xlu0 %v2265_v16, %s4847_s26  ;;  %2364 = vrot.lane.b32.xlu1 %v2354_v23, %s4844_s20  ;;  %v2303_v23 = vmul.f32 %v6043_v5, %v6123_v27 }
 0x5b5   :  { %v6115_v28 = vpop.permute.xlu0 %3553  ;;  %v6117_v4 = vpop.permute.xlu1 %1988 }
 0x5b6   :  { %7710 = vst [vmem:[#allocation104_spill] sm:$0xff] %v6115_v28  ;;  %v2379_v28 = vmul.f32 %v6111_v57, %v6055_v38 }
 0x5b7   :  { %2278 = vrot.lane.b32.xlu0 %v2267_v26, %s4847_s26  ;;  %2385 = vrot.lane.b32.xlu1 %v2377_v44, %s4845_s24 }
 0x5b9   :  { %v6127_v17 = vpop.permute.xlu0 %3557  ;;  %v6129_v16 = vpop.permute.xlu1 %2009 }
 0x5ba   :  { %7712 = vst [vmem:[#allocation106_spill] sm:$0xff] %v6127_v17  ;;  %v2305_v17 = vmul.f32 %v6043_v5, %v6135_v56  ;;  %v2330_v5 = vmul.f32 %v6067_v15, %v6135_v56 }
 0x5bb   :  { %2312 = vrot.lane.b32.xlu0 %v2303_v23, %s4842_s16  ;;  %2389 = vrot.lane.b32.xlu1 %v2379_v28, %s4845_s24  ;;  %v2328_v28 = vmul.f32 %v6067_v15, %v6123_v27  ;;  %v2404_v23 = vmul.f32 %v6137_v22, %v6055_v38  ;;  %v6183_v15 = vstv %s4585_s25  ;;  %s4600_s25 = sld [smem:[#allocation7 + $0x25]] }
 0x5bc   :  { %v2467_v41 = vmul.f32 %v6183_v15, %v6195_v33  ;;  %v2468_v51 = vmul.f32 %v6183_v15, %v6273_v20 }
 0x5bd   :  { %v6141_v44 = vpop.permute.xlu0 %3578  ;;  %v6143_v26 = vpop.permute.xlu1 %2013 }
 0x5be   :  { %7714 = vst [vmem:[#allocation108_spill] sm:$0xff] %v6141_v44  ;;  %v6159_v44 = vstv %s4583_s23  ;;  %s4577_s23 = sld [smem:[#allocation7 + $0xe]] }
 0x5bf   :  { %2316 = vrot.lane.b32.xlu0 %v2305_v17, %s4842_s16  ;;  %2410 = vrot.lane.b32.xlu1 %v2402_v10, %s4846_s3 }
 0x5c1   :  { %v6151_v21 = vpop.permute.xlu0 %3582  ;;  %v6153_v61 = vpop.permute.xlu1 %2034 }
 0x5c2   :  { %7715 = vst [vmem:[#allocation109_spill] sm:$0xff] %v6151_v21  ;;  %v2427_v21 = vmul.f32 %v6159_v44, %v6041_v45 }
 0x5c3   :  { %2337 = vrot.lane.b32.xlu0 %v2328_v28, %s4843_s18  ;;  %2414 = vrot.lane.b32.xlu1 %v2404_v23, %s4846_s3  ;;  %v2353_v28 = vmul.f32 %v6089_v34, %v6123_v27  ;;  %v2429_v23 = vmul.f32 %v6159_v44, %v6055_v38 }
 0x5c5   :  { %v6163_v17 = vpop.permute.xlu0 %3616  ;;  %v6165_v10 = vpop.permute.xlu1 %2038 }
 0x5c6   :  { %7716 = vst [vmem:[#allocation110_spill] sm:$0xff] %v6163_v17  ;;  %v6181_v17 = vld [vmem:[#allocation2 + $0x3] sm:$0xff] }
 0x5c7   :  { %2341 = vrot.lane.b32.xlu0 %v2330_v5, %s4843_s18  ;;  %2435 = vrot.lane.b32.xlu1 %v2427_v21, %s4847_s26  ;;  %7718 = vst [vmem:[#allocation112_spill] sm:$0xff] %v6181_v17  ;;  %v2465_v62 = vmul.f32 %v6183_v15, %v6181_v17  ;;  %v2515_v14 = vmul.f32 %v6229_v7, %v6181_v17 }
 0x5c8   :  { %v2540_v55 = vmul.f32 %v6251_v59, %v6181_v17  ;;  %v2590_v40 = vmul.f32 %v6295_v9, %v6181_v17 }
 0x5c9   :  { %v6173_v42 = vpop.permute.xlu0 %3620  ;;  %v6175_v32 = vpop.permute.xlu1 %2059 }
 0x5ca   :  { %7717 = vst [vmem:[#allocation111_spill] sm:$0xff] %v6173_v42  ;;  %v2355_v42 = vmul.f32 %v6089_v34, %v6135_v56  ;;  %v6207_v34 = vstv %s4586_s0  ;;  %s4601_s0 = sld [smem:[#allocation7 + $0x26]] }
 0x5cb   :  { %2362 = vrot.lane.b32.xlu0 %v2353_v28, %s4844_s20  ;;  %2439 = vrot.lane.b32.xlu1 %v2429_v23, %s4847_s26  ;;  %v2378_v23 = vmul.f32 %v6111_v57, %v6123_v27  ;;  %v2490_v24 = vmul.f32 %v6207_v34, %v6181_v17  ;;  %v2405_v57 = vmul.f32 %v6137_v22, %v6135_v56 }
 0x5cd   :  { %v6187_v21 = vpop.permute.xlu0 %1986  ;;  %v6189_v5 = vpop.permute.xlu1 %2063 }
 0x5cf   :  { %2366 = vrot.lane.b32.xlu0 %v2355_v42, %s4844_s20  ;;  %2473 = vrot.lane.b32.xlu1 %v2465_v62, %s4842_s16 }
 0x5d1   :  { %v6199_v0 = vpop.permute.xlu0 %1990  ;;  %v6201_v28 = vpop.permute.xlu1 %2084 }
 0x5d3   :  { %2387 = vrot.lane.b32.xlu0 %v2378_v23, %s4845_s24  ;;  %2477 = vrot.lane.b32.xlu1 %v2467_v41, %s4842_s16  ;;  %v2403_v41 = vmul.f32 %v6137_v22, %v6123_v27  ;;  %v2492_v23 = vmul.f32 %v6207_v34, %v6195_v33 }
 0x5d5   :  { %v6211_v42 = vpop.permute.xlu0 %2011  ;;  %v6213_v62 = vpop.permute.xlu1 %2088 }
 0x5d7   :  { %2391 = vrot.lane.b32.xlu0 %v2380_v37, %s4845_s24  ;;  %2498 = vrot.lane.b32.xlu1 %v2490_v24, %s4843_s18 }
 0x5d9   :  { %v6221_v11 = vpop.permute.xlu0 %2015  ;;  %v6223_v52 = vpop.permute.xlu1 %2109 }
 0x5db   :  { %2412 = vrot.lane.b32.xlu0 %v2403_v41, %s4846_s3  ;;  %2502 = vrot.lane.b32.xlu1 %v2492_v23, %s4843_s18  ;;  %v2428_v41 = vmul.f32 %v6159_v44, %v6123_v27  ;;  %v2517_v23 = vmul.f32 %v6229_v7, %v6195_v33 }
 0x5dd   :  { %v6233_v37 = vpop.permute.xlu0 %2036  ;;  %v6235_v24 = vpop.permute.xlu1 %2113 }
 0x5df   :  { %2416 = vrot.lane.b32.xlu0 %v2405_v57, %s4846_s3  ;;  %2523 = vrot.lane.b32.xlu1 %v2515_v14, %s4844_s20  ;;  %v2430_v57 = vmul.f32 %v6159_v44, %v6135_v56  ;;  %v6275_v44 = vstv %s4589_s1  ;;  %s4604_s1 = sld [smem:[#allocation7 + $0x29]] }
 0x5e0   :  { %v2565_v3 = vmul.f32 %v6275_v44, %v6181_v17  ;;  %v2567_v25 = vmul.f32 %v6275_v44, %v6195_v33  ;;  %v2541_v17 = vmul.f32 %v6251_v59, %v6263_v50 }
 0x5e1   :  { %v6243_v60 = vpop.permute.xlu0 %2040  ;;  %v6245_v30 = vpop.permute.xlu1 %2147 }
 0x5e3   :  { %2437 = vrot.lane.b32.xlu0 %v2428_v41, %s4847_s26  ;;  %2527 = vrot.lane.b32.xlu1 %v2517_v23, %s4844_s20  ;;  %v2466_v23 = vmul.f32 %v6183_v15, %v6263_v50  ;;  %v2493_v15 = vmul.f32 %v6207_v34, %v6273_v20 }
 0x5e5   :  { %v6255_v22 = vpop.permute.xlu0 %2061  ;;  %v6257_v14 = vpop.permute.xlu1 %2151 }
 0x5e7   :  { %2441 = vrot.lane.b32.xlu0 %v2430_v57, %s4847_s26  ;;  %2548 = vrot.lane.b32.xlu1 %v2540_v55, %s4845_s24 }
 0x5e9   :  { %v6267_v8 = vpop.permute.xlu0 %2065  ;;  %v2173_v41 = vpop.permute.xlu1 %2172 }
 0x5eb   :  { %2475 = vrot.lane.b32.xlu0 %v2466_v23, %s4842_s16  ;;  %2552 = vrot.lane.b32.xlu1 %v2542_v6, %s4845_s24  ;;  %v2491_v6 = vmul.f32 %v6207_v34, %v6263_v50  ;;  %v6315_v34 = vstv %s4592_s5  ;;  %s4607_s5 = sld [smem:[#allocation7 + $0x2c]] }
 0x5ec   :  { %v2628_v13 = vmul.f32 %v6315_v34, %v6313_v47  ;;  %v2630_v48 = vmul.f32 %v6315_v34, %v6333_v46 }
 0x5ed   :  { %v6279_v57 = vpop.permute.xlu0 %2086  ;;  %v6281_v55 = vpop.permute.xlu1 %2176 }
 0x5ef   :  { %2479 = vrot.lane.b32.xlu0 %v2468_v51, %s4842_s16  ;;  %2573 = vrot.lane.b32.xlu1 %v2565_v3, %s4846_s3 }
 0x5f1   :  { %v6289_v54 = vpop.permute.xlu0 %2090  ;;  %v2198_v23 = vpop.permute.xlu1 %2197 }
 0x5f3   :  { %2500 = vrot.lane.b32.xlu0 %v2491_v6, %s4843_s18  ;;  %2577 = vrot.lane.b32.xlu1 %v2567_v25, %s4846_s3  ;;  %v2516_v6 = vmul.f32 %v6229_v7, %v6263_v50  ;;  %v2592_v25 = vmul.f32 %v6295_v9, %v6195_v33 }
 0x5f5   :  { %v6299_v51 = vpop.permute.xlu0 %2111  ;;  %v2202_v3 = vpop.permute.xlu1 %2201 }
 0x5f7   :  { %2504 = vrot.lane.b32.xlu0 %v2493_v15, %s4843_s18  ;;  %2598 = vrot.lane.b32.xlu1 %v2590_v40, %s4847_s26 }
 0x5f9   :  { %v6307_v2 = vpop.permute.xlu0 %2115  ;;  %v2223_v1 = vpop.permute.xlu1 %2222 }
 0x5fb   :  { %2525 = vrot.lane.b32.xlu0 %v2516_v6, %s4844_s20  ;;  %2602 = vrot.lane.b32.xlu1 %v2592_v25, %s4847_s26  ;;  %v1996_v6 = vadd.f32 %v6105_v19, %v1971_v53  ;;  %v2159_v25 = vadd.f32 %v6245_v30, %v2134_v31  ;;  %v2136_v31 = vmul.f32 %v6319_v39, %v5915_v12 }
 0x5fc   :  { %v2653_v12 = vmul.f32 %v6345_v49, %v6313_v47 }
 0x5fd   :  { %v6323_v40 = vpop.permute.xlu0 %2149  ;;  %v2227_v15 = vpop.permute.xlu1 %2226  ;;  %v2184_v53 = vadd.f32 %v2173_v41, %v2159_v25  ;;  %v2161_v56 = vadd.f32 %v6257_v14, %v2136_v31  ;;  %v2568_v31 = vmul.f32 %v6275_v44, %v6273_v20 }
 0x5ff   :  { %2529 = vrot.lane.b32.xlu0 %v2518_v63, %s4844_s20  ;;  %2636 = vrot.lane.b32.xlu1 %v2628_v13, %s4842_s16  ;;  %v1973_v63 = vmul.f32 %v6317_v29, %v5779_v36  ;;  %v2021_v13 = vadd.f32 %v6129_v16, %v1996_v6  ;;  %v2209_v27 = vadd.f32 %v2198_v23, %v2184_v53 }
 0x600   :  { %v2543_v16 = vmul.f32 %v6251_v59, %v6273_v20 }
 0x601   :  { %v6339_v7 = vpop.permute.xlu0 %2153  ;;  %v2248_v33 = vpop.permute.xlu1 %2247  ;;  %v1998_v19 = vadd.f32 %v6117_v4, %v1973_v63  ;;  %v2046_v30 = vadd.f32 %v6153_v61, %v2021_v13  ;;  %v2186_v4 = vadd.f32 %v6281_v55, %v2161_v56  ;;  %v2234_v6 = vadd.f32 %v2223_v1, %v2209_v27 }
 0x602   :  { %v6376_v1 = vstv %s4594_s13  ;;  %s4610_s13 = sld [smem:[#allocation7 + $0x2f]] }
 0x603   :  { %2550 = vrot.lane.b32.xlu0 %v2541_v17, %s4845_s24  ;;  %2640 = vrot.lane.b32.xlu1 %v2630_v48, %s4842_s16  ;;  %v2023_v17 = vadd.f32 %v6143_v26, %v1998_v19  ;;  %v2071_v41 = vadd.f32 %v6175_v32, %v2046_v30  ;;  %v2211_v23 = vadd.f32 %v2202_v3, %v2186_v4 }
 0x604   :  { %v2259_v59 = vadd.f32 %v2248_v33, %v2234_v6  ;;  %v2566_v26 = vmul.f32 %v6275_v44, %v6263_v50  ;;  %v2655_v32 = vmul.f32 %v6345_v49, %v6333_v46  ;;  %v2591_v30 = vmul.f32 %v6295_v9, %v6263_v50 }
 0x605   :  { %v6357_v38 = vpop.permute.xlu0 %2174  ;;  %v2252_v36 = vpop.permute.xlu1 %2251  ;;  %v2048_v61 = vadd.f32 %v6165_v10, %v2023_v17  ;;  %v2096_v14 = vadd.f32 %v6201_v28, %v2071_v41  ;;  %v2236_v10 = vadd.f32 %v2227_v15, %v2211_v23  ;;  %v2680_v44 = vmul.f32 %v6376_v1, %v6333_v46  ;;  %v6410_v41 = vld [vmem:[#allocation2 + $0xc] sm:$0xff] }
 0x606   :  { %v2135_v23 = vmul.f32 %v6319_v39, %v5983_v43 }
 0x607   :  { %2554 = vrot.lane.b32.xlu0 %v2543_v16, %s4845_s24  ;;  %2661 = vrot.lane.b32.xlu1 %v2653_v12, %s4843_s18  ;;  %v2073_v27 = vadd.f32 %v6189_v5, %v2048_v61  ;;  %v2121_v56 = vadd.f32 %v6223_v52, %v2096_v14  ;;  %v2261_v28 = vadd.f32 %v2252_v36, %v2236_v10  ;;  %v6400_v36 = vstv %s4595_s14  ;;  %s4611_s14 = sld [smem:[#allocation7 + $0x30]] }
 0x608   :  { %v2678_v52 = vmul.f32 %v6376_v1, %v6313_v47  ;;  %v2593_v12 = vmul.f32 %v6295_v9, %v6273_v20  ;;  %v2703_v17 = vmul.f32 %v6400_v36, %v6313_v47  ;;  %v2629_v61 = vmul.f32 %v6315_v34, %v6410_v41 }
 0x609   :  { %v6370_v25 = vpop.permute.xlu0 %2178  ;;  %v2273_v48 = vpop.permute.xlu1 %2272  ;;  %v2098_v33 = vadd.f32 %v6213_v62, %v2073_v27  ;;  %v2705_v14 = vmul.f32 %v6400_v36, %v6333_v46  ;;  %v1972_v9 = vmul.f32 %v6317_v29, %v5843_v58  ;;  %v1974_v10 = vmul.f32 %v6317_v29, %v5855_v35 }
 0x60a   :  { %v2284_v55 = vadd.f32 %v2273_v48, %v2259_v59  ;;  %v6424_v59 = vld [vmem:[#allocation2 + $0x24] sm:$0xff]  ;;  %v6426_v48 = vstv %s4596_s15  ;;  %v2654_v35 = vmul.f32 %v6345_v49, %v6410_v41  ;;  %s4635_s15 = sld [smem:[#allocation7 + $0x48]] }
 0x60b   :  { %2575 = vrot.lane.b32.xlu0 %v2566_v26, %s4846_s3  ;;  %2665 = vrot.lane.b32.xlu1 %v2655_v32, %s4843_s18  ;;  %v2123_v5 = vadd.f32 %v6235_v24, %v2098_v33  ;;  %v1997_v26 = vadd.f32 %v6187_v21, %v1972_v9  ;;  %v2160_v32 = vadd.f32 %v6323_v40, %v2135_v23  ;;  %v6480_v9 = vstv %s4599_s19  ;;  %s4636_s19 = sld [smem:[#allocation7 + $0x49]] }
 0x60c   :  { %v6383_v3 = vadd.f32 %v2284_v55, %v2121_v56  ;;  %v2631_v58 = vmul.f32 %v6315_v34, %v6424_v59  ;;  %v2728_v43 = vmul.f32 %v6426_v48, %v6313_v47  ;;  %v2137_v33 = vmul.f32 %v6319_v39, %v5995_v18 }
 0x60d   :  { %v2200_v63 = vpop.permute.xlu0 %2199  ;;  %v2277_v13 = vpop.permute.xlu1 %2276  ;;  %v2022_v55 = vadd.f32 %v6211_v42, %v1997_v26  ;;  %v2185_v21 = vadd.f32 %v6357_v38, %v2160_v32  ;;  %v1999_v40 = vadd.f32 %v6199_v0, %v1974_v10  ;;  %v2730_v39 = vmul.f32 %v6426_v48, %v6333_v46 }
 0x60e   :  { %v2286_v15 = vadd.f32 %v2277_v13, %v2261_v28  ;;  %v2162_v28 = vadd.f32 %v6339_v7, %v2137_v33  ;;  %v6453_v38 = vstv %s4597_s17  ;;  %s4591_s17 = sld [smem:[#allocation7 + $0x1c]] }
 0x60f   :  { %2579 = vrot.lane.b32.xlu0 %v2568_v31, %s4846_s3  ;;  %2686 = vrot.lane.b32.xlu1 %v2678_v52, %s4844_s20  ;;  %v2047_v34 = vadd.f32 %v6233_v37, %v2022_v55  ;;  %v2210_v13 = vadd.f32 %v2200_v63, %v2185_v21  ;;  %v2024_v18 = vadd.f32 %v6221_v11, %v1999_v40  ;;  %v7720_v40 = vld [vmem:[#allocation94_spill] sm:$0xff] }
 0x610   :  { %v6392_v53 = vadd.f32 %v2286_v15, %v2123_v5  ;;  %v2187_v0 = vadd.f32 %v6370_v25, %v2162_v28  ;;  %v2656_v11 = vmul.f32 %v6345_v49, %v6424_v59  ;;  %v6510_v28 = vstv %s4600_s25  ;;  %s4641_s25 = sld [smem:[#allocation7 + $0x4e]] }
 0x611   :  { %v2204_v62 = vpop.permute.xlu0 %2203  ;;  %v6394_v19 = vpop.permute.xlu1 %2310  ;;  %v2072_v42 = vadd.f32 %v6255_v22, %v2047_v34  ;;  %v2049_v7 = vadd.f32 %v6243_v60, %v2024_v18  ;;  %v2753_v22 = vmul.f32 %v6453_v38, %v6313_v47 }
 0x612   :  { %v2212_v52 = vadd.f32 %v2204_v62, %v2187_v0 }
 0x613   :  { %2600 = vrot.lane.b32.xlu0 %v2591_v30, %s4847_s26  ;;  %2690 = vrot.lane.b32.xlu1 %v2680_v44, %s4844_s20  ;;  %v2097_v63 = vadd.f32 %v6279_v57, %v2072_v42  ;;  %v2074_v25 = vadd.f32 %v6267_v8, %v2049_v7  ;;  %v2755_v8 = vmul.f32 %v6453_v38, %v6333_v46 }
 0x615   :  { %v2225_v24 = vpop.permute.xlu0 %2224  ;;  %v6404_v16 = vpop.permute.xlu1 %2314  ;;  %v2122_v44 = vadd.f32 %v6299_v51, %v2097_v63  ;;  %v2099_v60 = vadd.f32 %v6289_v54, %v2074_v25  ;;  %v6482_v54 = vstv %s4577_s23  ;;  %s4637_s23 = sld [smem:[#allocation7 + $0x4a]] }
 0x616   :  { %v2235_v37 = vadd.f32 %v2225_v24, %v2210_v13 }
 0x617   :  { %2604 = vrot.lane.b32.xlu0 %v2593_v12, %s4847_s26  ;;  %2711 = vrot.lane.b32.xlu1 %v2703_v17, %s4845_s24  ;;  %v2124_v51 = vadd.f32 %v6307_v2, %v2099_v60  ;;  %v2681_v2 = vmul.f32 %v6376_v1, %v6424_v59 }
 0x619   :  { %v2229_v4 = vpop.permute.xlu0 %2228  ;;  %v6414_v6 = vpop.permute.xlu1 %2335 }
 0x61a   :  { %v2237_v24 = vadd.f32 %v2229_v4, %v2212_v52 }
 0x61b   :  { %2638 = vrot.lane.b32.xlu0 %v2629_v61, %s4842_s16  ;;  %2715 = vrot.lane.b32.xlu1 %v2705_v14, %s4845_s24  ;;  %v2679_v61 = vmul.f32 %v6376_v1, %v6410_v41  ;;  %v6478_v14 = vld [vmem:[#allocation2 + $0x5] sm:$0xff]  ;;  %v2704_v1 = vmul.f32 %v6400_v36, %v6410_v41 }
 0x61c   :  { %v2816_v18 = vmul.f32 %v6510_v28, %v6478_v14 }
 0x61d   :  { %v2250_v27 = vpop.permute.xlu0 %2249  ;;  %v6432_v56 = vpop.permute.xlu1 %2339 }
 0x61e   :  { %v2260_v5 = vadd.f32 %v2250_v27, %v2235_v37  ;;  %v2791_v27 = vmul.f32 %v6480_v9, %v6478_v14 }
 0x61f   :  { %2642 = vrot.lane.b32.xlu0 %v2631_v58, %s4842_s16  ;;  %2736 = vrot.lane.b32.xlu1 %v2728_v43, %s4846_s3  ;;  %v2297_v58 = vmul.f32 %v6482_v54, %v6041_v45  ;;  %v6496_v43 = vld [vmem:[#allocation2 + $0x1d] sm:$0xff]  ;;  %v2299_v45 = vmul.f32 %v6482_v54, %v7720_v40 }
 0x620   :  { %v2793_v21 = vmul.f32 %v6480_v9, %v6496_v43 }
 0x621   :  { %v2254_v31 = vpop.permute.xlu0 %2253  ;;  %v2361_v29 = vpop.permute.xlu1 %2360  ;;  %v2322_v10 = vadd.f32 %v6394_v19, %v2297_v58  ;;  %v2324_v19 = vadd.f32 %v6404_v16, %v2299_v45  ;;  %v6570_v58 = vld [vmem:[#allocation2 + $0x25] sm:$0xff] }
 0x622   :  { %v2262_v57 = vadd.f32 %v2254_v31, %v2237_v24  ;;  %v2794_v40 = vmul.f32 %v6480_v9, %v6570_v58 }
 0x623   :  { %2663 = vrot.lane.b32.xlu0 %v2654_v35, %s4843_s18  ;;  %2740 = vrot.lane.b32.xlu1 %v2730_v39, %s4846_s3  ;;  %v2347_v34 = vadd.f32 %v6414_v6, %v2322_v10  ;;  %v2706_v39 = vmul.f32 %v6400_v36, %v6424_v59  ;;  %v2349_v6 = vadd.f32 %v6432_v56, %v2324_v19  ;;  %v6572_v10 = vstv %s4603_s28  ;;  %s4643_s28 = sld [smem:[#allocation7 + $0x50]] }
 0x624   :  { %v2818_v36 = vmul.f32 %v6510_v28, %v6496_v43  ;;  %v2891_v45 = vmul.f32 %v6572_v10, %v6478_v14 }
 0x625   :  { %v2275_v15 = vpop.permute.xlu0 %2274  ;;  %v2365_v30 = vpop.permute.xlu1 %2364  ;;  %v2372_v13 = vadd.f32 %v2361_v29, %v2347_v34  ;;  %v2729_v29 = vmul.f32 %v6426_v48, %v6410_v41  ;;  %v7722_v34 = vld [vmem:[#allocation107_spill] sm:$0xff] }
 0x626   :  { %v2285_v12 = vadd.f32 %v2275_v15, %v2260_v5  ;;  %v2374_v0 = vadd.f32 %v2365_v30, %v2349_v6  ;;  %v6526_v5 = vstv %s4601_s0  ;;  %v2300_v19 = vmul.f32 %v6482_v54, %v7722_v34  ;;  %s4642_s0 = sld [smem:[#allocation7 + $0x4f]] }
 0x627   :  { %2667 = vrot.lane.b32.xlu0 %v2656_v11, %s4843_s18  ;;  %2761 = vrot.lane.b32.xlu1 %v2753_v22, %s4847_s26  ;;  %v2731_v22 = vmul.f32 %v6426_v48, %v6424_v59  ;;  %v2841_v25 = vmul.f32 %v6526_v5, %v6478_v14  ;;  %v2843_v48 = vmul.f32 %v6526_v5, %v6496_v43  ;;  %v6642_v34 = vstv %s4607_s5  ;;  %s4638_s5 = sld [smem:[#allocation7 + $0x4b]] }
 0x628   :  { %v6471_v62 = vadd.f32 %v2285_v12, %v2122_v44 }
 0x629   :  { %v2279_v17 = vpop.permute.xlu0 %2278  ;;  %v2386_v49 = vpop.permute.xlu1 %2385 }
 0x62a   :  { %v2287_v4 = vadd.f32 %v2279_v17, %v2262_v57  ;;  %v2397_v42 = vadd.f32 %v2386_v49, %v2372_v13  ;;  %v6548_v57 = vstv %s4602_s27  ;;  %s4648_s27 = sld [smem:[#allocation7 + $0x55]] }
 0x62b   :  { %2688 = vrot.lane.b32.xlu0 %v2679_v61, %s4844_s20  ;;  %2765 = vrot.lane.b32.xlu1 %v2755_v8, %s4847_s26  ;;  %v2866_v61 = vmul.f32 %v6548_v57, %v6478_v14  ;;  %v6558_v8 = vld [vmem:[#allocation2 + $0xd] sm:$0xff] }
 0x62c   :  { %v6486_v23 = vadd.f32 %v2287_v4, %v2124_v51  ;;  %v2817_v6 = vmul.f32 %v6510_v28, %v6558_v8 }
 0x62d   :  { %v6488_v26 = vpop.permute.xlu0 %2312  ;;  %v2390_v32 = vpop.permute.xlu1 %2389 }
 0x62e   :  { %v2399_v63 = vadd.f32 %v2390_v32, %v2374_v0  ;;  %v2792_v32 = vmul.f32 %v6480_v9, %v6558_v8  ;;  %v2893_v9 = vmul.f32 %v6572_v10, %v6496_v43 }
 0x62f   :  { %2692 = vrot.lane.b32.xlu0 %v2681_v2, %s4844_s20  ;;  %2799 = vrot.lane.b32.xlu1 %v2791_v27, %s4842_s16  ;;  %v2868_v2 = vmul.f32 %v6548_v57, %v6496_v43  ;;  %v7721_v27 = vld [vmem:[#allocation105_spill] sm:$0xff] }
 0x631   :  { %v6501_v55 = vpop.permute.xlu0 %2316  ;;  %v2411_v33 = vpop.permute.xlu1 %2410 }
 0x632   :  { %v2422_v37 = vadd.f32 %v2411_v33, %v2397_v42 }
 0x633   :  { %2713 = vrot.lane.b32.xlu0 %v2704_v1, %s4845_s24  ;;  %2803 = vrot.lane.b32.xlu1 %v2793_v21, %s4842_s16 }
 0x635   :  { %v2338_v31 = vpop.permute.xlu0 %2337  ;;  %v2415_v35 = vpop.permute.xlu1 %2414 }
 0x636   :  { %v2424_v56 = vadd.f32 %v2415_v35, %v2399_v63  ;;  %v2325_v35 = vadd.f32 %v6501_v55, %v2300_v19 }
 0x637   :  { %2717 = vrot.lane.b32.xlu0 %v2706_v39, %s4845_s24  ;;  %2824 = vrot.lane.b32.xlu1 %v2816_v18, %s4843_s18 }
 0x639   :  { %v2342_v7 = vpop.permute.xlu0 %2341  ;;  %v2436_v16 = vpop.permute.xlu1 %2435 }
 0x63a   :  { %v2447_v52 = vadd.f32 %v2436_v16, %v2422_v37  ;;  %v2350_v42 = vadd.f32 %v2342_v7, %v2325_v35  ;;  %v6592_v37 = vstv %s4604_s1  ;;  %s4598_s1 = sld [smem:[#allocation7 + $0x23]] }
 0x63b   :  { %2738 = vrot.lane.b32.xlu0 %v2729_v29, %s4846_s3  ;;  %2828 = vrot.lane.b32.xlu1 %v2818_v36, %s4843_s18  ;;  %v2819_v29 = vmul.f32 %v6510_v28, %v6570_v58  ;;  %v2916_v36 = vmul.f32 %v6592_v37, %v6478_v14  ;;  %v2918_v28 = vmul.f32 %v6592_v37, %v6496_v43 }
 0x63c   :  { %v6531_v15 = vadd.f32 %v2447_v52, %v6383_v3  ;;  %v2754_v3 = vmul.f32 %v6453_v38, %v6410_v41 }
 0x63d   :  { %v2363_v30 = vpop.permute.xlu0 %2362  ;;  %v2440_v11 = vpop.permute.xlu1 %2439 }
 0x63e   :  { %v2449_v44 = vadd.f32 %v2440_v11, %v2424_v56 }
 0x63f   :  { %2742 = vrot.lane.b32.xlu0 %v2731_v22, %s4846_s3  ;;  %2849 = vrot.lane.b32.xlu1 %v2841_v25, %s4844_s20  ;;  %v2842_v22 = vmul.f32 %v6526_v5, %v6558_v8 }
 0x640   :  { %v6540_v24 = vadd.f32 %v2449_v44, %v6392_v53  ;;  %v2756_v53 = vmul.f32 %v6453_v38, %v6424_v59  ;;  %v2298_v38 = vmul.f32 %v6482_v54, %v7721_v27  ;;  %v6609_v44 = vld [vmem:[#allocation2 + $0x6] sm:$0xff] }
 0x641   :  { %v2367_v12 = vpop.permute.xlu0 %2366  ;;  %v6542_v60 = vpop.permute.xlu1 %2473 }
 0x642   :  { %v2323_v33 = vadd.f32 %v6488_v26, %v2298_v38  ;;  %v2375_v54 = vadd.f32 %v2367_v12, %v2350_v42  ;;  %v6611_v12 = vstv %s4606_s29  ;;  %s4649_s29 = sld [smem:[#allocation7 + $0x56]] }
 0x643   :  { %2763 = vrot.lane.b32.xlu0 %v2754_v3, %s4847_s26  ;;  %2853 = vrot.lane.b32.xlu1 %v2843_v48, %s4844_s20  ;;  %v6613_v3 = vstv %s4584_s30  ;;  %s4655_s30 = sld [smem:[#allocation7 + $0x5c]] }
 0x644   :  { %v2348_v13 = vadd.f32 %v2338_v31, %v2323_v33 }
 0x645   :  { %v2388_v17 = vpop.permute.xlu0 %2387  ;;  %v6552_v49 = vpop.permute.xlu1 %2477 }
 0x646   :  { %v2373_v26 = vadd.f32 %v2363_v30, %v2348_v13 }
 0x647   :  { %2767 = vrot.lane.b32.xlu0 %v2756_v53, %s4847_s26  ;;  %2874 = vrot.lane.b32.xlu1 %v2866_v61, %s4845_s24  ;;  %v2844_v53 = vmul.f32 %v6526_v5, %v6570_v58  ;;  %v2954_v61 = vmul.f32 %v6611_v12, %v6609_v44  ;;  %v2867_v5 = vmul.f32 %v6548_v57, %v6558_v8 }
 0x648   :  { %v2398_v0 = vadd.f32 %v2388_v17, %v2373_v26  ;;  %v2869_v26 = vmul.f32 %v6548_v57, %v6570_v58 }
 0x649   :  { %v2392_v51 = vpop.permute.xlu0 %2391  ;;  %v6562_v4 = vpop.permute.xlu1 %2498 }
 0x64a   :  { %v2400_v7 = vadd.f32 %v2392_v51, %v2375_v54  ;;  %v7723_v51 = vld [vmem:[#allocation112_spill] sm:$0xff] }
 0x64b   :  { %2801 = vrot.lane.b32.xlu0 %v2792_v32, %s4842_s16  ;;  %2878 = vrot.lane.b32.xlu1 %v2868_v2, %s4845_s24  ;;  %v2460_v32 = vmul.f32 %v6613_v3, %v7723_v51  ;;  %v6628_v2 = vld [vmem:[#allocation2 + $0x1e] sm:$0xff] }
 0x64c   :  { %v2956_v33 = vmul.f32 %v6611_v12, %v6628_v2  ;;  %v2981_v57 = vmul.f32 %v6642_v34, %v6628_v2 }
 0x64d   :  { %v2413_v1 = vpop.permute.xlu0 %2412  ;;  %v6577_v21 = vpop.permute.xlu1 %2502 }
 0x64e   :  { %v2423_v55 = vadd.f32 %v2413_v1, %v2398_v0  ;;  %v7724_v1 = vld [vmem:[#allocation113_spill] sm:$0xff] }
 0x64f   :  { %2805 = vrot.lane.b32.xlu0 %v2794_v40, %s4842_s16  ;;  %2899 = vrot.lane.b32.xlu1 %v2891_v45, %s4846_s3  ;;  %v2462_v40 = vmul.f32 %v6613_v3, %v7724_v1 }
 0x651   :  { %v2417_v39 = vpop.permute.xlu0 %2416  ;;  %v2524_v18 = vpop.permute.xlu1 %2523 }
 0x652   :  { %v2425_v52 = vadd.f32 %v2417_v39, %v2400_v7  ;;  %v2979_v39 = vmul.f32 %v6642_v34, %v6609_v44  ;;  %v2894_v7 = vmul.f32 %v6572_v10, %v6570_v58 }
 0x653   :  { %2826 = vrot.lane.b32.xlu0 %v2817_v6, %s4843_s18  ;;  %2903 = vrot.lane.b32.xlu1 %v2893_v9, %s4846_s3 }
 0x655   :  { %v2438_v31 = vpop.permute.xlu0 %2437  ;;  %v2528_v16 = vpop.permute.xlu1 %2527 }
 0x656   :  { %v2448_v63 = vadd.f32 %v2438_v31, %v2423_v55  ;;  %v6658_v31 = vstv %s4608_s6  ;;  %s4644_s6 = sld [smem:[#allocation7 + $0x51]] }
 0x657   :  { %2830 = vrot.lane.b32.xlu0 %v2819_v29, %s4843_s18  ;;  %2924 = vrot.lane.b32.xlu1 %v2916_v36, %s4847_s26 }
 0x658   :  { %v6603_v56 = vadd.f32 %v2448_v63, %v6471_v62  ;;  %v3004_v63 = vmul.f32 %v6658_v31, %v6609_v44 }
 0x659   :  { %v2442_v30 = vpop.permute.xlu0 %2441  ;;  %v2549_v11 = vpop.permute.xlu1 %2548 }
 0x65a   :  { %v2450_v25 = vadd.f32 %v2442_v30, %v2425_v52 }
 0x65b   :  { %2851 = vrot.lane.b32.xlu0 %v2842_v22, %s4844_s20  ;;  %2928 = vrot.lane.b32.xlu1 %v2918_v28, %s4847_s26  ;;  %v6680_v28 = vstv %s4609_s7  ;;  %s4650_s7 = sld [smem:[#allocation7 + $0x57]] }
 0x65c   :  { %v6618_v62 = vadd.f32 %v2450_v25, %v6486_v23  ;;  %v2485_v23 = vadd.f32 %v6542_v60, %v2460_v32  ;;  %v2487_v60 = vadd.f32 %v6552_v49, %v2462_v40 }
 0x65d   :  { %v6620_v48 = vpop.permute.xlu0 %2475  ;;  %v2553_v17 = vpop.permute.xlu1 %2552 }
 0x65e   :  { %v2510_v45 = vadd.f32 %v6562_v4, %v2485_v23  ;;  %v2512_v4 = vadd.f32 %v6577_v21, %v2487_v60 }
 0x65f   :  { %2855 = vrot.lane.b32.xlu0 %v2844_v53, %s4844_s20  ;;  %2962 = vrot.lane.b32.xlu1 %v2954_v61, %s4842_s16  ;;  %v3029_v53 = vmul.f32 %v6680_v28, %v6609_v44  ;;  %v6690_v61 = vld [vmem:[#allocation2 + $0xe] sm:$0xff] }
 0x660   :  { %v2535_v19 = vadd.f32 %v2524_v18, %v2510_v45  ;;  %v2537_v9 = vadd.f32 %v2528_v16, %v2512_v4  ;;  %v2892_v18 = vmul.f32 %v6572_v10, %v6558_v8  ;;  %v3006_v10 = vmul.f32 %v6658_v31, %v6628_v2 }
 0x661   :  { %v6633_v27 = vpop.permute.xlu0 %2479  ;;  %v2574_v38 = vpop.permute.xlu1 %2573  ;;  %v2955_v23 = vmul.f32 %v6611_v12, %v6690_v61 }
 0x662   :  { %v2560_v6 = vadd.f32 %v2549_v11, %v2535_v19  ;;  %v2562_v54 = vadd.f32 %v2553_v17, %v2537_v9  ;;  %v2463_v19 = vmul.f32 %v6613_v3, %v6273_v20 }
 0x663   :  { %2876 = vrot.lane.b32.xlu0 %v2867_v5, %s4845_s24  ;;  %2966 = vrot.lane.b32.xlu1 %v2956_v33, %s4842_s16  ;;  %v6702_v5 = vld [vmem:[#allocation2 + $0x26] sm:$0xff]  ;;  %v6704_v33 = vstv %s4610_s13  ;;  %s4656_s13 = sld [smem:[#allocation7 + $0x5d]] }
 0x664   :  { %v2585_v42 = vadd.f32 %v2574_v38, %v2560_v6  ;;  %v3031_v38 = vmul.f32 %v6680_v28, %v6628_v2  ;;  %v2957_v60 = vmul.f32 %v6611_v12, %v6702_v5  ;;  %v2980_v6 = vmul.f32 %v6642_v34, %v6690_v61 }
 0x665   :  { %v2501_v13 = vpop.permute.xlu0 %2500  ;;  %v2578_v35 = vpop.permute.xlu1 %2577  ;;  %v3056_v12 = vmul.f32 %v6704_v33, %v6628_v2 }
 0x666   :  { %v2587_v21 = vadd.f32 %v2578_v35, %v2562_v54 }
 0x667   :  { %2880 = vrot.lane.b32.xlu0 %v2869_v26, %s4845_s24  ;;  %2987 = vrot.lane.b32.xlu1 %v2979_v39, %s4843_s18  ;;  %v2488_v26 = vadd.f32 %v6633_v27, %v2463_v19 }
 0x669   :  { %v2505_v0 = vpop.permute.xlu0 %2504  ;;  %v2599_v49 = vpop.permute.xlu1 %2598 }
 0x66a   :  { %v2610_v55 = vadd.f32 %v2599_v49, %v2585_v42  ;;  %v2513_v9 = vadd.f32 %v2505_v0, %v2488_v26  ;;  %v6724_v49 = vstv %s4611_s14  ;;  %v3032_v26 = vmul.f32 %v6680_v28, %v6702_v5  ;;  %s4605_s14 = sld [smem:[#allocation7 + $0x2a]] }
 0x66b   :  { %2901 = vrot.lane.b32.xlu0 %v2892_v18, %s4846_s3  ;;  %2991 = vrot.lane.b32.xlu1 %v2981_v57, %s4843_s18  ;;  %v2982_v18 = vmul.f32 %v6642_v34, %v6702_v5  ;;  %v3079_v57 = vmul.f32 %v6724_v49, %v6609_v44  ;;  %v3081_v34 = vmul.f32 %v6724_v49, %v6628_v2 }
 0x66c   :  { %v6663_v16 = vadd.f32 %v2610_v55, %v6531_v15  ;;  %v2917_v15 = vmul.f32 %v6592_v37, %v6558_v8 }
 0x66d   :  { %v2526_v29 = vpop.permute.xlu0 %2525  ;;  %v2603_v36 = vpop.permute.xlu1 %2602 }
 0x66e   :  { %v2612_v52 = vadd.f32 %v2603_v36, %v2587_v21 }
 0x66f   :  { %2905 = vrot.lane.b32.xlu0 %v2894_v7, %s4846_s3  ;;  %3012 = vrot.lane.b32.xlu1 %v3004_v63, %s4844_s20  ;;  %v3005_v7 = vmul.f32 %v6658_v31, %v6690_v61 }
 0x670   :  { %v6672_v30 = vadd.f32 %v2612_v52, %v6540_v24  ;;  %v2919_v24 = vmul.f32 %v6592_v37, %v6570_v58  ;;  %v2461_v37 = vmul.f32 %v6613_v3, %v6263_v50  ;;  %v3054_v50 = vmul.f32 %v6704_v33, %v6609_v44 }
 0x671   :  { %v2530_v11 = vpop.permute.xlu0 %2529  ;;  %v6674_v22 = vpop.permute.xlu1 %2636  ;;  %v6741_v52 = vstv %s4635_s15  ;;  %s4612_s15 = sld [smem:[#allocation7 + $0x31]] }
 0x672   :  { %v2486_v1 = vadd.f32 %v6620_v48, %v2461_v37  ;;  %v2538_v20 = vadd.f32 %v2530_v11, %v2513_v9  ;;  %v6743_v11 = vstv %s4591_s17  ;;  %v6767_v37 = vld [vmem:[#allocation2 + $0x4b] sm:$0xff]  ;;  %s4619_s17 = sld [smem:[#allocation7 + $0x38]] }
 0x673   :  { %2926 = vrot.lane.b32.xlu0 %v2917_v15, %s4847_s26  ;;  %3016 = vrot.lane.b32.xlu1 %v3006_v10, %s4844_s20  ;;  %7725 = vst [vmem:[#allocation94_spill] sm:$0xff] %v6767_v37 }
 0x674   :  { %v2511_v35 = vadd.f32 %v2501_v13, %v2486_v1  ;;  %v3633_v1 = vmul.f32 %v6767_v37, %v6741_v52 }
 0x675   :  { %v2551_v25 = vpop.permute.xlu0 %2550  ;;  %v6684_v17 = vpop.permute.xlu1 %2640 }
 0x676   :  { %v2536_v48 = vadd.f32 %v2526_v29, %v2511_v35 }
 0x677   :  { %2930 = vrot.lane.b32.xlu0 %v2919_v24, %s4847_s26  ;;  %3037 = vrot.lane.b32.xlu1 %v3029_v53, %s4845_s24  ;;  %v6754_v24 = vld [vmem:[#allocation2 + $0x33] sm:$0xff] }
 0x678   :  { %v2561_v42 = vadd.f32 %v2551_v25, %v2536_v48  ;;  %v3007_v25 = vmul.f32 %v6658_v31, %v6702_v5  ;;  %v3631_v53 = vmul.f32 %v6754_v24, %v6741_v52  ;;  %v3030_v31 = vmul.f32 %v6680_v28, %v6690_v61 }
 0x679   :  { %v2555_v51 = vpop.permute.xlu0 %2554  ;;  %v6694_v32 = vpop.permute.xlu1 %2661 }
 0x67a   :  { %v2563_v0 = vadd.f32 %v2555_v51, %v2538_v20  ;;  %v2623_v51 = vmul.f32 %v6743_v11, %v6313_v47  ;;  %v2625_v47 = vmul.f32 %v6743_v11, %v6333_v46 }
 0x67b   :  { %2964 = vrot.lane.b32.xlu0 %v2955_v23, %s4842_s16  ;;  %3041 = vrot.lane.b32.xlu1 %v3031_v38, %s4845_s24 }
 0x67d   :  { %v2576_v40 = vpop.permute.xlu0 %2575  ;;  %v6709_v45 = vpop.permute.xlu1 %2665 }
 0x67e   :  { %v2586_v3 = vadd.f32 %v2576_v40, %v2561_v42 }
 0x67f   :  { %2968 = vrot.lane.b32.xlu0 %v2957_v60, %s4842_s16  ;;  %3062 = vrot.lane.b32.xlu1 %v3054_v50, %s4846_s3  ;;  %v6774_v60 = vstv %s4636_s19  ;;  %s4626_s19 = sld [smem:[#allocation7 + $0x3f]] }
 0x680   :  { %v3656_v46 = vmul.f32 %v6754_v24, %v6774_v60  ;;  %v3658_v28 = vmul.f32 %v6767_v37, %v6774_v60 }
 0x681   :  { %v2580_v39 = vpop.permute.xlu0 %2579  ;;  %v2687_v4 = vpop.permute.xlu1 %2686 }
 0x682   :  { %v2588_v55 = vadd.f32 %v2580_v39, %v2563_v0 }
 0x683   :  { %2989 = vrot.lane.b32.xlu0 %v2980_v6, %s4843_s18  ;;  %3066 = vrot.lane.b32.xlu1 %v3056_v12, %s4846_s3  ;;  %v3055_v12 = vmul.f32 %v6704_v33, %v6690_v61 }
 0x685   :  { %v2601_v27 = vpop.permute.xlu0 %2600  ;;  %v2691_v13 = vpop.permute.xlu1 %2690 }
 0x686   :  { %v2611_v54 = vadd.f32 %v2601_v27, %v2586_v3 }
 0x687   :  { %2993 = vrot.lane.b32.xlu0 %v2982_v18, %s4843_s18  ;;  %3087 = vrot.lane.b32.xlu1 %v3079_v57, %s4847_s26  ;;  %v3057_v18 = vmul.f32 %v6704_v33, %v6702_v5  ;;  %v3080_v33 = vmul.f32 %v6724_v49, %v6690_v61 }
 0x688   :  { %v6735_v21 = vadd.f32 %v2611_v54, %v6603_v56  ;;  %v6805_v54 = vld [vmem:[#allocation2 + $0x3c] sm:$0xff] }
 0x689   :  { %v2605_v29 = vpop.permute.xlu0 %2604  ;;  %v2712_v36 = vpop.permute.xlu1 %2711 }
 0x68a   :  { %v2613_v63 = vadd.f32 %v2605_v29, %v2588_v55  ;;  %v6807_v55 = vstv %s4641_s25  ;;  %s7061_s25 = sld [smem:[#allocation7 + $0x52]] }
 0x68b   :  { %3014 = vrot.lane.b32.xlu0 %v3005_v7, %s4844_s20  ;;  %3091 = vrot.lane.b32.xlu1 %v3081_v34, %s4847_s26  ;;  %v3770_v7 = vmul.f32 %v6807_v55, %v6805_v54  ;;  %v6820_v34 = vld [vmem:[#allocation2 + $0x54] sm:$0xff] }
 0x68c   :  { %v6748_v56 = vadd.f32 %v2613_v63, %v6618_v62  ;;  %v2648_v62 = vadd.f32 %v6674_v22, %v2623_v51  ;;  %v2650_v22 = vadd.f32 %v6684_v17, %v2625_v47 }
 0x68d   :  { %v6750_v15 = vpop.permute.xlu0 %2638  ;;  %v2716_v10 = vpop.permute.xlu1 %2715 }
 0x68e   :  { %v2673_v40 = vadd.f32 %v6694_v32, %v2648_v62  ;;  %v2675_v32 = vadd.f32 %v6709_v45, %v2650_v22  ;;  %v6794_v45 = vstv %s4637_s23  ;;  %s4639_s23 = sld [smem:[#allocation7 + $0x4c]] }
 0x68f   :  { %3018 = vrot.lane.b32.xlu0 %v3007_v25, %s4844_s20  ;;  %3639 = vrot.lane.b32.xlu1 %v3631_v53, %s4843_s18  ;;  %v3681_v57 = vmul.f32 %v6754_v24, %v6794_v45  ;;  %v3772_v25 = vmul.f32 %v6807_v55, %v6820_v34  ;;  %v6830_v53 = vstv %s4642_s0  ;;  %s7136_s0 = sld [smem:[#allocation7 + $0x46]] }
 0x690   :  { %v2698_v50 = vadd.f32 %v2687_v4, %v2673_v40  ;;  %v2700_v39 = vadd.f32 %v2691_v13, %v2675_v32  ;;  %v6858_v32 = vld [vmem:[#allocation2 + $0x3d] sm:$0xff] }
 0x691   :  { %v6763_v23 = vpop.permute.xlu0 %2642  ;;  %v2737_v38 = vpop.permute.xlu1 %2736 }
 0x692   :  { %v2723_v48 = vadd.f32 %v2712_v36, %v2698_v50  ;;  %v2725_v9 = vadd.f32 %v2716_v10, %v2700_v39  ;;  %v6849_v50 = vld [vmem:[#allocation2 + $0x53] sm:$0xff] }
 0x693   :  { %3039 = vrot.lane.b32.xlu0 %v3030_v31, %s4845_s24  ;;  %3643 = vrot.lane.b32.xlu1 %v3633_v1, %s4843_s18  ;;  %v2624_v1 = vmul.f32 %v6743_v11, %v6410_v41  ;;  %v2626_v41 = vmul.f32 %v6743_v11, %v6424_v59 }
 0x694   :  { %v2748_v17 = vadd.f32 %v2737_v38, %v2723_v48  ;;  %v6836_v38 = vld [vmem:[#allocation2 + $0x3b] sm:$0xff]  ;;  %v6860_v48 = vstv %s4648_s27  ;;  %s7144_s27 = sld [smem:[#allocation7 + $0x5e]] }
 0x695   :  { %v6779_v19 = vpop.permute.xlu0 %2663  ;;  %v2741_v35 = vpop.permute.xlu1 %2740  ;;  %v3632_v31 = vmul.f32 %v6836_v38, %v6741_v52  ;;  %v2649_v47 = vadd.f32 %v6750_v15, %v2624_v1  ;;  %v2651_v15 = vadd.f32 %v6763_v23, %v2626_v41  ;;  %v3933_v59 = vmul.f32 %v6860_v48, %v6858_v32 }
 0x696   :  { %v2750_v20 = vadd.f32 %v2741_v35, %v2725_v9  ;;  %v3634_v35 = vmul.f32 %v6849_v50, %v6741_v52 }
 0x697   :  { %3043 = vrot.lane.b32.xlu0 %v3032_v26, %s4845_s24  ;;  %3664 = vrot.lane.b32.xlu1 %v3656_v46, %s4844_s20  ;;  %v3797_v26 = vmul.f32 %v6830_v53, %v6820_v34  ;;  %v2674_v46 = vadd.f32 %v6779_v19, %v2649_v47 }
 0x699   :  { %v6788_v4 = vpop.permute.xlu0 %2667  ;;  %v2762_v6 = vpop.permute.xlu1 %2761 }
 0x69a   :  { %v2773_v42 = vadd.f32 %v2762_v6, %v2748_v17  ;;  %v3657_v6 = vmul.f32 %v6836_v38, %v6774_v60  ;;  %v2676_v11 = vadd.f32 %v6788_v4, %v2651_v15  ;;  %v6920_v15 = vld [vmem:[#allocation2 + $0x35] sm:$0xff] }
 0x69b   :  { %3064 = vrot.lane.b32.xlu0 %v3055_v12, %s4846_s3  ;;  %3668 = vrot.lane.b32.xlu1 %v3658_v28, %s4844_s20  ;;  %v6870_v12 = vld [vmem:[#allocation2 + $0x55] sm:$0xff] }
 0x69c   :  { %v6799_v3 = vadd.f32 %v2773_v42, %v6663_v16 }
 0x69d   :  { %v2689_v27 = vpop.permute.xlu0 %2688  ;;  %v2766_v13 = vpop.permute.xlu1 %2765 }
 0x69e   :  { %v2775_v0 = vadd.f32 %v2766_v13, %v2750_v20  ;;  %v2699_v39 = vadd.f32 %v2689_v27, %v2674_v46  ;;  %v3659_v20 = vmul.f32 %v6849_v50, %v6774_v60  ;;  %v3935_v27 = vmul.f32 %v6860_v48, %v6870_v12 }
 0x69f   :  { %3068 = vrot.lane.b32.xlu0 %v3057_v18, %s4846_s3  ;;  %3689 = vrot.lane.b32.xlu1 %v3681_v57, %s4845_s24  ;;  %v6878_v18 = vld [vmem:[#allocation2 + $0x34] sm:$0xff] }
 0x6a0   :  { %v6812_v16 = vadd.f32 %v2775_v0, %v6672_v30  ;;  %v3082_v30 = vmul.f32 %v6724_v49, %v6702_v5  ;;  %v3795_v49 = vmul.f32 %v6830_v53, %v6805_v54  ;;  %v3769_v60 = vmul.f32 %v6807_v55, %v6878_v18 }
 0x6a1   :  { %v2693_v29 = vpop.permute.xlu0 %2692  ;;  %v6814_v36 = vpop.permute.xlu1 %2799  ;;  %v3794_v41 = vmul.f32 %v6830_v53, %v6878_v18 }
 0x6a2   :  { %v2701_v23 = vadd.f32 %v2693_v29, %v2676_v11 }
 0x6a3   :  { %3089 = vrot.lane.b32.xlu0 %v3080_v33, %s4847_s26  ;;  %3779 = vrot.lane.b32.xlu1 %v3770_v7, %s4842_s16  ;;  %v3683_v7 = vmul.f32 %v6767_v37, %v6794_v45 }
 0x6a5   :  { %v2714_v63 = vpop.permute.xlu0 %2713  ;;  %v6824_v10 = vpop.permute.xlu1 %2803 }
 0x6a6   :  { %v2724_v19 = vadd.f32 %v2714_v63, %v2699_v39  ;;  %v6922_v39 = vstv %s4649_s29  ;;  %s7242_s29 = sld [smem:[#allocation7 + $0x59]] }
 0x6a7   :  { %3093 = vrot.lane.b32.xlu0 %v3082_v30, %s4847_s26  ;;  %3783 = vrot.lane.b32.xlu1 %v3772_v25, %s4842_s16  ;;  %v6889_v30 = vld [vmem:[#allocation2 + $0x4c] sm:$0xff]  ;;  %v6891_v25 = vstv %s4643_s28  ;;  %s7150_s28 = sld [smem:[#allocation7 + $0x4d]] }
 0x6a8   :  { %v3771_v1 = vmul.f32 %v6807_v55, %v6889_v30  ;;  %v3819_v47 = vmul.f32 %v6891_v25, %v6878_v18  ;;  %v3821_v55 = vmul.f32 %v6891_v25, %v6889_v30  ;;  %v3796_v11 = vmul.f32 %v6830_v53, %v6889_v30 }
 0x6a9   :  { %v2718_v51 = vpop.permute.xlu0 %2717  ;;  %v6834_v62 = vpop.permute.xlu1 %2824 }
 0x6aa   :  { %v2726_v4 = vadd.f32 %v2718_v51, %v2701_v23  ;;  %v6893_v51 = vstv %s4598_s1  ;;  %v6932_v23 = vld [vmem:[#allocation2 + $0x4d] sm:$0xff]  ;;  %s4646_s1 = sld [smem:[#allocation7 + $0x53]] }
 0x6ab   :  { %3641 = vrot.lane.b32.xlu0 %v3632_v31, %s4843_s18  ;;  %3804 = vrot.lane.b32.xlu1 %v3795_v49, %s4843_s18  ;;  %v2788_v46 = vmul.f32 %v6893_v51, %v6496_v43  ;;  %v3957_v43 = vmul.f32 %v6922_v39, %v6920_v15  ;;  %v3959_v53 = vmul.f32 %v6922_v39, %v6932_v23 }
 0x6ad   :  { %v2739_v40 = vpop.permute.xlu0 %2738  ;;  %v6847_v22 = vpop.permute.xlu1 %2828 }
 0x6ae   :  { %v2749_v28 = vadd.f32 %v2739_v40, %v2724_v19  ;;  %v2786_v40 = vmul.f32 %v6893_v51, %v6478_v14 }
 0x6af   :  { %3645 = vrot.lane.b32.xlu0 %v3634_v35, %s4843_s18  ;;  %3808 = vrot.lane.b32.xlu1 %v3797_v26, %s4843_s18 }
 0x6b0   :  { %v2811_v35 = vadd.f32 %v6814_v36, %v2786_v40  ;;  %v2813_v36 = vadd.f32 %v6824_v10, %v2788_v46  ;;  %v3682_v40 = vmul.f32 %v6836_v38, %v6794_v45 }
 0x6b1   :  { %v2743_v52 = vpop.permute.xlu0 %2742  ;;  %v2850_v17 = vpop.permute.xlu1 %2849 }
 0x6b2   :  { %v2751_v57 = vadd.f32 %v2743_v52, %v2726_v4  ;;  %v2836_v14 = vadd.f32 %v6834_v62, %v2811_v35  ;;  %v2838_v62 = vadd.f32 %v6847_v22, %v2813_v36  ;;  %v6940_v22 = vld [vmem:[#allocation2 + $0x36] sm:$0xff]  ;;  %v6966_v35 = vstv %s4638_s5  ;;  %s4653_s5 = sld [smem:[#allocation7 + $0x5a]] }
 0x6b3   :  { %3666 = vrot.lane.b32.xlu0 %v3657_v6, %s4844_s20  ;;  %3942 = vrot.lane.b32.xlu1 %v3933_v59, %s4842_s16  ;;  %v3820_v36 = vmul.f32 %v6891_v25, %v6805_v54 }
 0x6b4   :  { %v2861_v52 = vadd.f32 %v2850_v17, %v2836_v14 }
 0x6b5   :  { %v2764_v9 = vpop.permute.xlu0 %2763  ;;  %v2854_v42 = vpop.permute.xlu1 %2853 }
 0x6b6   :  { %v2774_v13 = vadd.f32 %v2764_v9, %v2749_v28  ;;  %v2863_v28 = vadd.f32 %v2854_v42, %v2838_v62 }
 0x6b7   :  { %3670 = vrot.lane.b32.xlu0 %v3659_v20, %s4844_s20  ;;  %3946 = vrot.lane.b32.xlu1 %v3935_v27, %s4842_s16  ;;  %v3932_v20 = vmul.f32 %v6860_v48, %v6920_v15 }
 0x6b8   :  { %v6883_v0 = vadd.f32 %v2774_v13, %v6735_v21  ;;  %v6942_v13 = vstv %s4655_s30  ;;  %s4658_s30 = sld [smem:[#allocation7 + $0x5f]] }
 0x6b9   :  { %v2768_v29 = vpop.permute.xlu0 %2767  ;;  %v2875_v33 = vpop.permute.xlu1 %2874 }
 0x6ba   :  { %v2776_v63 = vadd.f32 %v2768_v29, %v2751_v57  ;;  %v2886_v19 = vadd.f32 %v2875_v33, %v2861_v52  ;;  %v3708_v52 = vmul.f32 %v6767_v37, %v6966_v35 }
 0x6bb   :  { %3777 = vrot.lane.b32.xlu0 %v3769_v60, %s4842_s16  ;;  %3693 = vrot.lane.b32.xlu1 %v3683_v7, %s4845_s24  ;;  %v3934_v60 = vmul.f32 %v6860_v48, %v6932_v23  ;;  %v4095_v7 = vmul.f32 %v6942_v13, %v6940_v22 }
 0x6bc   :  { %v6898_v21 = vadd.f32 %v2776_v63, %v6748_v56 }
 0x6bd   :  { %v6900_v31 = vpop.permute.xlu0 %2801  ;;  %v2879_v49 = vpop.permute.xlu1 %2878 }
 0x6be   :  { %v2888_v27 = vadd.f32 %v2879_v49, %v2863_v28  ;;  %v6953_v49 = vld [vmem:[#allocation2 + $0x4e] sm:$0xff] }
 0x6bf   :  { %3781 = vrot.lane.b32.xlu0 %v3771_v1, %s4842_s16  ;;  %3827 = vrot.lane.b32.xlu1 %v3819_v47, %s4844_s20  ;;  %v4097_v48 = vmul.f32 %v6942_v13, %v6953_v49 }
 0x6c1   :  { %v6911_v56 = vpop.permute.xlu0 %2805  ;;  %v2900_v26 = vpop.permute.xlu1 %2899 }
 0x6c2   :  { %v2911_v10 = vadd.f32 %v2900_v26, %v2886_v19  ;;  %v3822_v19 = vmul.f32 %v6891_v25, %v6820_v34  ;;  %v3958_v25 = vmul.f32 %v6922_v39, %v6858_v32 }
 0x6c3   :  { %3802 = vrot.lane.b32.xlu0 %v3794_v41, %s4843_s18  ;;  %3831 = vrot.lane.b32.xlu1 %v3821_v55, %s4844_s20  ;;  %v3706_v55 = vmul.f32 %v6754_v24, %v6966_v35 }
 0x6c5   :  { %v2827_v6 = vpop.permute.xlu0 %2826  ;;  %v2904_v59 = vpop.permute.xlu1 %2903 }
 0x6c6   :  { %v2913_v42 = vadd.f32 %v2904_v59, %v2888_v27  ;;  %v2787_v59 = vmul.f32 %v6893_v51, %v6558_v8  ;;  %v2789_v8 = vmul.f32 %v6893_v51, %v6570_v58  ;;  %v7008_v58 = vstv %s4650_s7  ;;  %s4660_s7 = sld [smem:[#allocation7 + $0x61]] }
 0x6c7   :  { %3806 = vrot.lane.b32.xlu0 %v3796_v11, %s4843_s18  ;;  %3965 = vrot.lane.b32.xlu1 %v3957_v43, %s4843_s18 }
 0x6c8   :  { %v2812_v11 = vadd.f32 %v6900_v31, %v2787_v59 }
 0x6c9   :  { %v2831_v17 = vpop.permute.xlu0 %2830  ;;  %v2925_v9 = vpop.permute.xlu1 %2924 }
 0x6ca   :  { %v2936_v4 = vadd.f32 %v2925_v9, %v2911_v10  ;;  %v2837_v10 = vadd.f32 %v2827_v6, %v2812_v11  ;;  %v2814_v9 = vadd.f32 %v6911_v56, %v2789_v8  ;;  %v7042_v11 = vstv %s4619_s17 }
 0x6cb   :  { %3940 = vrot.lane.b32.xlu0 %v3932_v20, %s4842_s16  ;;  %3969 = vrot.lane.b32.xlu1 %v3959_v53, %s4843_s18 }
 0x6cc   :  { %v6947_v57 = vadd.f32 %v2936_v4, %v6799_v3  ;;  %v2839_v4 = vadd.f32 %v2831_v17, %v2814_v9  ;;  %v3982_v17 = vmul.f32 %v7008_v58, %v6920_v15 }
 0x6cd   :  { %v2852_v29 = vpop.permute.xlu0 %2851  ;;  %v2929_v33 = vpop.permute.xlu1 %2928 }
 0x6ce   :  { %v2938_v63 = vadd.f32 %v2929_v33, %v2913_v42  ;;  %v2862_v31 = vadd.f32 %v2852_v29, %v2837_v10  ;;  %v3960_v33 = vmul.f32 %v6922_v39, %v6870_v12  ;;  %v7052_v10 = vstv %s4626_s19 }
 0x6cf   :  { %3944 = vrot.lane.b32.xlu0 %v3934_v60, %s4842_s16  ;;  %4103 = vrot.lane.b32.xlu1 %v4095_v7, %s4842_s16 }
 0x6d0   :  { %v6958_v1 = vadd.f32 %v2938_v63, %v6812_v16  ;;  %v3684_v16 = vmul.f32 %v6849_v50, %v6794_v45  ;;  %v6986_v45 = vstv %s4644_s6  ;;  %v7018_v63 = vld [vmem:[#allocation2 + $0x3e] sm:$0xff]  ;;  %s4659_s6 = sld [smem:[#allocation7 + $0x60]] }
 0x6d1   :  { %v2856_v3 = vpop.permute.xlu0 %2855  ;;  %v6960_v47 = vpop.permute.xlu1 %2962  ;;  %v3844_v28 = vmul.f32 %v6986_v45, %v6878_v18  ;;  %v3846_v27 = vmul.f32 %v6986_v45, %v6889_v30  ;;  %v4096_v39 = vmul.f32 %v6942_v13, %v7018_v63 }
 0x6d2   :  { %v2864_v51 = vadd.f32 %v2856_v3, %v2839_v4 }
 0x6d3   :  { %3691 = vrot.lane.b32.xlu0 %v3682_v40, %s4845_s24  ;;  %4107 = vrot.lane.b32.xlu1 %v4097_v48, %s4842_s16 }
 0x6d5   :  { %v2877_v26 = vpop.permute.xlu0 %2876  ;;  %v6970_v41 = vpop.permute.xlu1 %2966 }
 0x6d6   :  { %v2887_v42 = vadd.f32 %v2877_v26, %v2862_v31  ;;  %v4756_v31 = vld [vmem:[#allocation2 + $0x30] sm:$0xff] }
 0x6d7   :  { %3695 = vrot.lane.b32.xlu0 %v3684_v16, %s4845_s24  ;;  %3714 = vrot.lane.b32.xlu1 %v3706_v55, %s4846_s3  ;;  %v3984_v16 = vmul.f32 %v7008_v58, %v6932_v23 }
 0x6d9   :  { %v2881_v46 = vpop.permute.xlu0 %2880  ;;  %v6978_v14 = vpop.permute.xlu1 %2987 }
 0x6da   :  { %v2889_v60 = vadd.f32 %v2881_v46, %v2864_v51  ;;  %v7029_v46 = vld [vmem:[#allocation2 + $0x56] sm:$0xff] }
 0x6db   :  { %3829 = vrot.lane.b32.xlu0 %v3820_v36, %s4844_s20  ;;  %3718 = vrot.lane.b32.xlu1 %v3708_v52, %s4846_s3  ;;  %v7031_v36 = vstv %s4656_s13  ;;  %v7033_v52 = vstv %s4605_s14 }
 0x6dc   :  { %v4120_v8 = vmul.f32 %v7031_v36, %v6940_v22  ;;  %v2949_v9 = vmul.f32 %v7033_v52, %v6609_v44 }
 0x6dd   :  { %v2902_v43 = vpop.permute.xlu0 %2901  ;;  %v6991_v62 = vpop.permute.xlu1 %2991 }
 0x6de   :  { %v2912_v56 = vadd.f32 %v2902_v43, %v2887_v42  ;;  %v4759_v42 = vld [vmem:[#allocation2 + $0x49] sm:$0xff]  ;;  %v2974_v51 = vadd.f32 %v6960_v47, %v2949_v9  ;;  %v2951_v47 = vmul.f32 %v7033_v52, %v6628_v2  ;;  %v7729_v9 = vld [vmem:[#allocation35_spill] sm:$0xff] }
 0x6df   :  { %3833 = vrot.lane.b32.xlu0 %v3822_v19, %s4844_s20  ;;  %3852 = vrot.lane.b32.xlu1 %v3844_v28, %s4845_s24  ;;  %v4098_v28 = vmul.f32 %v6942_v13, %v7029_v46  ;;  %v4757_v13 = vld [vmem:[#allocation2 + $0x48] sm:$0xff]  ;;  %v3277_v44 = vmul.f32 %v4759_v42, %v7042_v11 }
 0x6e1   :  { %v2906_v20 = vpop.permute.xlu0 %2905  ;;  %v7002_v53 = vpop.permute.xlu1 %3012 }
 0x6e2   :  { %v2914_v3 = vadd.f32 %v2906_v20, %v2889_v60  ;;  %v7059_v20 = vstv %s4639_s23 }
 0x6e3   :  { %3967 = vrot.lane.b32.xlu0 %v3958_v25, %s4843_s18  ;;  %3856 = vrot.lane.b32.xlu1 %v3846_v27, %s4845_s24  ;;  %v4758_v27 = vld [vmem:[#allocation2 + $0x31] sm:$0xff]  ;;  %v3733_v2 = vmul.f32 %v6767_v37, %v7059_v20 }
 0x6e4   :  { %v3275_v4 = vmul.f32 %v4758_v27, %v7042_v11  ;;  %v3731_v27 = vmul.f32 %v6754_v24, %v7059_v20  ;;  %v7739_v37 = vld [vmem:[#allocation79_spill] sm:$0xff] }
 0x6e5   :  { %v2927_v6 = vpop.permute.xlu0 %2926  ;;  %v7012_v29 = vpop.permute.xlu1 %3016 }
 0x6e6   :  { %v2937_v7 = vadd.f32 %v2927_v6, %v2912_v56  ;;  %v7727_v56 = vld [vmem:[#allocation33_spill] sm:$0xff] }
 0x6e7   :  { %3971 = vrot.lane.b32.xlu0 %v3960_v33, %s4843_s18  ;;  %3990 = vrot.lane.b32.xlu1 %v3982_v17, %s4844_s20  ;;  %v4760_v33 = vld [vmem:[#allocation2 + $0x32] sm:$0xff] }
 0x6e8   :  { %v7023_v40 = vadd.f32 %v2937_v7, %v6883_v0  ;;  %v7037_v0 = vstv %s4612_s15  ;;  %v3438_v17 = vmul.f32 %v4760_v33, %v7052_v10 }
 0x6e9   :  { %v2931_v48 = vpop.permute.xlu0 %2930  ;;  %v3038_v26 = vpop.permute.xlu1 %3037  ;;  %v3114_v25 = vmul.f32 %v4757_v13, %v7037_v0 }
 0x6ea   :  { %v2939_v55 = vadd.f32 %v2931_v48, %v2914_v3  ;;  %v3707_v3 = vmul.f32 %v6836_v38, %v6966_v35  ;;  %v4122_v48 = vmul.f32 %v7031_v36, %v6953_v49 }
 0x6eb   :  { %4105 = vrot.lane.b32.xlu0 %v4096_v39, %s4842_s16  ;;  %3994 = vrot.lane.b32.xlu1 %v3984_v16, %s4844_s20  ;;  %v7728_v39 = vld [vmem:[#allocation34_spill] sm:$0xff] }
 0x6ec   :  { %v7040_v59 = vadd.f32 %v2939_v55, %v6898_v21  ;;  %v3112_v21 = vmul.f32 %v4756_v31, %v7037_v0  ;;  %v3139_v16 = vadd.f32 %v7728_v39, %v3114_v25  ;;  %v4761_v55 = vld [vmem:[#allocation2 + $0x4a] sm:$0xff]  ;;  %v7731_v25 = vld [vmem:[#allocation36_spill] sm:$0xff]  ;;  %v3709_v39 = vmul.f32 %v6849_v50, %v6966_v35 }
 0x6ed   :  { %v7044_v43 = vpop.permute.xlu0 %2964  ;;  %v7046_v19 = vpop.permute.xlu1 %3041  ;;  %v7108_v35 = vstv %s7061_s25 }
 0x6ee   :  { %7726 = vst [vmem:[#allocation105_spill] sm:$0xff] %v7040_v59  ;;  %v3137_v6 = vadd.f32 %v7727_v56, %v3112_v21  ;;  %v7730_v21 = vld [vmem:[#allocation51_spill] sm:$0xff]  ;;  %v3164_v42 = vadd.f32 %v7731_v25, %v3139_v16  ;;  %v2976_v56 = vadd.f32 %v6970_v41, %v2951_v47  ;;  %v3845_v16 = vmul.f32 %v6986_v45, %v6805_v54  ;;  %v7734_v41 = vld [vmem:[#allocation38_spill] sm:$0xff]  ;;  %v7737_v25 = vld [vmem:[#allocation53_spill] sm:$0xff] }
 0x6ef   :  { %4109 = vrot.lane.b32.xlu0 %v4098_v28, %s4842_s16  ;;  %4128 = vrot.lane.b32.xlu1 %v4120_v8, %s4843_s18  ;;  %v3440_v28 = vmul.f32 %v4761_v55, %v7052_v10  ;;  %v2999_v8 = vadd.f32 %v6978_v14, %v2974_v51  ;;  %v3300_v13 = vadd.f32 %v7730_v21, %v3275_v4  ;;  %v7732_v14 = vld [vmem:[#allocation37_spill] sm:$0xff]  ;;  %v7733_v4 = vld [vmem:[#allocation55_spill] sm:$0xff]  ;;  %s7120_s16 = sld [smem:[#allocation7 + $0x58]] }
 0x6f0   :  { %v3162_v31 = vadd.f32 %v7729_v9, %v3137_v6  ;;  %v3189_v55 = vadd.f32 %v7734_v41, %v3164_v42  ;;  %v7736_v21 = vld [vmem:[#allocation39_spill] sm:$0xff] }
 0x6f1   :  { %v7069_v60 = vpop.permute.xlu0 %2968  ;;  %v3063_v7 = vpop.permute.xlu1 %3062  ;;  %v3024_v33 = vadd.f32 %v7002_v53, %v2999_v8  ;;  %v3325_v6 = vadd.f32 %v7733_v4, %v3300_v13  ;;  %v7735_v53 = vld [vmem:[#allocation75_spill] sm:$0xff]  ;;  %v3001_v8 = vadd.f32 %v6991_v62, %v2976_v56  ;;  %v3302_v13 = vadd.f32 %v7737_v25, %v3277_v44 }
 0x6f2   :  { %v3187_v51 = vadd.f32 %v7732_v14, %v3162_v31  ;;  %v3463_v47 = vadd.f32 %v7735_v53, %v3438_v17  ;;  %v7738_v14 = vld [vmem:[#allocation59_spill] sm:$0xff]  ;;  %v3847_v62 = vmul.f32 %v6986_v45, %v6820_v34 }
 0x6f3   :  { %3716 = vrot.lane.b32.xlu0 %v3707_v3, %s4846_s3  ;;  %4132 = vrot.lane.b32.xlu1 %v4122_v48, %s4843_s18  ;;  %v3049_v9 = vadd.f32 %v3038_v26, %v3024_v33  ;;  %v3350_v4 = vadd.f32 %v7738_v14, %v3325_v6  ;;  %v3026_v42 = vadd.f32 %v7012_v29, %v3001_v8  ;;  %v7740_v26 = vld [vmem:[#allocation41_spill] sm:$0xff]  ;;  %v7741_v33 = vld [vmem:[#allocation43_spill] sm:$0xff] }
 0x6f4   :  { %v3212_v31 = vadd.f32 %v7736_v21, %v3187_v51  ;;  %v3488_v59 = vadd.f32 %v7739_v37, %v3463_v47  ;;  %v3214_v56 = vadd.f32 %v7740_v26, %v3189_v55  ;;  %v7742_v51 = vld [vmem:[#allocation57_spill] sm:$0xff]  ;;  %v7743_v41 = vld [vmem:[#allocation63_spill] sm:$0xff] }
 0x6f5   :  { %v7093_v3 = vpop.permute.xlu0 %2989  ;;  %v3067_v48 = vpop.permute.xlu1 %3066  ;;  %v3074_v17 = vadd.f32 %v3063_v7, %v3049_v9  ;;  %v3327_v6 = vadd.f32 %v7742_v51, %v3302_v13  ;;  %v7744_v37 = vld [vmem:[#allocation77_spill] sm:$0xff]  ;;  %v7745_v29 = vld [vmem:[#allocation83_spill] sm:$0xff]  ;;  %v3051_v8 = vadd.f32 %v7046_v19, %v3026_v42 }
 0x6f6   :  { %v3237_v44 = vadd.f32 %v7741_v33, %v3212_v31  ;;  %v3465_v47 = vadd.f32 %v7744_v37, %v3440_v28  ;;  %v3513_v7 = vadd.f32 %v7745_v29, %v3488_v59  ;;  %v7746_v9 = vld [vmem:[#allocation47_spill] sm:$0xff]  ;;  %v7747_v21 = vld [vmem:[#allocation61_spill] sm:$0xff] }
 0x6f7   :  { %3720 = vrot.lane.b32.xlu0 %v3709_v39, %s4846_s3  ;;  %3739 = vrot.lane.b32.xlu1 %v3731_v27, %s4847_s26  ;;  %v3375_v39 = vadd.f32 %v7743_v41, %v3350_v4  ;;  %v3352_v31 = vadd.f32 %v7747_v21, %v3327_v6  ;;  %v7748_v25 = vld [vmem:[#allocation67_spill] sm:$0xff]  ;;  %v7749_v14 = vld [vmem:[#allocation81_spill] sm:$0xff]  ;;  %v3076_v28 = vadd.f32 %v3067_v48, %v3051_v8  ;;  %v7759_v21 = vld [vmem:[#allocation96_spill] sm:$0xff] }
 0x6f8   :  { %v3262_v55 = vadd.f32 %v7746_v9, %v3237_v44  ;;  %v3490_v4 = vadd.f32 %v7749_v14, %v3465_v47  ;;  %v7750_v26 = vld [vmem:[#allocation87_spill] sm:$0xff]  ;;  %v7751_v51 = vld [vmem:[#allocation45_spill] sm:$0xff] }
 0x6f9   :  { %v7118_v53 = vpop.permute.xlu0 %2993  ;;  %v3088_v27 = vpop.permute.xlu1 %3087  ;;  %v3400_v13 = vadd.f32 %v7748_v25, %v3375_v39  ;;  %v3538_v33 = vadd.f32 %v7750_v26, %v3513_v7  ;;  %v3239_v19 = vadd.f32 %v7751_v51, %v3214_v56  ;;  %v7752_v42 = vld [vmem:[#allocation65_spill] sm:$0xff]  ;;  %v7753_v44 = vld [vmem:[#allocation71_spill] sm:$0xff]  ;;  %v7162_v26 = vstv %s7120_s16 }
 0x6fa   :  { %v3099_v45 = vadd.f32 %v3088_v27, %v3074_v17  ;;  %v3377_v17 = vadd.f32 %v7752_v42, %v3352_v31  ;;  %v7754_v39 = vld [vmem:[#allocation85_spill] sm:$0xff]  ;;  %v7755_v37 = vld [vmem:[#allocation91_spill] sm:$0xff]  ;;  %v7762_v42 = vld [vmem:[#allocation98_spill] sm:$0xff] }
 0x6fb   :  { %3854 = vrot.lane.b32.xlu0 %v3845_v16, %s4845_s24  ;;  %3743 = vrot.lane.b32.xlu1 %v3733_v2, %s4847_s26  ;;  %v3425_v41 = vadd.f32 %v7753_v44, %v3400_v13  ;;  %v3869_v2 = vmul.f32 %v7108_v35, %v6878_v18  ;;  %v3515_v27 = vadd.f32 %v7754_v39, %v3490_v4  ;;  %v7756_v56 = vld [vmem:[#allocation49_spill] sm:$0xff] }
 0x6fc   :  { %v3103_v59 = vadd.f32 %v3099_v45, %v6947_v57  ;;  %v3563_v48 = vadd.f32 %v7755_v37, %v3538_v33  ;;  %v3264_v29 = vadd.f32 %v7756_v56, %v3239_v19  ;;  %v7757_v7 = vld [vmem:[#allocation69_spill] sm:$0xff]  ;;  %v3983_v4 = vmul.f32 %v7008_v58, %v6858_v32 }
 0x6fd   :  { %v7138_v6 = vpop.permute.xlu0 %3014  ;;  %v3092_v16 = vpop.permute.xlu1 %3091  ;;  %v3402_v8 = vadd.f32 %v7757_v7, %v3377_v17  ;;  %v7758_v45 = vld [vmem:[#allocation89_spill] sm:$0xff]  ;;  %v3985_v39 = vmul.f32 %v7008_v58, %v6870_v12  ;;  %v7195_v58 = vstv %s4646_s1  ;;  %v4763_v7 = vld [vmem:[#allocation2 + $0x50] sm:$0xff] }
 0x6fe   :  { %v3266_v47 = vadd.f32 %v3262_v55, %v3103_v59  ;;  %v3101_v57 = vadd.f32 %v3092_v16, %v3076_v28  ;;  %v3540_v9 = vadd.f32 %v7758_v45, %v3515_v27  ;;  %v3588_v31 = vadd.f32 %v7759_v21, %v3563_v48  ;;  %v7760_v33 = vld [vmem:[#allocation73_spill] sm:$0xff]  ;;  %v4764_v45 = vld [vmem:[#allocation2 + $0x39] sm:$0xff] }
 0x6ff   :  { %3858 = vrot.lane.b32.xlu0 %v3847_v62, %s4845_s24  ;;  %3877 = vrot.lane.b32.xlu1 %v3869_v2, %s4846_s3  ;;  %v3871_v62 = vmul.f32 %v7108_v35, %v6889_v30  ;;  %v3427_v28 = vadd.f32 %v7760_v33, %v3402_v8  ;;  %v7761_v59 = vld [vmem:[#allocation93_spill] sm:$0xff]  ;;  %v4007_v27 = vmul.f32 %v7162_v26, %v6920_v15  ;;  %v7187_v48 = vstv %s7144_s27 }
 0x700   :  { %v3105_v55 = vadd.f32 %v3101_v57, %v6958_v1  ;;  %v3429_v25 = vadd.f32 %v3425_v41, %v3266_v47  ;;  %v3565_v51 = vadd.f32 %v7761_v59, %v3540_v9  ;;  %v7172_v41 = vstv %s7136_s0  ;;  %v4762_v47 = vld [vmem:[#allocation2 + $0x38] sm:$0xff] }
 0x701   :  { %v7155_v13 = vpop.permute.xlu0 %3018  ;;  %v3640_v14 = vpop.permute.xlu1 %3639  ;;  %v3113_v57 = vmul.f32 %v4762_v47, %v7037_v0  ;;  %v3601_v56 = vmul.f32 %v6754_v24, %v7172_v41  ;;  %v3115_v8 = vmul.f32 %v4763_v7, %v7037_v0  ;;  %v3276_v9 = vmul.f32 %v4764_v45, %v7042_v11  ;;  %v4765_v24 = vld [vmem:[#allocation2 + $0x51] sm:$0xff] }
 0x702   :  { %v3268_v1 = vadd.f32 %v3264_v29, %v3105_v55  ;;  %v7166_v19 = vadd.f32 %v3588_v31, %v3429_v25  ;;  %v3590_v17 = vadd.f32 %v7762_v42, %v3565_v51  ;;  %v7193_v29 = vstv %s7150_s28  ;;  %v7763_v42 = vld [vmem:[#allocation100_spill] sm:$0xff]  ;;  %v7765_v47 = vld [vmem:[#allocation42_spill] sm:$0xff] }
 0x703   :  { %3992 = vrot.lane.b32.xlu0 %v3983_v4, %s4844_s20  ;;  %3881 = vrot.lane.b32.xlu1 %v3871_v62, %s4846_s3  ;;  %v4121_v55 = vmul.f32 %v7031_v36, %v7018_v63  ;;  %v4009_v25 = vmul.f32 %v7162_v26, %v6932_v23  ;;  %v3278_v4 = vmul.f32 %v4765_v24, %v7042_v11  ;;  %v4766_v62 = vld [vmem:[#allocation2 + $0x3a] sm:$0xff] }
 0x704   :  { %v3431_v44 = vadd.f32 %v3427_v28, %v3268_v1  ;;  %v3439_v33 = vmul.f32 %v4766_v62, %v7052_v10  ;;  %v4767_v28 = vld [vmem:[#allocation2 + $0x52] sm:$0xff]  ;;  %v2950_v59 = vmul.f32 %v7033_v52, %v6690_v61  ;;  %v4123_v51 = vmul.f32 %v7031_v36, %v7029_v46  ;;  %v7766_v62 = vld [vmem:[#allocation44_spill] sm:$0xff] }
 0x705   :  { %v7174_v16 = vpop.permute.xlu0 %3039  ;;  %v7176_v2 = vpop.permute.xlu1 %3643  ;;  %v3441_v0 = vmul.f32 %v4767_v28, %v7052_v10  ;;  %v4145_v1 = vmul.f32 %v7187_v48, %v6940_v22  ;;  %v3732_v11 = vmul.f32 %v6836_v38, %v7059_v20  ;;  %v4147_v61 = vmul.f32 %v7187_v48, %v6953_v49  ;;  %v7767_v28 = vld [vmem:[#allocation46_spill] sm:$0xff] }
 0x706   :  { %v7182_v37 = vadd.f32 %v3590_v17, %v3431_v44  ;;  %v3626_v17 = vadd.f32 %v7763_v42, %v3601_v56  ;;  %v2975_v10 = vadd.f32 %v7044_v43, %v2950_v59  ;;  %v3765_v44 = vmul.f32 %v7193_v29, %v6805_v54  ;;  %v7768_v42 = vld [vmem:[#allocation64_spill] sm:$0xff] }
 0x707   :  { %3996 = vrot.lane.b32.xlu0 %v3985_v39, %s4844_s20  ;;  %4015 = vrot.lane.b32.xlu1 %v4007_v27, %s4845_s24  ;;  %v7764_v39 = vld [vmem:[#allocation40_spill] sm:$0xff]  ;;  %v3140_v36 = vadd.f32 %v7765_v47, %v3115_v8  ;;  %v3894_v56 = vmul.f32 %v7195_v58, %v6878_v18  ;;  %v2952_v43 = vmul.f32 %v7033_v52, %v6702_v5 }
 0x708   :  { %v3138_v27 = vadd.f32 %v7764_v39, %v3113_v57  ;;  %v3651_v24 = vadd.f32 %v3640_v14, %v3626_v17  ;;  %v3767_v57 = vmul.f32 %v7193_v29, %v6820_v34  ;;  %v3301_v39 = vadd.f32 %v7768_v42, %v3276_v9  ;;  %v7769_v14 = vld [vmem:[#allocation48_spill] sm:$0xff] }
 0x709   :  { %v7199_v21 = vpop.permute.xlu0 %3043  ;;  %v3665_v31 = vpop.permute.xlu1 %3664  ;;  %v3165_v59 = vadd.f32 %v7767_v28, %v3140_v36  ;;  %v2977_v5 = vadd.f32 %v7069_v60, %v2952_v43  ;;  %v7771_v47 = vld [vmem:[#allocation68_spill] sm:$0xff] }
 0x70a   :  { %v3163_v8 = vadd.f32 %v7766_v62, %v3138_v27  ;;  %v3326_v9 = vadd.f32 %v7771_v47, %v3301_v39  ;;  %v7772_v62 = vld [vmem:[#allocation88_spill] sm:$0xff]  ;;  %v7776_v39 = vld [vmem:[#allocation54_spill] sm:$0xff] }
 0x70b   :  { %4130 = vrot.lane.b32.xlu0 %v4121_v55, %s4843_s18  ;;  %4019 = vrot.lane.b32.xlu1 %v4009_v25, %s4845_s24  ;;  %v3734_v55 = vmul.f32 %v6849_v50, %v7059_v20  ;;  %v3000_v25 = vadd.f32 %v7093_v3, %v2975_v10  ;;  %v3676_v20 = vadd.f32 %v3665_v31, %v3651_v24  ;;  %v7770_v10 = vld [vmem:[#allocation50_spill] sm:$0xff]  ;;  %v7773_v43 = vld [vmem:[#allocation52_spill] sm:$0xff] }
 0x70c   :  { %v3870_v3 = vmul.f32 %v7108_v35, %v6805_v54  ;;  %v3188_v17 = vadd.f32 %v7769_v14, %v3163_v8  ;;  %v3190_v27 = vadd.f32 %v7770_v10, %v3165_v59  ;;  %v3464_v28 = vadd.f32 %v7772_v62, %v3439_v33  ;;  %v7774_v24 = vld [vmem:[#allocation66_spill] sm:$0xff]  ;;  %v7775_v59 = vld [vmem:[#allocation72_spill] sm:$0xff] }
 0x70d   :  { %v3065_v7 = vpop.permute.xlu0 %3064  ;;  %v7226_v45 = vpop.permute.xlu1 %3668  ;;  %v3025_v52 = vadd.f32 %v7138_v6, %v3000_v25  ;;  %v3002_v60 = vadd.f32 %v7118_v53, %v2977_v5  ;;  %v3303_v8 = vadd.f32 %v7774_v24, %v3278_v4  ;;  %v3351_v42 = vadd.f32 %v7775_v59, %v3326_v9  ;;  %v7777_v10 = vld [vmem:[#allocation92_spill] sm:$0xff]  ;;  %v7783_v59 = vld [vmem:[#allocation74_spill] sm:$0xff] }
 0x70e   :  { %v3213_v25 = vadd.f32 %v7773_v43, %v3188_v17  ;;  %v3215_v14 = vadd.f32 %v7776_v39, %v3190_v27  ;;  %v3489_v33 = vadd.f32 %v7777_v10, %v3464_v28  ;;  %v7780_v47 = vld [vmem:[#allocation76_spill] sm:$0xff]  ;;  %v7782_v43 = vld [vmem:[#allocation97_spill] sm:$0xff] }
 0x70f   :  { %4134 = vrot.lane.b32.xlu0 %v4123_v51, %s4843_s18  ;;  %4153 = vrot.lane.b32.xlu1 %v4145_v1, %s4844_s20  ;;  %v3896_v1 = vmul.f32 %v7195_v58, %v6889_v30  ;;  %v3050_v6 = vadd.f32 %v7174_v16, %v3025_v52  ;;  %v3027_v53 = vadd.f32 %v7155_v13, %v3002_v60  ;;  %v7778_v16 = vld [vmem:[#allocation56_spill] sm:$0xff]  ;;  %v7787_v39 = vld [vmem:[#allocation101_spill] sm:$0xff]  ;;  %s7287_s18 = sld [smem:[#allocation7 + $0x54]] }
 0x710   :  { %v3238_v52 = vadd.f32 %v7778_v16, %v3213_v25  ;;  %v3376_v4 = vadd.f32 %v7780_v47, %v3351_v42  ;;  %v7791_v47 = vld [vmem:[#allocation99_spill] sm:$0xff] }
 0x711   :  { %v3069_v36 = vpop.permute.xlu0 %3068  ;;  %v3690_v51 = vpop.permute.xlu1 %3689  ;;  %v3075_v5 = vadd.f32 %v3065_v7, %v3050_v6  ;;  %v3052_v27 = vadd.f32 %v7199_v21, %v3027_v53  ;;  %v7784_v7 = vld [vmem:[#allocation80_spill] sm:$0xff]  ;;  %v7785_v6 = vld [vmem:[#allocation95_spill] sm:$0xff] }
 0x712   :  { %v7256_v31 = vadd.f32 %v3690_v51, %v3676_v20  ;;  %v7779_v20 = vld [vmem:[#allocation70_spill] sm:$0xff]  ;;  %v3401_v60 = vadd.f32 %v7784_v7, %v3376_v4 }
 0x713   :  { %3741 = vrot.lane.b32.xlu0 %v3732_v11, %s4847_s26  ;;  %4157 = vrot.lane.b32.xlu1 %v4147_v61, %s4844_s20  ;;  %v3328_v17 = vadd.f32 %v7779_v20, %v3303_v8  ;;  %v7781_v51 = vld [vmem:[#allocation90_spill] sm:$0xff]  ;;  %v3514_v61 = vadd.f32 %v7782_v43, %v3489_v33  ;;  %v7278_v8 = vstv %s7242_s29  ;;  %v3077_v33 = vadd.f32 %v3069_v36, %v3052_v27  ;;  %v7790_v20 = vld [vmem:[#allocation84_spill] sm:$0xff] }
 0x714   :  { %v3466_v9 = vadd.f32 %v7781_v51, %v3441_v0  ;;  %v7786_v0 = vld [vmem:[#allocation60_spill] sm:$0xff]  ;;  %v7793_v36 = vld [vmem:[#allocation62_spill] sm:$0xff] }
 0x715   :  { %v3090_v62 = vpop.permute.xlu0 %3089  ;;  %v3780_v11 = vpop.permute.xlu1 %3779  ;;  %v3353_v13 = vadd.f32 %v7783_v59, %v3328_v17  ;;  %v3263_v42 = vadd.f32 %v7786_v0, %v3238_v52  ;;  %v3539_v10 = vadd.f32 %v7787_v39, %v3514_v61  ;;  %v3426_v17 = vadd.f32 %v7790_v20, %v3401_v60  ;;  %v7794_v43 = vld [vmem:[#allocation82_spill] sm:$0xff]  ;;  %v7795_v61 = vld [vmem:[#allocation103_spill] sm:$0xff] }
 0x716   :  { %v3100_v24 = vadd.f32 %v3090_v62, %v3075_v5  ;;  %v3790_v28 = vadd.f32 %v3780_v11, %v3765_v44  ;;  %v3491_v25 = vadd.f32 %v7785_v6, %v3466_v9  ;;  %v7788_v44 = vld [vmem:[#allocation58_spill] sm:$0xff]  ;;  %v4008_v20 = vmul.f32 %v7162_v26, %v6858_v32 }
 0x717   :  { %3745 = vrot.lane.b32.xlu0 %v3734_v55, %s4847_s26  ;;  %3902 = vrot.lane.b32.xlu1 %v3894_v56, %s4847_s26  ;;  %v3240_v53 = vadd.f32 %v7788_v44, %v3215_v14  ;;  %v7789_v5 = vld [vmem:[#allocation78_spill] sm:$0xff]  ;;  %v7792_v56 = vld [vmem:[#allocation104_spill] sm:$0xff]  ;;  %v7800_v44 = vld [vmem:[#allocation109_spill] sm:$0xff] }
 0x718   :  { %v3104_v21 = vadd.f32 %v3100_v24, %v7023_v40  ;;  %v3378_v16 = vadd.f32 %v7789_v5, %v3353_v13  ;;  %v3516_v4 = vadd.f32 %v7791_v47, %v3491_v25  ;;  %v3564_v9 = vadd.f32 %v7792_v56, %v3539_v10  ;;  %v7796_v24 = vld [vmem:[#allocation108_spill] sm:$0xff]  ;;  %v7797_v13 = vld [vmem:[#allocation105_spill] sm:$0xff]  ;;  %v7798_v6 = vld [vmem:[#allocation86_spill] sm:$0xff] }
 0x719   :  { %v3094_v55 = vpop.permute.xlu0 %3093  ;;  %v3784_v51 = vpop.permute.xlu1 %3783  ;;  %v3265_v40 = vadd.f32 %v7793_v36, %v3240_v53 }
 0x71a   :  { %v3267_v52 = vadd.f32 %v3263_v42, %v3104_v21  ;;  %v3102_v62 = vadd.f32 %v3094_v55, %v3077_v33  ;;  %v3792_v11 = vadd.f32 %v3784_v51, %v3767_v57  ;;  %v3403_v14 = vadd.f32 %v7794_v43, %v3378_v16  ;;  %v7802_v43 = vld [vmem:[#allocation102_spill] sm:$0xff] }
 0x71b   :  { %3879 = vrot.lane.b32.xlu0 %v3870_v3, %s4846_s3  ;;  %3906 = vrot.lane.b32.xlu1 %v3896_v1, %s4847_s26  ;;  %v3541_v27 = vadd.f32 %v7795_v61, %v3516_v4  ;;  %v3589_v59 = vadd.f32 %v7796_v24, %v3564_v9  ;;  %v3872_v42 = vmul.f32 %v7108_v35, %v6820_v34  ;;  %v7799_v1 = vld [vmem:[#allocation106_spill] sm:$0xff]  ;;  %v7323_v4 = vstv %s4658_s30 }
 0x71c   :  { %v3106_v7 = vadd.f32 %v3102_v62, %v7797_v13  ;;  %v3430_v60 = vadd.f32 %v3426_v17, %v3267_v52  ;;  %v3428_v25 = vadd.f32 %v7798_v6, %v3403_v14  ;;  %v4032_v3 = vmul.f32 %v7278_v8, %v6920_v15 }
 0x71d   :  { %v7298_v0 = vpop.permute.xlu0 %3641  ;;  %v3805_v57 = vpop.permute.xlu1 %3804  ;;  %v3566_v39 = vadd.f32 %v7799_v1, %v3541_v27  ;;  %v4034_v17 = vmul.f32 %v7278_v8, %v6932_v23  ;;  %v4010_v52 = vmul.f32 %v7162_v26, %v6870_v12  ;;  %v4170_v62 = vmul.f32 %v7323_v4, %v6940_v22 }
 0x71e   :  { %v3269_v10 = vadd.f32 %v3265_v40, %v3106_v7  ;;  %v7305_v33 = vadd.f32 %v3805_v57, %v3790_v28  ;;  %v7307_v21 = vadd.f32 %v3589_v59, %v3430_v60  ;;  %v7319_v28 = vstv %s7287_s18 }
 0x71f   :  { %3883 = vrot.lane.b32.xlu0 %v3872_v42, %s4846_s3  ;;  %4040 = vrot.lane.b32.xlu1 %v4032_v3, %s4846_s3  ;;  %v3591_v53 = vadd.f32 %v7800_v44, %v3566_v39  ;;  %v3928_v51 = vmul.f32 %v7319_v28, %v6858_v32  ;;  %v3930_v61 = vmul.f32 %v7319_v28, %v6870_v12  ;;  %v7355_v60 = vstv %s4653_s5 }
 0x720   :  { %v3432_v5 = vadd.f32 %v3428_v25, %v3269_v10  ;;  %v4146_v24 = vmul.f32 %v7187_v48, %v7018_v63  ;;  %v4172_v59 = vmul.f32 %v7323_v4, %v6953_v49  ;;  %v3764_v25 = vmul.f32 %v7193_v29, %v6878_v18 }
 0x721   :  { %v7312_v16 = vpop.permute.xlu0 %3645  ;;  %v3809_v35 = vpop.permute.xlu1 %3808  ;;  %v4148_v3 = vmul.f32 %v7187_v48, %v7029_v46  ;;  %v3895_v44 = vmul.f32 %v7195_v58, %v6805_v54  ;;  %v4059_v48 = vmul.f32 %v7355_v60, %v6932_v23 }
 0x722   :  { %v7321_v47 = vadd.f32 %v3809_v35, %v3792_v11  ;;  %v7325_v55 = vadd.f32 %v3591_v53, %v3432_v5  ;;  %v7801_v11 = vld [vmem:[#allocation94_spill] sm:$0xff]  ;;  %v7376_v5 = vstv %s4659_s6 }
 0x723   :  { %4017 = vrot.lane.b32.xlu0 %v4008_v20, %s4845_s24  ;;  %4044 = vrot.lane.b32.xlu1 %v4034_v17, %s4846_s3  ;;  %v3603_v36 = vmul.f32 %v7801_v11, %v7172_v41  ;;  %v3927_v11 = vmul.f32 %v7319_v28, %v6920_v15 }
 0x725   :  { %v7331_v56 = vpop.permute.xlu0 %3666  ;;  %v3943_v9 = vpop.permute.xlu1 %3942  ;;  %v3628_v14 = vadd.f32 %v7802_v43, %v3603_v36 }
 0x726   :  { %v7339_v40 = vadd.f32 %v3943_v9, %v3928_v51 }
 0x727   :  { %4021 = vrot.lane.b32.xlu0 %v4010_v52, %s4845_s24  ;;  %4178 = vrot.lane.b32.xlu1 %v4170_v62, %s4845_s24  ;;  %v3653_v13 = vadd.f32 %v7176_v2, %v3628_v14  ;;  %v4057_v2 = vmul.f32 %v7355_v60, %v6920_v15  ;;  %v4033_v52 = vmul.f32 %v7278_v8, %v6858_v32  ;;  %v7803_v15 = vld [vmem:[#allocation110_spill] sm:$0xff] }
 0x728   :  { %v4197_v62 = vmul.f32 %v7376_v5, %v6953_v49 }
 0x729   :  { %v7346_v27 = vpop.permute.xlu0 %3670  ;;  %v3947_v26 = vpop.permute.xlu1 %3946  ;;  %v3678_v6 = vadd.f32 %v7226_v45, %v3653_v13  ;;  %v3766_v45 = vmul.f32 %v7193_v29, %v6889_v30  ;;  %v3897_v30 = vmul.f32 %v7195_v58, %v6820_v34  ;;  %v4195_v29 = vmul.f32 %v7376_v5, %v6940_v22 }
 0x72a   :  { %v7353_v7 = vadd.f32 %v3947_v26, %v3930_v61  ;;  %v7392_v58 = vstv %s4660_s7  ;;  %v4035_v61 = vmul.f32 %v7278_v8, %v6870_v12 }
 0x72b   :  { %4155 = vrot.lane.b32.xlu0 %v4146_v24, %s4844_s20  ;;  %4182 = vrot.lane.b32.xlu1 %v4172_v59, %s4845_s24  ;;  %v4220_v32 = vmul.f32 %v7392_v58, %v6940_v22  ;;  %v3602_v24 = vmul.f32 %v6836_v38, %v7172_v41  ;;  %v4222_v38 = vmul.f32 %v7392_v58, %v6953_v49 }
 0x72d   :  { %v3778_v57 = vpop.permute.xlu0 %3777  ;;  %v3694_v42 = vpop.permute.xlu1 %3693  ;;  %v3627_v13 = vadd.f32 %v7803_v15, %v3602_v24  ;;  %v4221_v24 = vmul.f32 %v7392_v58, %v7018_v63 }
 0x72e   :  { %v3789_v1 = vadd.f32 %v3778_v57, %v3764_v25  ;;  %v7366_v39 = vadd.f32 %v3694_v42, %v3678_v6  ;;  %v3929_v6 = vmul.f32 %v7319_v28, %v6932_v23  ;;  %v7804_v23 = vld [vmem:[#allocation111_spill] sm:$0xff] }
 0x72f   :  { %4159 = vrot.lane.b32.xlu0 %v4148_v3, %s4844_s20  ;;  %4065 = vrot.lane.b32.xlu1 %v4057_v2, %s4847_s26  ;;  %s4654_s20 = sld [smem:[#allocation7 + $0x5b]]  ;;  %v4171_v3 = vmul.f32 %v7323_v4, %v7018_v63  ;;  %v3604_v2 = vmul.f32 %v6849_v50, %v7172_v41  ;;  %v4173_v50 = vmul.f32 %v7323_v4, %v7029_v46 }
 0x731   :  { %v3782_v10 = vpop.permute.xlu0 %3781  ;;  %v3828_v18 = vpop.permute.xlu1 %3827 }
 0x732   :  { %v3791_v53 = vadd.f32 %v3782_v10, %v3766_v45 }
 0x733   :  { %3904 = vrot.lane.b32.xlu0 %v3895_v44, %s4847_s26  ;;  %4069 = vrot.lane.b32.xlu1 %v4059_v48, %s4847_s26 }
 0x735   :  { %v3803_v35 = vpop.permute.xlu0 %3802  ;;  %v3832_v20 = vpop.permute.xlu1 %3831  ;;  %v7402_v26 = vstv %s4654_s20 }
 0x736   :  { %v3814_v54 = vadd.f32 %v3803_v35, %v3789_v1  ;;  %v4090_v8 = vmul.f32 %v7402_v26, %v6940_v22  ;;  %v3652_v1 = vadd.f32 %v7298_v0, %v3627_v13  ;;  %v3629_v22 = vadd.f32 %v7804_v23, %v3604_v2 }
 0x737   :  { %3908 = vrot.lane.b32.xlu0 %v3897_v30, %s4847_s26  ;;  %4203 = vrot.lane.b32.xlu1 %v4195_v29, %s4846_s3 }
 0x738   :  { %v7386_v17 = vadd.f32 %v3828_v18, %v3814_v54  ;;  %v3677_v28 = vadd.f32 %v7331_v56, %v3652_v1  ;;  %v4092_v18 = vmul.f32 %v7402_v26, %v6953_v49  ;;  %v3654_v41 = vadd.f32 %v7312_v16, %v3629_v22  ;;  %v4768_v56 = vld [vmem:[#allocation2 + $0x3d] sm:$0xff] }
 0x739   :  { %v3807_v51 = vpop.permute.xlu0 %3806  ;;  %v3966_v9 = vpop.permute.xlu1 %3965  ;;  %v4058_v54 = vmul.f32 %v4768_v56, %v7355_v60  ;;  %v4060_v16 = vmul.f32 %v7355_v60, %v6870_v12  ;;  %v4198_v12 = vmul.f32 %v7376_v5, %v7029_v46 }
 0x73a   :  { %v3816_v34 = vadd.f32 %v3807_v51, %v3791_v53 }
 0x73b   :  { %4042 = vrot.lane.b32.xlu0 %v4033_v52, %s4846_s3  ;;  %4207 = vrot.lane.b32.xlu1 %v4197_v62, %s4846_s3 }
 0x73c   :  { %v3841_v36 = vadd.f32 %v3832_v20, %v3816_v34  ;;  %v3679_v20 = vadd.f32 %v7346_v27, %v3654_v41 }
 0x73d   :  { %v3941_v43 = vpop.permute.xlu0 %3940  ;;  %v3970_v14 = vpop.permute.xlu1 %3969 }
 0x73e   :  { %v3952_v59 = vadd.f32 %v3941_v43, %v3927_v11  ;;  %v4196_v11 = vmul.f32 %v7376_v5, %v7018_v63 }
 0x73f   :  { %4046 = vrot.lane.b32.xlu0 %v4035_v61, %s4846_s3  ;;  %4228 = vrot.lane.b32.xlu1 %v4220_v32, %s4847_s26 }
 0x740   :  { %v3977_v25 = vadd.f32 %v3966_v9, %v3952_v59  ;;  %v4091_v59 = vmul.f32 %v7402_v26, %v7018_v63 }
 0x741   :  { %v3945_v57 = vpop.permute.xlu0 %3944  ;;  %v4104_v42 = vpop.permute.xlu1 %4103 }
 0x742   :  { %v3954_v45 = vadd.f32 %v3945_v57, %v3929_v6  ;;  %v4115_v10 = vadd.f32 %v4104_v42, %v4090_v8 }
 0x743   :  { %4180 = vrot.lane.b32.xlu0 %v4171_v3, %s4845_s24  ;;  %4232 = vrot.lane.b32.xlu1 %v4222_v38, %s4847_s26 }
 0x744   :  { %v3979_v44 = vadd.f32 %v3970_v14, %v3954_v45 }
 0x745   :  { %v3692_v48 = vpop.permute.xlu0 %3691  ;;  %v4108_v53 = vpop.permute.xlu1 %4107 }
 0x746   :  { %v3702_v0 = vadd.f32 %v3692_v48, %v3677_v28  ;;  %v4117_v35 = vadd.f32 %v4108_v53, %v4092_v18 }
 0x747   :  { %4184 = vrot.lane.b32.xlu0 %v4173_v50, %s4845_s24 }
 0x749   :  { %v3696_v30 = vpop.permute.xlu0 %3695  ;;  %v3715_v29 = vpop.permute.xlu1 %3714 }
 0x74a   :  { %v3704_v49 = vadd.f32 %v3696_v30, %v3679_v20  ;;  %v3726_v51 = vadd.f32 %v3715_v29, %v7256_v31 }
 0x74b   :  { %4067 = vrot.lane.b32.xlu0 %v4058_v54, %s4847_s26 }
 0x74d   :  { %v3830_v9 = vpop.permute.xlu0 %3829  ;;  %v3719_v4 = vpop.permute.xlu1 %3718 }
 0x74e   :  { %v3840_v52 = vadd.f32 %v3830_v9, %v7305_v33  ;;  %v3728_v62 = vadd.f32 %v3719_v4, %v7366_v39 }
 0x74f   :  { %4071 = vrot.lane.b32.xlu0 %v4060_v16, %s4847_s26 }
 0x751   :  { %v3834_v27 = vpop.permute.xlu0 %3833  ;;  %v3853_v34 = vpop.permute.xlu1 %3852 }
 0x752   :  { %v3842_v31 = vadd.f32 %v3834_v27, %v7321_v47  ;;  %v3864_v43 = vadd.f32 %v3853_v34, %v7386_v17 }
 0x753   :  { %4205 = vrot.lane.b32.xlu0 %v4196_v11, %s4846_s3 }
 0x755   :  { %v3968_v14 = vpop.permute.xlu0 %3967  ;;  %v3857_v61 = vpop.permute.xlu1 %3856 }
 0x756   :  { %v3978_v33 = vadd.f32 %v3968_v14, %v7339_v40  ;;  %v3866_v60 = vadd.f32 %v3857_v61, %v3841_v36  ;;  %v4223_v40 = vmul.f32 %v7392_v58, %v7029_v46 }
 0x757   :  { %4209 = vrot.lane.b32.xlu0 %v4198_v12, %s4846_s3 }
 0x759   :  { %v3972_v39 = vpop.permute.xlu0 %3971  ;;  %v3991_v32 = vpop.permute.xlu1 %3990 }
 0x75a   :  { %v3980_v47 = vadd.f32 %v3972_v39, %v7353_v7  ;;  %v7451_v17 = vadd.f32 %v3991_v32, %v3977_v25 }
 0x75b   :  { %4230 = vrot.lane.b32.xlu0 %v4221_v24, %s4847_s26 }
 0x75d   :  { %v4106_v5 = vpop.permute.xlu0 %4105  ;;  %v3995_v15 = vpop.permute.xlu1 %3994 }
 0x75e   :  { %v4116_v36 = vadd.f32 %v4106_v5, %v4091_v59  ;;  %v7458_v13 = vadd.f32 %v3995_v15, %v3979_v44 }
 0x75f   :  { %4234 = vrot.lane.b32.xlu0 %v4223_v40, %s4847_s26 }
 0x761   :  { %v4110_v6 = vpop.permute.xlu0 %4109  ;;  %v4129_v8 = vpop.permute.xlu1 %4128 }
 0x762   :  { %v7461_v7 = vadd.f32 %v4129_v8, %v4115_v10 }
 0x765   :  { %v3717_v25 = vpop.permute.xlu0 %3716  ;;  %v4133_v57 = vpop.permute.xlu1 %4132 }
 0x766   :  { %v3727_v42 = vadd.f32 %v3717_v25, %v3702_v0  ;;  %v7463_v3 = vadd.f32 %v4133_v57, %v4117_v35 }
 0x769   :  { %v3721_v63 = vpop.permute.xlu0 %3720  ;;  %v3740_v38 = vpop.permute.xlu1 %3739 }
 0x76a   :  { %v3729_v2 = vadd.f32 %v3721_v63, %v3704_v49  ;;  %v3751_v1 = vadd.f32 %v3740_v38, %v3726_v51 }
 0x76c   :  { %v3755_v58 = vadd.f32 %v3751_v1, %v7166_v19  ;;  %v4093_v19 = vmul.f32 %v7402_v26, %v7029_v46 }
 0x76d   :  { %v3855_v45 = vpop.permute.xlu0 %3854  ;;  %v3744_v23 = vpop.permute.xlu1 %3743 }
 0x76e   :  { %v3865_v22 = vadd.f32 %v3855_v45, %v3840_v52  ;;  %v3753_v28 = vadd.f32 %v3744_v23, %v3728_v62  ;;  %v4118_v54 = vadd.f32 %v4110_v6, %v4093_v19 }
 0x770   :  { %v3757_v18 = vadd.f32 %v3753_v28, %v7182_v37 }
 0x771   :  { %v3859_v44 = vpop.permute.xlu0 %3858  ;;  %v3878_v10 = vpop.permute.xlu1 %3877 }
 0x772   :  { %v3867_v48 = vadd.f32 %v3859_v44, %v3842_v31  ;;  %v3889_v52 = vadd.f32 %v3878_v10, %v3864_v43 }
 0x775   :  { %v3993_v53 = vpop.permute.xlu0 %3992  ;;  %v3882_v50 = vpop.permute.xlu1 %3881 }
 0x776   :  { %v7467_v41 = vadd.f32 %v3993_v53, %v3978_v33  ;;  %v3891_v14 = vadd.f32 %v3882_v50, %v3866_v60 }
 0x779   :  { %v3997_v0 = vpop.permute.xlu0 %3996  ;;  %v4016_v35 = vpop.permute.xlu1 %4015 }
 0x77a   :  { %v7469_v20 = vadd.f32 %v3997_v0, %v3980_v47  ;;  %v4027_v40 = vadd.f32 %v4016_v35, %v7451_v17 }
 0x77d   :  { %v4131_v30 = vpop.permute.xlu0 %4130  ;;  %v4020_v29 = vpop.permute.xlu1 %4019 }
 0x77e   :  { %v7473_v56 = vadd.f32 %v4131_v30, %v4116_v36  ;;  %v4029_v6 = vadd.f32 %v4020_v29, %v7458_v13 }
 0x781   :  { %v4135_v37 = vpop.permute.xlu0 %4134  ;;  %v4154_v49 = vpop.permute.xlu1 %4153 }
 0x782   :  { %v7475_v51 = vadd.f32 %v4135_v37, %v4118_v54  ;;  %v4165_v44 = vadd.f32 %v4154_v49, %v7461_v7 }
 0x785   :  { %v3742_v9 = vpop.permute.xlu0 %3741  ;;  %v4158_v4 = vpop.permute.xlu1 %4157 }
 0x786   :  { %v3752_v16 = vadd.f32 %v3742_v9, %v3727_v42 }
 0x788   :  { %v3756_v62 = vadd.f32 %v3752_v16, %v7307_v21 }
 0x789   :  { %v3746_v27 = vpop.permute.xlu0 %3745  ;;  %v3903_v34 = vpop.permute.xlu1 %3902 }
 0x78a   :  { %v3754_v11 = vadd.f32 %v3746_v27, %v3729_v2  ;;  %v3914_v31 = vadd.f32 %v3903_v34, %v3889_v52  ;;  %v7805_v52 = vmov 0.0   ;;  %v7806_v34 = vld [vmem:[#allocation31_spill] sm:$0xff] }
 0x78c   :  { %v3758_v46 = vadd.f32 %v3754_v11, %v7325_v55  ;;  %v3918_v26 = vadd.f32 %v3914_v31, %v3755_v58 }
 0x78d   :  { %v3880_v61 = vpop.permute.xlu0 %3879  ;;  %v3907_v12 = vpop.permute.xlu1 %3906 }
 0x78e   :  { %v3916_v33 = vadd.f32 %v3907_v12, %v3891_v14  ;;  %v3890_v25 = vadd.f32 %v3880_v61, %v3865_v22  ;;  %v4167_v22 = vadd.f32 %v4158_v4, %v7463_v3 }
 0x790   :  { %v3920_v39 = vadd.f32 %v3916_v33, %v3757_v18 }
 0x791   :  { %v3884_v32 = vpop.permute.xlu0 %3883  ;;  %v4041_v24 = vpop.permute.xlu1 %4040 }
 0x792   :  { %v4052_v36 = vadd.f32 %v4041_v24, %v4027_v40  ;;  %v3892_v58 = vadd.f32 %v3884_v32, %v3867_v48  ;;  %v7807_v24 = vld [vmem:[#allocation32_spill] sm:$0xff] }
 0x795   :  { %v4018_v47 = vpop.permute.xlu0 %4017  ;;  %v4045_v59 = vpop.permute.xlu1 %4044 }
 0x796   :  { %v4054_v57 = vadd.f32 %v4045_v59, %v4029_v6  ;;  %v4028_v7 = vadd.f32 %v4018_v47, %v7467_v41 }
 0x799   :  { %v4022_v5 = vpop.permute.xlu0 %4021  ;;  %v4179_v43 = vpop.permute.xlu1 %4178 }
 0x79a   :  { %v4190_v13 = vadd.f32 %v4179_v43, %v4165_v44  ;;  %v4030_v12 = vadd.f32 %v4022_v5, %v7469_v20 }
 0x79d   :  { %v7479_v15 = vpop.permute.xlu0 %4155  ;;  %v4183_v21 = vpop.permute.xlu1 %4182 }
 0x79e   :  { %v4192_v29 = vadd.f32 %v4183_v21, %v4167_v22  ;;  %v4166_v5 = vadd.f32 %v7479_v15, %v7473_v56 }
 0x7a1   :  { %v7482_v60 = vpop.permute.xlu0 %4159  ;;  %v4066_v55 = vpop.permute.xlu1 %4065 }
 0x7a2   :  { %v4077_v8 = vadd.f32 %v4066_v55, %v4052_v36 }
 0x7a4   :  { %v4081_v42 = vadd.f32 %v4077_v8, %v3918_v26 }
 0x7a5   :  { %v3905_v63 = vpop.permute.xlu0 %3904  ;;  %v4070_v38 = vpop.permute.xlu1 %4069 }
 0x7a6   :  { %v3915_v2 = vadd.f32 %v3905_v63, %v3890_v25  ;;  %v4079_v1 = vadd.f32 %v4070_v38, %v4054_v57 }
 0x7a8   :  { %v3919_v45 = vadd.f32 %v3915_v2, %v3756_v62  ;;  %v4083_v23 = vadd.f32 %v4079_v1, %v3920_v39 }
 0x7a9   :  { %v3909_v28 = vpop.permute.xlu0 %3908  ;;  %v4204_v18 = vpop.permute.xlu1 %4203 }
 0x7aa   :  { %v3917_v17 = vadd.f32 %v3909_v28, %v3892_v58  ;;  %v4215_v0 = vadd.f32 %v4204_v18, %v4190_v13 }
 0x7ac   :  { %v3921_v10 = vadd.f32 %v3917_v17, %v3758_v46 }
 0x7ad   :  { %v4043_v53 = vpop.permute.xlu0 %4042  ;;  %v4208_v50 = vpop.permute.xlu1 %4207 }
 0x7ae   :  { %v4217_v54 = vadd.f32 %v4208_v50, %v4192_v29  ;;  %v4053_v31 = vadd.f32 %v4043_v53, %v4028_v7 }
 0x7b1   :  { %v4047_v35 = vpop.permute.xlu0 %4046  ;;  %v4229_v30 = vpop.permute.xlu1 %4228 }
 0x7b2   :  { %v4240_v19 = vadd.f32 %v4229_v30, %v4215_v0  ;;  %v4055_v59 = vadd.f32 %v4047_v35, %v4030_v12 }
 0x7b4   :  { %v4244_v48 = vadd.f32 %v4240_v19, %v4081_v42  ;;  %v4168_v42 = vadd.f32 %v7482_v60, %v7475_v51 }
 0x7b5   :  { %v4181_v37 = vpop.permute.xlu0 %4180  ;;  %v4233_v9 = vpop.permute.xlu1 %4232 }
 0x7b6   :  { %v4242_v16 = vadd.f32 %v4233_v9, %v4217_v54  ;;  %v4248_v62 = vcombine.high %v4244_v48, %v7805_v52  ;;  %v4255_v11 = vrot.slane %v4244_v48, %v7806_v34  ;;  %v4191_v57 = vadd.f32 %v4181_v37, %v4166_v5 }
 0x7b8   :  { %v4246_v27 = vadd.f32 %v4242_v16, %v4083_v23  ;;  %v4262_v14 = vrot.slane %v4248_v62, %v7806_v34 }
 0x7b9   :  { %v4185_v49 = vpop.permute.xlu0 %4184 }
 0x7ba   :  { %v4263_v3 = vcombine.high %v4246_v27, %v7805_v52  ;;  %v4270_v4 = vrot.slane %v4246_v27, %v7806_v34  ;;  %v4193_v1 = vadd.f32 %v4185_v49, %v4168_v42 }
 0x7bc   :  { %v4277_v46 = vrot.slane %v4263_v3, %v7806_v34  ;;  %v4278_v26 = vcombine.low %v4255_v11, %v4270_v4  ;;  %v4279_v61 = vcombine.high %v4255_v11, %v4270_v4 }
 0x7bd   :  { %v4068_v33 = vpop.permute.xlu0 %4067 }
 0x7be   :  { %v4294_v39 = vcombine.low %v4262_v14, %v4277_v46  ;;  %v4295_v32 = vcombine.high %v4262_v14, %v4277_v46  ;;  %v4078_v41 = vadd.f32 %v4068_v33, %v4053_v31  ;;  %v7496_v47 = vrot.slane %v4278_v26, %v7807_v24 }
 0x7bf   :  { %v4293_v6 = vrot.slane %v4279_v61, %v7807_v24 }
 0x7c0   :  { %v4082_v43 = vadd.f32 %v4078_v41, %v3919_v45  ;;  %v4310_v21 = vcombine.high %v7496_v47, %v7805_v52  ;;  %v4302_v38 = vrot.slane %v4294_v39, %v7807_v24  ;;  %v4309_v18 = vrot.slane %v4295_v32, %v7807_v24 }
 0x7c1   :  { %v4072_v40 = vpop.permute.xlu0 %4071  ;;  %v4311_v8 = vcombine.high %v4293_v6, %v7805_v52 }
 0x7c2   :  { %v4080_v36 = vadd.f32 %v4072_v40, %v4055_v59  ;;  %4381 = vrot.lane.b32.xlu1 %v4310_v21, %s4829_s22  ;;  %v4312_v56 = vcombine.high %v4302_v38, %v7805_v52  ;;  %v4313_v53 = vcombine.high %v4309_v18, %v7805_v52 }
 0x7c4   :  { %v4084_v55 = vadd.f32 %v4080_v36, %v3921_v10 }
 0x7c5   :  { %v4206_v20 = vpop.permute.xlu0 %4205 }
 0x7c6   :  { %4385 = vrot.lane.b32.xlu1 %v4293_v6, %s4837_s12  ;;  %v4216_v63 = vadd.f32 %v4206_v20, %v4191_v57 }
 0x7c9   :  { %v4210_v25 = vpop.permute.xlu0 %4209 }
 0x7ca   :  { %4389 = vrot.lane.b32.xlu1 %v4311_v8, %s4836_s11  ;;  %v4218_v45 = vadd.f32 %v4210_v25, %v4193_v1 }
 0x7cd   :  { %v4231_v2 = vpop.permute.xlu0 %4230 }
 0x7ce   :  { %v4241_v58 = vadd.f32 %v4231_v2, %v4216_v63  ;;  %4393 = vrot.lane.b32.xlu1 %v4302_v38, %s4835_s10  ;;  %v4848_v38 = vmov 1966171168  }
 0x7cf   :  { %v4473_v2 = vunpack.c.l.s4 %v4848_v38 }
 0x7d0   :  { %v4245_v23 = vadd.f32 %v4241_v58, %v4082_v43 }
 0x7d1   :  { %v4235_v15 = vpop.permute.xlu0 %4234  ;;  %v4474_v1 = vunpack.c.0.s8 %v4473_v2 }
 0x7d2   :  { %v4243_v28 = vadd.f32 %v4235_v15, %v4218_v45  ;;  %4397 = vrot.lane.b32.xlu1 %v4312_v56, %s4834_s9  ;;  %v4314_v51 = vcombine.high %v4245_v23, %v7805_v52  ;;  %v4321_v17 = vrot.slane %v4245_v23, %v7806_v34  ;;  %v7808_v45 = vld [vmem:[#allocation12_spill] sm:$0xff] }
 0x7d3   :  { %v4477_v23 = vsub.s32 %v4474_v1, %v7808_v45 }
 0x7d4   :  { %v4247_v60 = vadd.f32 %v4243_v28, %v4084_v55  ;;  %v4328_v50 = vrot.slane %v4314_v51, %v7806_v34 }
 0x7d6   :  { %v4329_v44 = vcombine.high %v4247_v60, %v7805_v52  ;;  %v4336_v10 = vrot.slane %v4247_v60, %v7806_v34  ;;  %4401 = vrot.lane.b32.xlu1 %v4309_v18, %s4833_s8 }
 0x7d8   :  { %v4343_v13 = vrot.slane %v4329_v44, %v7806_v34  ;;  %v4344_v22 = vcombine.low %v4321_v17, %v4336_v10  ;;  %v4345_v0 = vcombine.high %v4321_v17, %v4336_v10  ;;  %v7809_v17 = vld [vmem:[#allocation13_spill] sm:$0xff]  ;;  %v7810_v10 = vld [vmem:[#allocation14_spill] sm:$0xff] }
 0x7da   :  { %v4360_v35 = vcombine.low %v4328_v50, %v4343_v13  ;;  %v4361_v30 = vcombine.high %v4328_v50, %v4343_v13  ;;  %4405 = vrot.lane.b32.xlu1 %v4313_v53, %s4832_s2  ;;  %v4352_v29 = vrot.slane %v4344_v22, %v7807_v24  ;;  %v4359_v54 = vrot.slane %v4345_v0, %v7807_v24  ;;  %v7811_v22 = vld [vmem:[#allocation15_spill] sm:$0xff] }
 0x7dc   :  { %v4376_v19 = vcombine.high %v4352_v29, %v7805_v52  ;;  %v4377_v48 = vcombine.high %v4359_v54, %v7805_v52  ;;  %v4368_v37 = vrot.slane %v4360_v35, %v7807_v24  ;;  %v4375_v16 = vrot.slane %v4361_v30, %v7807_v24  ;;  %v7812_v35 = vld [vmem:[#allocation19_spill] sm:$0xff] }
 0x7de   :  { %4409 = vrot.lane.b32.xlu0 %v4376_v19, %s4829_s22  ;;  %v4378_v9 = vcombine.high %v4368_v37, %v7805_v52  ;;  %v4379_v62 = vcombine.high %v4375_v16, %v7805_v52 }
 0x7e2   :  { %4413 = vrot.lane.b32.xlu0 %v4359_v54, %s4837_s12  ;;  %v7814_v54 = vld [vmem:[#allocation20_spill] sm:$0xff] }
 0x7e6   :  { %4417 = vrot.lane.b32.xlu0 %v4377_v48, %s4836_s11 }
 0x7ea   :  { %4421 = vrot.lane.b32.xlu0 %v4368_v37, %s4835_s10  ;;  %v7815_v37 = vld [vmem:[#allocation17_spill] sm:$0xff] }
 0x7ee   :  { %4425 = vrot.lane.b32.xlu0 %v4378_v9, %s4834_s9 }
 0x7f2   :  { %4429 = vrot.lane.b32.xlu0 %v4375_v16, %s4833_s8  ;;  %v7816_v16 = vld [vmem:[#allocation21_spill] sm:$0xff] }
 0x7f6   :  { %4433 = vrot.lane.b32.xlu0 %v4379_v62, %s4832_s2  ;;  %s4849_s2 = smov [#allocation8]  }
 0x7f7   :  { %s4551_s8 = sshll.u32 %s4849_s2, 4  ;;  %s4552_s8 = int_to_ptr.vmem [resolvable:$true] %s4551_s8 }
 0x7f8   :  { %s4801_s9 = scalar_lea.vmem %s4552_s8, 2048  ;;  %p4806_p11 = scmp.lt.s32.totalorder %s4552_s8, %s4552_s8 }
 0x7f9   :  { %p4802_p10 = scmp.ne.s32.totalorder %s4552_s8, %s4801_s9  ;;  %p4807_p12 = scmp.lt.s32.totalorder %s4801_s9, %s4801_s9 }
 0x7fb   :  { %p4808_p13 = por %p4807_p12, %p4806_p11 }
 0x7fd   :  { %p4809_p0 = pnand %p4808_p13, %p4802_p10 }
 0x834   :  { %v4382_v27 = vpop.permute.xlu1 %4381 }
 0x835   :  { %v4437_v46 = vsel %vm4436_vm15, %v7496_v47, %v4382_v27  ;;  %v7817_v27 = vld [vmem:[#allocation18_spill] sm:$0xff] }
 0x838   :  { %v4386_v7 = vpop.permute.xlu1 %4385 }
 0x839   :  { %v4439_v52 = vsel %vm4438_vm0, %v4437_v46, %v4386_v7 }
 0x83c   :  { %v4390_v49 = vpop.permute.xlu1 %4389 }
 0x83d   :  { %v4441_v26 = vsel %vm4440_vm1, %v4439_v52, %v4390_v49  ;;  %v7818_v49 = vld [vmem:[#allocation22_spill] sm:$0xff]  ;;  %v7822_v52 = vld [vmem:[#allocation24_spill] sm:$0xff] }
 0x840   :  { %v4394_v34 = vpop.permute.xlu1 %4393 }
 0x841   :  { %v4443_v12 = vsel %vm4442_vm2, %v4441_v26, %v4394_v34 }
 0x844   :  { %v4398_v3 = vpop.permute.xlu1 %4397 }
 0x845   :  { %v4445_v39 = vsel %vm4444_vm3, %v4443_v12, %v4398_v3 }
 0x848   :  { %v4402_v31 = vpop.permute.xlu1 %4401 }
 0x849   :  { %v4447_v32 = vsel %vm4446_vm4, %v4445_v39, %v4402_v31 }
 0x84c   :  { %v4406_v33 = vpop.permute.xlu1 %4405 }
 0x84d   :  { %v4449_v41 = vsel %vm4448_vm5, %v4447_v32, %v4406_v33  ;;  %v7824_v33 = vld [vmem:[#allocation28_spill] sm:$0xff]  ;;  %v7825_v32 = vld [vmem:[#allocation29_spill] sm:$0xff] }
 0x84e   :  { %v4669_v47 = vmul.f32 -1.442695, %v4449_v41 }
 0x850   :  { %v4410_v11 = vpop.permute.xlu0 %4409  ;;  %4728 = vpow2.f32 %v4669_v47 }
 0x851   :  { %v4450_v59 = vsel %vm4436_vm15, %v4352_v29, %v4410_v11  ;;  %v7813_v29 = vld [vmem:[#allocation16_spill] sm:$0xff]  ;;  %v7819_v11 = vld [vmem:[#allocation25_spill] sm:$0xff] }
 0x854   :  { %v4414_v4 = vpop.permute.xlu0 %4413 }
 0x855   :  { %v4451_v43 = vsel %vm4438_vm0, %v4450_v59, %v4414_v4  ;;  %v7820_v4 = vld [vmem:[#allocation27_spill] sm:$0xff] }
 0x858   :  { %v4418_v14 = vpop.permute.xlu0 %4417 }
 0x859   :  { %v4452_v40 = vsel %vm4440_vm1, %v4451_v43, %v4418_v14  ;;  %v7821_v14 = vld [vmem:[#allocation23_spill] sm:$0xff] }
 0x85c   :  { %v4422_v61 = vpop.permute.xlu0 %4421 }
 0x85d   :  { %v4453_v36 = vsel %vm4442_vm2, %v4452_v40, %v4422_v61  ;;  %v4729_v25 = vpop.eup %4728  ;;  %v7823_v61 = vld [vmem:[#allocation26_spill] sm:$0xff] }
 0x85e   :  { %v4463_v57 = vadd.f32 1.0, %v4729_v25 }
 0x860   :  { %v4426_v24 = vpop.permute.xlu0 %4425 }
 0x861   :  { %v4454_v55 = vsel %vm4444_vm3, %v4453_v36, %v4426_v24  ;;  %v7826_v24 = vld [vmem:[#allocation30_spill] sm:$0xff] }
 0x864   :  { %v4430_v21 = vpop.permute.xlu0 %4429 }
 0x865   :  { %v4455_v6 = vsel %vm4446_vm4, %v4454_v55, %v4430_v21 }
 0x868   :  { %v4434_v20 = vpop.permute.xlu0 %4433 }
 0x869   :  { %v4456_v5 = vsel %vm4448_vm5, %v4455_v6, %v4434_v20 }
 0x86a   :  { %v4670_v8 = vmul.f32 -1.442695, %v4456_v5 }
 0x86c   :  { %4730 = vpow2.f32 %v4670_v8 }
 0x86d   :  { %4732 = vrcp.f32 %v4463_v57 }
 0x879   :  { %v4731_v42 = vpop.eup %4730 }
 0x87a   :  { %v4464_v63 = vadd.f32 1.0, %v4731_v42  ;;  %v4733_v58 = vpop.eup %4732 }
 0x87c   :  { %4734 = vrcp.f32 %v4464_v63 }
 0x889   :  { %v4735_v56 = vpop.eup %4734 }
 0x88a   :  { %v4471_v15 = vcombine.low %v4733_v58, %v4735_v56 }
 0x88c   :  { %v4478_v28 = vrot.slane %v4471_v15, %v4477_v23 }
 0x88e   :  { %v4479_v18 = vcombine.high %v4478_v28, %v4478_v28  ;;  %v4486_v51 = vrot.slane %v4478_v28, %v4477_v23 }
 0x890   :  { %v4493_v60 = vrot.slane %v4479_v18, %v4477_v23  ;;  %v4497_v44 = vrot.slane %v4486_v51, %v7809_v17  ;;  %v4501_v53 = vrot.slane %v4486_v51, %v7810_v10 }
 0x892   :  { %v4505_v50 = vrot.slane %v4493_v60, %v7809_v17  ;;  %v4509_v13 = vrot.slane %v4493_v60, %v7810_v10  ;;  %v4514_v0 = vmul.f32 %v4497_v44, %v7811_v22  ;;  %v4515_v30 = vmul.f32 %v4501_v53, %v7812_v35 }
 0x893   :  { %v4516_v19 = vmul.f32 %v4497_v44, %v7813_v29  ;;  %v4517_v48 = vmul.f32 %v4501_v53, %v7814_v54  ;;  %v4518_v9 = vmul.f32 %v4497_v44, %v7815_v37  ;;  %v4519_v62 = vmul.f32 %v4501_v53, %v7816_v16 }
 0x894   :  { %v4520_v7 = vmul.f32 %v4497_v44, %v7817_v27  ;;  %v4521_v34 = vmul.f32 %v4501_v53, %v7818_v49  ;;  %v4522_v3 = vmul.f32 %v4505_v50, %v7819_v11  ;;  %v4523_v31 = vmul.f32 %v4509_v13, %v7820_v4  ;;  %4530 = vst [vmem:[#allocation8] sm:$0xff] %v4514_v0 }
 0x895   :  { %4531 = vst [vmem:[#allocation8 + $0x8] sm:$0xff] %v4515_v30  ;;  %v4524_v46 = vmul.f32 %v4505_v50, %v7821_v14  ;;  %v4525_v26 = vmul.f32 %v4509_v13, %v7822_v52  ;;  %v4526_v12 = vmul.f32 %v4505_v50, %v7823_v61  ;;  %v4527_v39 = vmul.f32 %v4509_v13, %v7824_v33 }
 0x896   :  { %4532 = vst [vmem:[#allocation8 + $0x10] sm:$0xff] %v4516_v19  ;;  %4533 = vst [vmem:[#allocation8 + $0x18] sm:$0xff] %v4517_v48  ;;  %v4528_v41 = vmul.f32 %v4505_v50, %v7825_v32  ;;  %v4529_v47 = vmul.f32 %v4509_v13, %v7826_v24 }
 0x897   :  { %4534 = vst [vmem:[#allocation8 + $0x20] sm:$0xff] %v4518_v9  ;;  %4535 = vst [vmem:[#allocation8 + $0x28] sm:$0xff] %v4519_v62 }
 0x898   :  { %4536 = vst [vmem:[#allocation8 + $0x30] sm:$0xff] %v4520_v7  ;;  %4537 = vst [vmem:[#allocation8 + $0x38] sm:$0xff] %v4521_v34 }
 0x899   :  { %4538 = vst [vmem:[#allocation8 + $0x40] sm:$0xff] %v4522_v3  ;;  %4539 = vst [vmem:[#allocation8 + $0x48] sm:$0xff] %v4523_v31 }
 0x89a   :  { %4540 = vst [vmem:[#allocation8 + $0x50] sm:$0xff] %v4524_v46  ;;  %4541 = vst [vmem:[#allocation8 + $0x58] sm:$0xff] %v4525_v26 }
 0x89b   :  { %4542 = vst [vmem:[#allocation8 + $0x60] sm:$0xff] %v4526_v12  ;;  %4543 = vst [vmem:[#allocation8 + $0x68] sm:$0xff] %v4527_v39 }
 0x89c   :  { %4544 = vst [vmem:[#allocation8 + $0x70] sm:$0xff] %v4528_v41  ;;  %4545 = vst [vmem:[#allocation8 + $0x78] sm:$0xff] %v4529_v47 }
 0x89d   :  { %4812 = shalt.err (!%p4809_p0)
}
 0x89e   :  { %4557 = dma.vmem_to_hbm [thread:$0]  %s4552_s8, 2048, %s7584_s4, [#allocation5], %s4828_s21, %s4828_s21, %s4829_s22  }
 0x89f   :  { %4825 = dma.done.wait [#allocation5], 2048  }
 0x8a0   :  { %4826 = vsyncadd [#allocation5], 4294965248 }
 0x8a1   :  { %4561 = vsyncpa [#allocation4], 1 }
 0x8a2   :  { %4562 = vsyncpa [#allocation5], 1 }
 0x8a3   :  { %4563 = vsyncpa [#allocation6], 1 }

</bundles_post_ra>
